<compile_context>
chip_gen: v7x
topology: tpu7x:2x2x1
jax: 0.10.0
libtpu: 0.0.40
codegen_flags: <defaults>
</compile_context>

<pallas_src>
import jax
import jax.numpy as jnp
from jax import lax
from jax.experimental import pallas as pl
from jax.experimental.pallas import tpu as pltpu

# ---------------- configuration (small shapes consistent with the module) ----------------
BATCH = 2
BP = 8               # batch padded to a full sublane group
SEQ = 8
EMBED = 32           # bert.config.hidden_size -> embedding_dim
HIDDEN = 32          # hidden_dim
N_LAYERS = 2
N_DIRECTION = 2      # bidirectional
OUTPUT_DIM = 3
OUT_PAD = 128        # lane-dense padded output width
VOCAB = 64
FFN = 4 * EMBED      # 128


# ------------------------------------ fused kernel ---------------------------------------
def _fused_kernel(x_ref,
                  w1_ref, b1_ref, w2_ref, b2_ref, g1_ref, be1_ref, g2_ref, be2_ref,
                  wih0_ref, whh0_ref, bih0_ref, bhh0_ref,
                  wih1_ref, whh1_ref, bih1_ref, bhh1_ref,
                  ow_ref, ob_ref,
                  o_ref):
    f32 = jnp.float32
    bf16 = jnp.bfloat16
    H = HIDDEN
    G = 3 * H

    def mm(a, w_ref):
        # bf16 MXU operands, f32 accumulation.
        return jnp.dot(a.astype(bf16), w_ref[...], preferred_element_type=f32)

    def layer_norm(v, g, b):
        mu = jnp.mean(v, axis=-1, keepdims=True)
        var = jnp.mean(jnp.square(v - mu), axis=-1, keepdims=True)
        return (v - mu) * lax.rsqrt(var + 1e-12) * g + b

    # ---- frozen BERT stand-in block (LN -> FFN(GELU) -> residual -> LN) ----
    # TODO(synk): a pretrained BERT cannot be reproduced in-script; deterministic stand-in
    # with the same [B, T, hidden_size] output contract as `self.bert(text)[0]`.
    x = x_ref[...]                                              # [T*BP, E] f32
    h0 = layer_norm(x, g1_ref[...], be1_ref[...])
    h0 = mm(h0, w1_ref) + b1_ref[...]
    h0 = jax.nn.gelu(h0)
    h0 = mm(h0, w2_ref) + b2_ref[...]
    bert_out = layer_norm(x + h0, g2_ref[...], be2_ref[...])    # [T*BP, E]

    # ---- block-diagonal direction mask (fwd rows use lanes 0:H, bwd rows use lanes H:2H)
    row = lax.broadcasted_iota(jnp.int32, (2 * BP, 2 * H), 0)
    col = lax.broadcasted_iota(jnp.int32, (2 * BP, 2 * H), 1)
    dir_mask = jnp.where((row < BP) == (col < H), 1.0, 0.0).astype(f32)

    # ---- one bidirectional GRU layer, both directions fused per step ----
    def gru_layer(x_l, wih_ref, whh_ref, bih_ref, bhh_ref, collect):
        # x_l: [T*BP, In].  wih: [In, 6H] (fwd cols 0:3H, bwd cols 3H:6H, gate order r,z,n)
        # whh: [2H, 3H] = vstack(whh_fwd, whh_bwd).  bhh: [2BP, 3H] (rows 0:BP fwd, rest bwd)
        gi_all = mm(x_l, wih_ref) + bih_ref[...]                # [T*BP, 6H]  (hoisted proj)
        gi_f = gi_all[:, 0:G]
        gi_b = gi_all[:, G:2 * G]
        bhh = bhh_ref[...]

        h = jnp.zeros((2 * BP, H), f32)        # [fwd ; bwd] stacked on sublanes
        h2 = jnp.zeros((2 * BP, 2 * H), f32)   # block-diagonal layout for the W_hh matmul
        fwd_y = [None] * SEQ
        bwd_y = [None] * SEQ

        for t in range(SEQ):                   # fully unrolled; T is static
            tr = SEQ - 1 - t                   # backward direction reads reversed time
            gi = jnp.concatenate([gi_f[t * BP:(t + 1) * BP, :],
                                  gi_b[tr * BP:(tr + 1) * BP, :]], axis=0)   # [2BP, 3H]
            gh = mm(h2, whh_ref) + bhh                                       # [2BP, 3H]
            r = jax.nn.sigmoid(gi[:, 0:H] + gh[:, 0:H])
            z = jax.nn.sigmoid(gi[:, H:2 * H] + gh[:, H:2 * H])
            n = jnp.tanh(gi[:, 2 * H:3 * H] + r * gh[:, 2 * H:3 * H])
            h = (1.0 - z) * n + z * h                                        # [2BP, H]
            h2 = jnp.concatenate([h, h], axis=1) * dir_mask                  # [2BP, 2H]
            if collect:
                fwd_y[t] = h[0:BP]
                bwd_y[tr] = h[BP:2 * BP]

        y = None
        if collect:
            y = jnp.concatenate(
                [jnp.concatenate([fwd_y[t], bwd_y[t]], axis=1) for t in range(SEQ)],
                axis=0)                                                      # [T*BP, 2H]
        return y, h

    # layer 0 feeds layer 1; only layer 1's final states are needed downstream.
    x1, _ = gru_layer(bert_out, wih0_ref, whh0_ref, bih0_ref, bhh0_ref, True)
    _, h_last = gru_layer(x1, wih1_ref, whh1_ref, bih1_ref, bhh1_ref, False)

    # hidden = cat(hidden[-2], hidden[-1]); dropout is identity at inference.
    hidden = jnp.concatenate([h_last[0:BP], h_last[BP:2 * BP]], axis=1)      # [BP, 2H]

    # output = Linear(hidden)  (lane-dense padded to 128 columns)
    o_ref[...] = mm(hidden, ow_ref) + ob_ref[...]                            # [BP, 128]


# ------------------------------------ forward wrapper ------------------------------------
def review_sentiment_bert_forward(text, p):
    # embedding lookup (gather) is JAX glue; frozen (torch.no_grad equivalent).
    emb = p["word_emb"][text] + p["pos_emb"][None, :, :]        # [B, T, E]
    emb = lax.stop_gradient(emb)
    # pad batch 2 -> 8 (sublane-dense), time-major flatten: [T*BP, E]
    emb = jnp.pad(emb, ((0, BP - BATCH), (0, 0), (0, 0)))
    x = jnp.transpose(emb, (1, 0, 2)).reshape(SEQ * BP, EMBED).astype(jnp.float32)

    vmem = pl.BlockSpec(memory_space=pltpu.MemorySpace.VMEM)
    out = pl.pallas_call(
        _fused_kernel,
        in_specs=[vmem] * 19,
        out_specs=vmem,
        out_shape=jax.ShapeDtypeStruct((BP, OUT_PAD), jnp.float32),
    )(x,
      p["w1"], p["b1"], p["w2"], p["b2"], p["g1"], p["be1"], p["g2"], p["be2"],
      p["gru0_wih"], p["gru0_whh"], p["gru0_bih"], p["gru0_bhh"],
      p["gru1_wih"], p["gru1_whh"], p["gru1_bih"], p["gru1_bhh"],
      p["out_w"], p["out_b"])

    return out[:BATCH, :OUTPUT_DIM]                             # strip batch / lane padding


# -------------------------------- deterministic params -----------------------------------
def init_params(key):
    keys = iter(jax.random.split(key, 64))
    nxt = lambda: next(keys)
    u = lambda shape, s: jax.random.uniform(nxt(), shape, jnp.float32, -s, s)

    p = {
        "word_emb": 0.02 * jax.random.normal(nxt(), (VOCAB, EMBED), jnp.float32),
        "pos_emb": 0.02 * jax.random.normal(nxt(), (SEQ, EMBED), jnp.float32),
        # frozen BERT stand-in weights (matmul operands in bf16, everything else f32)
        "w1": u((EMBED, FFN), EMBED ** -0.5).astype(jnp.bfloat16),
        "b1": jnp.zeros((1, FFN), jnp.float32),
        "w2": u((FFN, EMBED), FFN ** -0.5).astype(jnp.bfloat16),
        "b2": jnp.zeros((1, EMBED), jnp.float32),
        "g1": jnp.ones((1, EMBED), jnp.float32),
        "be1": jnp.zeros((1, EMBED), jnp.float32),
        "g2": jnp.ones((1, EMBED), jnp.float32),
        "be2": jnp.zeros((1, EMBED), jnp.float32),
    }

    ks = HIDDEN ** -0.5
    for l in range(N_LAYERS):
        in_dim = EMBED if l == 0 else HIDDEN * N_DIRECTION
        wih, whh, bih, bhh_rows = [], [], [], []
        for _d in range(N_DIRECTION):          # direction 0 = fwd, 1 = bwd
            wih.append(u((in_dim, 3 * HIDDEN), ks))      # W_ih^T  (gate order r, z, n)
            whh.append(u((HIDDEN, 3 * HIDDEN), ks))      # W_hh^T
            bih.append(u((1, 3 * HIDDEN), ks))           # b_ih
            bhh_rows.append(jnp.tile(u((1, 3 * HIDDEN), ks), (BP, 1)))   # b_hh per row block
        p[f"gru{l}_wih"] = jnp.concatenate(wih, axis=1).astype(jnp.bfloat16)   # [In, 6H]
        p[f"gru{l}_whh"] = jnp.concatenate(whh, axis=0).astype(jnp.bfloat16)   # [2H, 3H]
        p[f"gru{l}_bih"] = jnp.concatenate(bih, axis=1)                        # [1, 6H]
        p[f"gru{l}_bhh"] = jnp.concatenate(bhh_rows, axis=0)                   # [2BP, 3H]

    ow = u((HIDDEN * N_DIRECTION, OUTPUT_DIM), (HIDDEN * N_DIRECTION) ** -0.5)
    p["out_w"] = jnp.pad(ow, ((0, 0), (0, OUT_PAD - OUTPUT_DIM))).astype(jnp.bfloat16)
    p["out_b"] = jnp.zeros((1, OUT_PAD), jnp.float32)
    return p


if __name__ == "__main__":
    key = jax.random.PRNGKey(0)
    pkey, tkey = jax.random.split(key)
    params = init_params(pkey)
    text = jax.random.randint(tkey, (BATCH, SEQ), 0, VOCAB, dtype=jnp.int32)  # token ids

    out = jax.jit(review_sentiment_bert_forward)(text, params)
    out = jax.block_until_ready(out)
    assert out.shape == (BATCH, OUTPUT_DIM) and out.dtype == jnp.float32
    assert bool(jnp.all(jnp.isfinite(out)))
    print("KERNEL_OK")
</pallas_src>

<mosaic_0001>
module attributes {stable_mosaic.version = 11 : i64} {
  func.func @_fused_kernel(%arg0: memref<64x32xf32, #tpu.memory_space<vmem>>, %arg1: memref<32x128xbf16, #tpu.memory_space<vmem>>, %arg2: memref<1x128xf32, #tpu.memory_space<vmem>>, %arg3: memref<128x32xbf16, #tpu.memory_space<vmem>>, %arg4: memref<1x32xf32, #tpu.memory_space<vmem>>, %arg5: memref<1x32xf32, #tpu.memory_space<vmem>>, %arg6: memref<1x32xf32, #tpu.memory_space<vmem>>, %arg7: memref<1x32xf32, #tpu.memory_space<vmem>>, %arg8: memref<1x32xf32, #tpu.memory_space<vmem>>, %arg9: memref<32x192xbf16, #tpu.memory_space<vmem>>, %arg10: memref<64x96xbf16, #tpu.memory_space<vmem>>, %arg11: memref<1x192xf32, #tpu.memory_space<vmem>>, %arg12: memref<16x96xf32, #tpu.memory_space<vmem>>, %arg13: memref<64x192xbf16, #tpu.memory_space<vmem>>, %arg14: memref<64x96xbf16, #tpu.memory_space<vmem>>, %arg15: memref<1x192xf32, #tpu.memory_space<vmem>>, %arg16: memref<16x96xf32, #tpu.memory_space<vmem>>, %arg17: memref<64x128xbf16, #tpu.memory_space<vmem>>, %arg18: memref<1x128xf32, #tpu.memory_space<vmem>>, %arg19: memref<8x128xf32, #tpu.memory_space<vmem>>) attributes {dimension_semantics = [], scalar_prefetch = 0 : i64, scratch_operands = 0 : i64, tpu.core_type = #tpu.core_type<tc>} {
    %c0 = arith.constant 0 : index
    %c0_0 = arith.constant 0 : index
    %0 = vector.load %arg0[%c0, %c0_0] : memref<64x32xf32, #tpu.memory_space<vmem>>, vector<64x32xf32>
    %c0_1 = arith.constant 0 : index
    %c0_2 = arith.constant 0 : index
    %1 = vector.load %arg5[%c0_1, %c0_2] : memref<1x32xf32, #tpu.memory_space<vmem>>, vector<1x32xf32>
    %c0_3 = arith.constant 0 : index
    %c0_4 = arith.constant 0 : index
    %2 = vector.load %arg6[%c0_3, %c0_4] : memref<1x32xf32, #tpu.memory_space<vmem>>, vector<1x32xf32>
    %cst = arith.constant dense<0.000000e+00> : vector<64xf32>
    %3 = vector.multi_reduction <add>, %0, %cst [1] : vector<64x32xf32> to vector<64xf32>
    %4 = vector.shape_cast %3 : vector<64xf32> to vector<64x1xf32>
    %cst_5 = arith.constant 3.200000e+01 : f32
    %5 = vector.broadcast %cst_5 : f32 to vector<64x1xf32>
    %6 = arith.divf %4, %5 : vector<64x1xf32>
    %7 = vector.broadcast %6 : vector<64x1xf32> to vector<64x32xf32>
    %8 = arith.subf %0, %7 : vector<64x32xf32>
    %9 = arith.mulf %8, %8 : vector<64x32xf32>
    %cst_6 = arith.constant dense<0.000000e+00> : vector<64xf32>
    %10 = vector.multi_reduction <add>, %9, %cst_6 [1] : vector<64x32xf32> to vector<64xf32>
    %11 = vector.shape_cast %10 : vector<64xf32> to vector<64x1xf32>
    %cst_7 = arith.constant 3.200000e+01 : f32
    %12 = vector.broadcast %cst_7 : f32 to vector<64x1xf32>
    %13 = arith.divf %11, %12 : vector<64x1xf32>
    %14 = vector.broadcast %6 : vector<64x1xf32> to vector<64x32xf32>
    %15 = arith.subf %0, %14 : vector<64x32xf32>
    %cst_8 = arith.constant 9.99999996E-13 : f32
    %16 = vector.broadcast %cst_8 : f32 to vector<64x1xf32>
    %17 = arith.addf %13, %16 : vector<64x1xf32>
    %18 = math.rsqrt %17 : vector<64x1xf32>
    %19 = vector.broadcast %18 : vector<64x1xf32> to vector<64x32xf32>
    %20 = arith.mulf %15, %19 : vector<64x32xf32>
    %21 = vector.broadcast %1 : vector<1x32xf32> to vector<64x32xf32>
    %22 = arith.mulf %20, %21 : vector<64x32xf32>
    %23 = vector.broadcast %2 : vector<1x32xf32> to vector<64x32xf32>
    %24 = arith.addf %22, %23 : vector<64x32xf32>
    %25 = arith.truncf %24 : vector<64x32xf32> to vector<64x32xbf16>
    %c0_9 = arith.constant 0 : index
    %c0_10 = arith.constant 0 : index
    %26 = vector.load %arg1[%c0_9, %c0_10] : memref<32x128xbf16, #tpu.memory_space<vmem>>, vector<32x128xbf16>
    %cst_11 = arith.constant dense<0.000000e+00> : vector<64x128xf32>
    %27 = tpu.matmul %25, %26, %cst_11 {dimension_numbers = #tpu.dot_dimension_numbers<[1], [0], [0], [1], [0, 0, 1, 1], [], []>} : vector<64x32xbf16>, vector<32x128xbf16>, vector<64x128xf32> -> vector<64x128xf32>
    %c0_12 = arith.constant 0 : index
    %c0_13 = arith.constant 0 : index
    %28 = vector.load %arg2[%c0_12, %c0_13] : memref<1x128xf32, #tpu.memory_space<vmem>>, vector<1x128xf32>
    %29 = vector.broadcast %28 : vector<1x128xf32> to vector<64x128xf32>
    %30 = arith.addf %27, %29 : vector<64x128xf32>
    %31 = arith.mulf %30, %30 : vector<64x128xf32>
    %32 = arith.mulf %30, %31 : vector<64x128xf32>
    %cst_14 = arith.constant 4.471500e-02 : f32
    %33 = vector.broadcast %cst_14 : f32 to vector<64x128xf32>
    %34 = arith.mulf %33, %32 : vector<64x128xf32>
    %35 = arith.addf %30, %34 : vector<64x128xf32>
    %cst_15 = arith.constant 0.797884583 : f32
    %36 = vector.broadcast %cst_15 : f32 to vector<64x128xf32>
    %37 = arith.mulf %36, %35 : vector<64x128xf32>
    %38 = math.tanh %37 : vector<64x128xf32>
    %cst_16 = arith.constant 1.000000e+00 : f32
    %39 = vector.broadcast %cst_16 : f32 to vector<64x128xf32>
    %40 = arith.addf %39, %38 : vector<64x128xf32>
    %cst_17 = arith.constant 5.000000e-01 : f32
    %41 = vector.broadcast %cst_17 : f32 to vector<64x128xf32>
    %42 = arith.mulf %41, %40 : vector<64x128xf32>
    %43 = arith.mulf %30, %42 : vector<64x128xf32>
    %44 = arith.truncf %43 : vector<64x128xf32> to vector<64x128xbf16>
    %c0_18 = arith.constant 0 : index
    %c0_19 = arith.constant 0 : index
    %45 = vector.load %arg3[%c0_18, %c0_19] : memref<128x32xbf16, #tpu.memory_space<vmem>>, vector<128x32xbf16>
    %cst_20 = arith.constant dense<0.000000e+00> : vector<64x32xf32>
    %46 = tpu.matmul %44, %45, %cst_20 {dimension_numbers = #tpu.dot_dimension_numbers<[1], [0], [0], [1], [0, 0, 1, 1], [], []>} : vector<64x128xbf16>, vector<128x32xbf16>, vector<64x32xf32> -> vector<64x32xf32>
    %c0_21 = arith.constant 0 : index
    %c0_22 = arith.constant 0 : index
    %47 = vector.load %arg4[%c0_21, %c0_22] : memref<1x32xf32, #tpu.memory_space<vmem>>, vector<1x32xf32>
    %48 = vector.broadcast %47 : vector<1x32xf32> to vector<64x32xf32>
    %49 = arith.addf %46, %48 : vector<64x32xf32>
    %50 = arith.addf %0, %49 : vector<64x32xf32>
    %c0_23 = arith.constant 0 : index
    %c0_24 = arith.constant 0 : index
    %51 = vector.load %arg7[%c0_23, %c0_24] : memref<1x32xf32, #tpu.memory_space<vmem>>, vector<1x32xf32>
    %c0_25 = arith.constant 0 : index
    %c0_26 = arith.constant 0 : index
    %52 = vector.load %arg8[%c0_25, %c0_26] : memref<1x32xf32, #tpu.memory_space<vmem>>, vector<1x32xf32>
    %cst_27 = arith.constant dense<0.000000e+00> : vector<64xf32>
    %53 = vector.multi_reduction <add>, %50, %cst_27 [1] : vector<64x32xf32> to vector<64xf32>
    %54 = vector.shape_cast %53 : vector<64xf32> to vector<64x1xf32>
    %cst_28 = arith.constant 3.200000e+01 : f32
    %55 = vector.broadcast %cst_28 : f32 to vector<64x1xf32>
    %56 = arith.divf %54, %55 : vector<64x1xf32>
    %57 = vector.broadcast %56 : vector<64x1xf32> to vector<64x32xf32>
    %58 = arith.subf %50, %57 : vector<64x32xf32>
    %59 = arith.mulf %58, %58 : vector<64x32xf32>
    %cst_29 = arith.constant dense<0.000000e+00> : vector<64xf32>
    %60 = vector.multi_reduction <add>, %59, %cst_29 [1] : vector<64x32xf32> to vector<64xf32>
    %61 = vector.shape_cast %60 : vector<64xf32> to vector<64x1xf32>
    %cst_30 = arith.constant 3.200000e+01 : f32
    %62 = vector.broadcast %cst_30 : f32 to vector<64x1xf32>
    %63 = arith.divf %61, %62 : vector<64x1xf32>
    %64 = vector.broadcast %56 : vector<64x1xf32> to vector<64x32xf32>
    %65 = arith.subf %50, %64 : vector<64x32xf32>
    %cst_31 = arith.constant 9.99999996E-13 : f32
    %66 = vector.broadcast %cst_31 : f32 to vector<64x1xf32>
    %67 = arith.addf %63, %66 : vector<64x1xf32>
    %68 = math.rsqrt %67 : vector<64x1xf32>
    %69 = vector.broadcast %68 : vector<64x1xf32> to vector<64x32xf32>
    %70 = arith.mulf %65, %69 : vector<64x32xf32>
    %71 = vector.broadcast %51 : vector<1x32xf32> to vector<64x32xf32>
    %72 = arith.mulf %70, %71 : vector<64x32xf32>
    %73 = vector.broadcast %52 : vector<1x32xf32> to vector<64x32xf32>
    %74 = arith.addf %72, %73 : vector<64x32xf32>
    %75 = tpu.iota {dimensions = array<i32: 0>} : vector<16x64xi32>
    %76 = tpu.iota {dimensions = array<i32: 1>} : vector<16x64xi32>
    %c8_i32 = arith.constant 8 : i32
    %77 = vector.broadcast %c8_i32 : i32 to vector<16x64xi32>
    %78 = arith.cmpi slt, %75, %77 : vector<16x64xi32>
    %c32_i32 = arith.constant 32 : i32
    %79 = vector.broadcast %c32_i32 : i32 to vector<16x64xi32>
    %80 = arith.cmpi slt, %76, %79 : vector<16x64xi32>
    %81 = arith.xori %78, %80 : vector<16x64xi1>
    %cst_32 = arith.constant dense<true> : vector<16x64xi1>
    %82 = arith.xori %81, %cst_32 : vector<16x64xi1>
    %cst_33 = arith.constant 1.000000e+00 : f32
    %cst_34 = arith.constant 0.000000e+00 : f32
    %83 = vector.broadcast %cst_33 : f32 to vector<16x64xf32>
    %84 = vector.broadcast %cst_34 : f32 to vector<16x64xf32>
    %85 = arith.select %82, %83, %84 : vector<16x64xi1>, vector<16x64xf32>
    %86 = arith.truncf %74 : vector<64x32xf32> to vector<64x32xbf16>
    %c0_35 = arith.constant 0 : index
    %c0_36 = arith.constant 0 : index
    %87 = vector.load %arg9[%c0_35, %c0_36] : memref<32x192xbf16, #tpu.memory_space<vmem>>, vector<32x192xbf16>
    %cst_37 = arith.constant dense<0.000000e+00> : vector<64x192xf32>
    %88 = tpu.matmul %86, %87, %cst_37 {dimension_numbers = #tpu.dot_dimension_numbers<[1], [0], [0], [1], [0, 0, 1, 1], [], []>} : vector<64x32xbf16>, vector<32x192xbf16>, vector<64x192xf32> -> vector<64x192xf32>
    %c0_38 = arith.constant 0 : index
    %c0_39 = arith.constant 0 : index
    %89 = vector.load %arg11[%c0_38, %c0_39] : memref<1x192xf32, #tpu.memory_space<vmem>>, vector<1x192xf32>
    %90 = vector.broadcast %89 : vector<1x192xf32> to vector<64x192xf32>
    %91 = arith.addf %88, %90 : vector<64x192xf32>
    %92 = vector.extract_strided_slice %91 {offsets = [0, 0], sizes = [64, 96], strides = [1, 1]} : vector<64x192xf32> to vector<64x96xf32>
    %93 = vector.extract_strided_slice %91 {offsets = [0, 96], sizes = [64, 96], strides = [1, 1]} : vector<64x192xf32> to vector<64x96xf32>
    %c0_40 = arith.constant 0 : index
    %c0_41 = arith.constant 0 : index
    %94 = vector.load %arg12[%c0_40, %c0_41] : memref<16x96xf32, #tpu.memory_space<vmem>>, vector<16x96xf32>
    %cst_42 = arith.constant 0.000000e+00 : f32
    %95 = vector.broadcast %cst_42 : f32 to vector<16x32xf32>
    %cst_43 = arith.constant 0.000000e+00 : f32
    %96 = vector.broadcast %cst_43 : f32 to vector<16x64xf32>
    %97 = vector.extract_strided_slice %92 {offsets = [0, 0], sizes = [8, 96], strides = [1, 1]} : vector<64x96xf32> to vector<8x96xf32>
    %98 = vector.extract_strided_slice %93 {offsets = [56, 0], sizes = [8, 96], strides = [1, 1]} : vector<64x96xf32> to vector<8x96xf32>
    %99 = tpu.concatenate %97, %98 in 0 : vector<8x96xf32>, vector<8x96xf32> -> vector<16x96xf32>
    %100 = arith.truncf %96 : vector<16x64xf32> to vector<16x64xbf16>
    %c0_44 = arith.constant 0 : index
    %c0_45 = arith.constant 0 : index
    %101 = vector.load %arg10[%c0_44, %c0_45] : memref<64x96xbf16, #tpu.memory_space<vmem>>, vector<64x96xbf16>
    %cst_46 = arith.constant dense<0.000000e+00> : vector<16x96xf32>
    %102 = tpu.matmul %100, %101, %cst_46 {dimension_numbers = #tpu.dot_dimension_numbers<[1], [0], [0], [1], [0, 0, 1, 1], [], []>} : vector<16x64xbf16>, vector<64x96xbf16>, vector<16x96xf32> -> vector<16x96xf32>
    %103 = arith.addf %102, %94 : vector<16x96xf32>
    %104 = vector.extract_strided_slice %99 {offsets = [0, 0], sizes = [16, 32], strides = [1, 1]} : vector<16x96xf32> to vector<16x32xf32>
    %105 = vector.extract_strided_slice %103 {offsets = [0, 0], sizes = [16, 32], strides = [1, 1]} : vector<16x96xf32> to vector<16x32xf32>
    %106 = arith.addf %104, %105 : vector<16x32xf32>
    %107 = arith.negf %106 : vector<16x32xf32>
    %108 = math.exp %107 : vector<16x32xf32>
    %cst_47 = arith.constant 1.000000e+00 : f32
    %109 = vector.broadcast %cst_47 : f32 to vector<16x32xf32>
    %110 = arith.addf %109, %108 : vector<16x32xf32>
    %111 = arith.divf %109, %110 : vector<16x32xf32>
    %112 = vector.extract_strided_slice %99 {offsets = [0, 32], sizes = [16, 32], strides = [1, 1]} : vector<16x96xf32> to vector<16x32xf32>
    %113 = vector.extract_strided_slice %103 {offsets = [0, 32], sizes = [16, 32], strides = [1, 1]} : vector<16x96xf32> to vector<16x32xf32>
    %114 = arith.addf %112, %113 : vector<16x32xf32>
    %115 = arith.negf %114 : vector<16x32xf32>
    %116 = math.exp %115 : vector<16x32xf32>
    %cst_48 = arith.constant 1.000000e+00 : f32
    %117 = vector.broadcast %cst_48 : f32 to vector<16x32xf32>
    %118 = arith.addf %117, %116 : vector<16x32xf32>
    %119 = arith.divf %117, %118 : vector<16x32xf32>
    %120 = vector.extract_strided_slice %99 {offsets = [0, 64], sizes = [16, 32], strides = [1, 1]} : vector<16x96xf32> to vector<16x32xf32>
    %121 = vector.extract_strided_slice %103 {offsets = [0, 64], sizes = [16, 32], strides = [1, 1]} : vector<16x96xf32> to vector<16x32xf32>
    %122 = arith.mulf %111, %121 : vector<16x32xf32>
    %123 = arith.addf %120, %122 : vector<16x32xf32>
    %124 = math.tanh %123 : vector<16x32xf32>
    %cst_49 = arith.constant 1.000000e+00 : f32
    %125 = vector.broadcast %cst_49 : f32 to vector<16x32xf32>
    %126 = arith.subf %125, %119 : vector<16x32xf32>
    %127 = arith.mulf %126, %124 : vector<16x32xf32>
    %128 = arith.mulf %119, %95 : vector<16x32xf32>
    %129 = arith.addf %127, %128 : vector<16x32xf32>
    %130 = tpu.concatenate %129, %129 in 1 : vector<16x32xf32>, vector<16x32xf32> -> vector<16x64xf32>
    %131 = arith.mulf %130, %85 : vector<16x64xf32>
    %132 = vector.extract_strided_slice %129 {offsets = [0, 0], sizes = [8, 32], strides = [1, 1]} : vector<16x32xf32> to vector<8x32xf32>
    %133 = vector.extract_strided_slice %129 {offsets = [8, 0], sizes = [8, 32], strides = [1, 1]} : vector<16x32xf32> to vector<8x32xf32>
    %134 = vector.extract_strided_slice %92 {offsets = [8, 0], sizes = [8, 96], strides = [1, 1]} : vector<64x96xf32> to vector<8x96xf32>
    %135 = vector.extract_strided_slice %93 {offsets = [48, 0], sizes = [8, 96], strides = [1, 1]} : vector<64x96xf32> to vector<8x96xf32>
    %136 = tpu.concatenate %134, %135 in 0 : vector<8x96xf32>, vector<8x96xf32> -> vector<16x96xf32>
    %137 = arith.truncf %131 : vector<16x64xf32> to vector<16x64xbf16>
    %c0_50 = arith.constant 0 : index
    %c0_51 = arith.constant 0 : index
    %138 = vector.load %arg10[%c0_50, %c0_51] : memref<64x96xbf16, #tpu.memory_space<vmem>>, vector<64x96xbf16>
    %cst_52 = arith.constant dense<0.000000e+00> : vector<16x96xf32>
    %139 = tpu.matmul %137, %138, %cst_52 {dimension_numbers = #tpu.dot_dimension_numbers<[1], [0], [0], [1], [0, 0, 1, 1], [], []>} : vector<16x64xbf16>, vector<64x96xbf16>, vector<16x96xf32> -> vector<16x96xf32>
    %140 = arith.addf %139, %94 : vector<16x96xf32>
    %141 = vector.extract_strided_slice %136 {offsets = [0, 0], sizes = [16, 32], strides = [1, 1]} : vector<16x96xf32> to vector<16x32xf32>
    %142 = vector.extract_strided_slice %140 {offsets = [0, 0], sizes = [16, 32], strides = [1, 1]} : vector<16x96xf32> to vector<16x32xf32>
    %143 = arith.addf %141, %142 : vector<16x32xf32>
    %144 = arith.negf %143 : vector<16x32xf32>
    %145 = math.exp %144 : vector<16x32xf32>
    %cst_53 = arith.constant 1.000000e+00 : f32
    %146 = vector.broadcast %cst_53 : f32 to vector<16x32xf32>
    %147 = arith.addf %146, %145 : vector<16x32xf32>
    %148 = arith.divf %146, %147 : vector<16x32xf32>
    %149 = vector.extract_strided_slice %136 {offsets = [0, 32], sizes = [16, 32], strides = [1, 1]} : vector<16x96xf32> to vector<16x32xf32>
    %150 = vector.extract_strided_slice %140 {offsets = [0, 32], sizes = [16, 32], strides = [1, 1]} : vector<16x96xf32> to vector<16x32xf32>
    %151 = arith.addf %149, %150 : vector<16x32xf32>
    %152 = arith.negf %151 : vector<16x32xf32>
    %153 = math.exp %152 : vector<16x32xf32>
    %cst_54 = arith.constant 1.000000e+00 : f32
    %154 = vector.broadcast %cst_54 : f32 to vector<16x32xf32>
    %155 = arith.addf %154, %153 : vector<16x32xf32>
    %156 = arith.divf %154, %155 : vector<16x32xf32>
    %157 = vector.extract_strided_slice %136 {offsets = [0, 64], sizes = [16, 32], strides = [1, 1]} : vector<16x96xf32> to vector<16x32xf32>
    %158 = vector.extract_strided_slice %140 {offsets = [0, 64], sizes = [16, 32], strides = [1, 1]} : vector<16x96xf32> to vector<16x32xf32>
    %159 = arith.mulf %148, %158 : vector<16x32xf32>
    %160 = arith.addf %157, %159 : vector<16x32xf32>
    %161 = math.tanh %160 : vector<16x32xf32>
    %cst_55 = arith.constant 1.000000e+00 : f32
    %162 = vector.broadcast %cst_55 : f32 to vector<16x32xf32>
    %163 = arith.subf %162, %156 : vector<16x32xf32>
    %164 = arith.mulf %163, %161 : vector<16x32xf32>
    %165 = arith.mulf %156, %129 : vector<16x32xf32>
    %166 = arith.addf %164, %165 : vector<16x32xf32>
    %167 = tpu.concatenate %166, %166 in 1 : vector<16x32xf32>, vector<16x32xf32> -> vector<16x64xf32>
    %168 = arith.mulf %167, %85 : vector<16x64xf32>
    %169 = vector.extract_strided_slice %166 {offsets = [0, 0], sizes = [8, 32], strides = [1, 1]} : vector<16x32xf32> to vector<8x32xf32>
    %170 = vector.extract_strided_slice %166 {offsets = [8, 0], sizes = [8, 32], strides = [1, 1]} : vector<16x32xf32> to vector<8x32xf32>
    %171 = vector.extract_strided_slice %92 {offsets = [16, 0], sizes = [8, 96], strides = [1, 1]} : vector<64x96xf32> to vector<8x96xf32>
    %172 = vector.extract_strided_slice %93 {offsets = [40, 0], sizes = [8, 96], strides = [1, 1]} : vector<64x96xf32> to vector<8x96xf32>
    %173 = tpu.concatenate %171, %172 in 0 : vector<8x96xf32>, vector<8x96xf32> -> vector<16x96xf32>
    %174 = arith.truncf %168 : vector<16x64xf32> to vector<16x64xbf16>
    %c0_56 = arith.constant 0 : index
    %c0_57 = arith.constant 0 : index
    %175 = vector.load %arg10[%c0_56, %c0_57] : memref<64x96xbf16, #tpu.memory_space<vmem>>, vector<64x96xbf16>
    %cst_58 = arith.constant dense<0.000000e+00> : vector<16x96xf32>
    %176 = tpu.matmul %174, %175, %cst_58 {dimension_numbers = #tpu.dot_dimension_numbers<[1], [0], [0], [1], [0, 0, 1, 1], [], []>} : vector<16x64xbf16>, vector<64x96xbf16>, vector<16x96xf32> -> vector<16x96xf32>
    %177 = arith.addf %176, %94 : vector<16x96xf32>
    %178 = vector.extract_strided_slice %173 {offsets = [0, 0], sizes = [16, 32], strides = [1, 1]} : vector<16x96xf32> to vector<16x32xf32>
    %179 = vector.extract_strided_slice %177 {offsets = [0, 0], sizes = [16, 32], strides = [1, 1]} : vector<16x96xf32> to vector<16x32xf32>
    %180 = arith.addf %178, %179 : vector<16x32xf32>
    %181 = arith.negf %180 : vector<16x32xf32>
    %182 = math.exp %181 : vector<16x32xf32>
    %cst_59 = arith.constant 1.000000e+00 : f32
    %183 = vector.broadcast %cst_59 : f32 to vector<16x32xf32>
    %184 = arith.addf %183, %182 : vector<16x32xf32>
    %185 = arith.divf %183, %184 : vector<16x32xf32>
    %186 = vector.extract_strided_slice %173 {offsets = [0, 32], sizes = [16, 32], strides = [1, 1]} : vector<16x96xf32> to vector<16x32xf32>
    %187 = vector.extract_strided_slice %177 {offsets = [0, 32], sizes = [16, 32], strides = [1, 1]} : vector<16x96xf32> to vector<16x32xf32>
    %188 = arith.addf %186, %187 : vector<16x32xf32>
    %189 = arith.negf %188 : vector<16x32xf32>
    %190 = math.exp %189 : vector<16x32xf32>
    %cst_60 = arith.constant 1.000000e+00 : f32
    %191 = vector.broadcast %cst_60 : f32 to vector<16x32xf32>
    %192 = arith.addf %191, %190 : vector<16x32xf32>
    %193 = arith.divf %191, %192 : vector<16x32xf32>
    %194 = vector.extract_strided_slice %173 {offsets = [0, 64], sizes = [16, 32], strides = [1, 1]} : vector<16x96xf32> to vector<16x32xf32>
    %195 = vector.extract_strided_slice %177 {offsets = [0, 64], sizes = [16, 32], strides = [1, 1]} : vector<16x96xf32> to vector<16x32xf32>
    %196 = arith.mulf %185, %195 : vector<16x32xf32>
    %197 = arith.addf %194, %196 : vector<16x32xf32>
    %198 = math.tanh %197 : vector<16x32xf32>
    %cst_61 = arith.constant 1.000000e+00 : f32
    %199 = vector.broadcast %cst_61 : f32 to vector<16x32xf32>
    %200 = arith.subf %199, %193 : vector<16x32xf32>
    %201 = arith.mulf %200, %198 : vector<16x32xf32>
    %202 = arith.mulf %193, %166 : vector<16x32xf32>
    %203 = arith.addf %201, %202 : vector<16x32xf32>
    %204 = tpu.concatenate %203, %203 in 1 : vector<16x32xf32>, vector<16x32xf32> -> vector<16x64xf32>
    %205 = arith.mulf %204, %85 : vector<16x64xf32>
    %206 = vector.extract_strided_slice %203 {offsets = [0, 0], sizes = [8, 32], strides = [1, 1]} : vector<16x32xf32> to vector<8x32xf32>
    %207 = vector.extract_strided_slice %203 {offsets = [8, 0], sizes = [8, 32], strides = [1, 1]} : vector<16x32xf32> to vector<8x32xf32>
    %208 = vector.extract_strided_slice %92 {offsets = [24, 0], sizes = [8, 96], strides = [1, 1]} : vector<64x96xf32> to vector<8x96xf32>
    %209 = vector.extract_strided_slice %93 {offsets = [32, 0], sizes = [8, 96], strides = [1, 1]} : vector<64x96xf32> to vector<8x96xf32>
    %210 = tpu.concatenate %208, %209 in 0 : vector<8x96xf32>, vector<8x96xf32> -> vector<16x96xf32>
    %211 = arith.truncf %205 : vector<16x64xf32> to vector<16x64xbf16>
    %c0_62 = arith.constant 0 : index
    %c0_63 = arith.constant 0 : index
    %212 = vector.load %arg10[%c0_62, %c0_63] : memref<64x96xbf16, #tpu.memory_space<vmem>>, vector<64x96xbf16>
    %cst_64 = arith.constant dense<0.000000e+00> : vector<16x96xf32>
    %213 = tpu.matmul %211, %212, %cst_64 {dimension_numbers = #tpu.dot_dimension_numbers<[1], [0], [0], [1], [0, 0, 1, 1], [], []>} : vector<16x64xbf16>, vector<64x96xbf16>, vector<16x96xf32> -> vector<16x96xf32>
    %214 = arith.addf %213, %94 : vector<16x96xf32>
    %215 = vector.extract_strided_slice %210 {offsets = [0, 0], sizes = [16, 32], strides = [1, 1]} : vector<16x96xf32> to vector<16x32xf32>
    %216 = vector.extract_strided_slice %214 {offsets = [0, 0], sizes = [16, 32], strides = [1, 1]} : vector<16x96xf32> to vector<16x32xf32>
    %217 = arith.addf %215, %216 : vector<16x32xf32>
    %218 = arith.negf %217 : vector<16x32xf32>
    %219 = math.exp %218 : vector<16x32xf32>
    %cst_65 = arith.constant 1.000000e+00 : f32
    %220 = vector.broadcast %cst_65 : f32 to vector<16x32xf32>
    %221 = arith.addf %220, %219 : vector<16x32xf32>
    %222 = arith.divf %220, %221 : vector<16x32xf32>
    %223 = vector.extract_strided_slice %210 {offsets = [0, 32], sizes = [16, 32], strides = [1, 1]} : vector<16x96xf32> to vector<16x32xf32>
    %224 = vector.extract_strided_slice %214 {offsets = [0, 32], sizes = [16, 32], strides = [1, 1]} : vector<16x96xf32> to vector<16x32xf32>
    %225 = arith.addf %223, %224 : vector<16x32xf32>
    %226 = arith.negf %225 : vector<16x32xf32>
    %227 = math.exp %226 : vector<16x32xf32>
    %cst_66 = arith.constant 1.000000e+00 : f32
    %228 = vector.broadcast %cst_66 : f32 to vector<16x32xf32>
    %229 = arith.addf %228, %227 : vector<16x32xf32>
    %230 = arith.divf %228, %229 : vector<16x32xf32>
    %231 = vector.extract_strided_slice %210 {offsets = [0, 64], sizes = [16, 32], strides = [1, 1]} : vector<16x96xf32> to vector<16x32xf32>
    %232 = vector.extract_strided_slice %214 {offsets = [0, 64], sizes = [16, 32], strides = [1, 1]} : vector<16x96xf32> to vector<16x32xf32>
    %233 = arith.mulf %222, %232 : vector<16x32xf32>
    %234 = arith.addf %231, %233 : vector<16x32xf32>
    %235 = math.tanh %234 : vector<16x32xf32>
    %cst_67 = arith.constant 1.000000e+00 : f32
    %236 = vector.broadcast %cst_67 : f32 to vector<16x32xf32>
    %237 = arith.subf %236, %230 : vector<16x32xf32>
    %238 = arith.mulf %237, %235 : vector<16x32xf32>
    %239 = arith.mulf %230, %203 : vector<16x32xf32>
    %240 = arith.addf %238, %239 : vector<16x32xf32>
    %241 = tpu.concatenate %240, %240 in 1 : vector<16x32xf32>, vector<16x32xf32> -> vector<16x64xf32>
    %242 = arith.mulf %241, %85 : vector<16x64xf32>
    %243 = vector.extract_strided_slice %240 {offsets = [0, 0], sizes = [8, 32], strides = [1, 1]} : vector<16x32xf32> to vector<8x32xf32>
    %244 = vector.extract_strided_slice %240 {offsets = [8, 0], sizes = [8, 32], strides = [1, 1]} : vector<16x32xf32> to vector<8x32xf32>
    %245 = vector.extract_strided_slice %92 {offsets = [32, 0], sizes = [8, 96], strides = [1, 1]} : vector<64x96xf32> to vector<8x96xf32>
    %246 = vector.extract_strided_slice %93 {offsets = [24, 0], sizes = [8, 96], strides = [1, 1]} : vector<64x96xf32> to vector<8x96xf32>
    %247 = tpu.concatenate %245, %246 in 0 : vector<8x96xf32>, vector<8x96xf32> -> vector<16x96xf32>
    %248 = arith.truncf %242 : vector<16x64xf32> to vector<16x64xbf16>
    %c0_68 = arith.constant 0 : index
    %c0_69 = arith.constant 0 : index
    %249 = vector.load %arg10[%c0_68, %c0_69] : memref<64x96xbf16, #tpu.memory_space<vmem>>, vector<64x96xbf16>
    %cst_70 = arith.constant dense<0.000000e+00> : vector<16x96xf32>
    %250 = tpu.matmul %248, %249, %cst_70 {dimension_numbers = #tpu.dot_dimension_numbers<[1], [0], [0], [1], [0, 0, 1, 1], [], []>} : vector<16x64xbf16>, vector<64x96xbf16>, vector<16x96xf32> -> vector<16x96xf32>
    %251 = arith.addf %250, %94 : vector<16x96xf32>
    %252 = vector.extract_strided_slice %247 {offsets = [0, 0], sizes = [16, 32], strides = [1, 1]} : vector<16x96xf32> to vector<16x32xf32>
    %253 = vector.extract_strided_slice %251 {offsets = [0, 0], sizes = [16, 32], strides = [1, 1]} : vector<16x96xf32> to vector<16x32xf32>
    %254 = arith.addf %252, %253 : vector<16x32xf32>
    %255 = arith.negf %254 : vector<16x32xf32>
    %256 = math.exp %255 : vector<16x32xf32>
    %cst_71 = arith.constant 1.000000e+00 : f32
    %257 = vector.broadcast %cst_71 : f32 to vector<16x32xf32>
    %258 = arith.addf %257, %256 : vector<16x32xf32>
    %259 = arith.divf %257, %258 : vector<16x32xf32>
    %260 = vector.extract_strided_slice %247 {offsets = [0, 32], sizes = [16, 32], strides = [1, 1]} : vector<16x96xf32> to vector<16x32xf32>
    %261 = vector.extract_strided_slice %251 {offsets = [0, 32], sizes = [16, 32], strides = [1, 1]} : vector<16x96xf32> to vector<16x32xf32>
    %262 = arith.addf %260, %261 : vector<16x32xf32>
    %263 = arith.negf %262 : vector<16x32xf32>
    %264 = math.exp %263 : vector<16x32xf32>
    %cst_72 = arith.constant 1.000000e+00 : f32
    %265 = vector.broadcast %cst_72 : f32 to vector<16x32xf32>
    %266 = arith.addf %265, %264 : vector<16x32xf32>
    %267 = arith.divf %265, %266 : vector<16x32xf32>
    %268 = vector.extract_strided_slice %247 {offsets = [0, 64], sizes = [16, 32], strides = [1, 1]} : vector<16x96xf32> to vector<16x32xf32>
    %269 = vector.extract_strided_slice %251 {offsets = [0, 64], sizes = [16, 32], strides = [1, 1]} : vector<16x96xf32> to vector<16x32xf32>
    %270 = arith.mulf %259, %269 : vector<16x32xf32>
    %271 = arith.addf %268, %270 : vector<16x32xf32>
    %272 = math.tanh %271 : vector<16x32xf32>
    %cst_73 = arith.constant 1.000000e+00 : f32
    %273 = vector.broadcast %cst_73 : f32 to vector<16x32xf32>
    %274 = arith.subf %273, %267 : vector<16x32xf32>
    %275 = arith.mulf %274, %272 : vector<16x32xf32>
    %276 = arith.mulf %267, %240 : vector<16x32xf32>
    %277 = arith.addf %275, %276 : vector<16x32xf32>
    %278 = tpu.concatenate %277, %277 in 1 : vector<16x32xf32>, vector<16x32xf32> -> vector<16x64xf32>
    %279 = arith.mulf %278, %85 : vector<16x64xf32>
    %280 = vector.extract_strided_slice %277 {offsets = [0, 0], sizes = [8, 32], strides = [1, 1]} : vector<16x32xf32> to vector<8x32xf32>
    %281 = vector.extract_strided_slice %277 {offsets = [8, 0], sizes = [8, 32], strides = [1, 1]} : vector<16x32xf32> to vector<8x32xf32>
    %282 = vector.extract_strided_slice %92 {offsets = [40, 0], sizes = [8, 96], strides = [1, 1]} : vector<64x96xf32> to vector<8x96xf32>
    %283 = vector.extract_strided_slice %93 {offsets = [16, 0], sizes = [8, 96], strides = [1, 1]} : vector<64x96xf32> to vector<8x96xf32>
    %284 = tpu.concatenate %282, %283 in 0 : vector<8x96xf32>, vector<8x96xf32> -> vector<16x96xf32>
    %285 = arith.truncf %279 : vector<16x64xf32> to vector<16x64xbf16>
    %c0_74 = arith.constant 0 : index
    %c0_75 = arith.constant 0 : index
    %286 = vector.load %arg10[%c0_74, %c0_75] : memref<64x96xbf16, #tpu.memory_space<vmem>>, vector<64x96xbf16>
    %cst_76 = arith.constant dense<0.000000e+00> : vector<16x96xf32>
    %287 = tpu.matmul %285, %286, %cst_76 {dimension_numbers = #tpu.dot_dimension_numbers<[1], [0], [0], [1], [0, 0, 1, 1], [], []>} : vector<16x64xbf16>, vector<64x96xbf16>, vector<16x96xf32> -> vector<16x96xf32>
    %288 = arith.addf %287, %94 : vector<16x96xf32>
    %289 = vector.extract_strided_slice %284 {offsets = [0, 0], sizes = [16, 32], strides = [1, 1]} : vector<16x96xf32> to vector<16x32xf32>
    %290 = vector.extract_strided_slice %288 {offsets = [0, 0], sizes = [16, 32], strides = [1, 1]} : vector<16x96xf32> to vector<16x32xf32>
    %291 = arith.addf %289, %290 : vector<16x32xf32>
    %292 = arith.negf %291 : vector<16x32xf32>
    %293 = math.exp %292 : vector<16x32xf32>
    %cst_77 = arith.constant 1.000000e+00 : f32
    %294 = vector.broadcast %cst_77 : f32 to vector<16x32xf32>
    %295 = arith.addf %294, %293 : vector<16x32xf32>
    %296 = arith.divf %294, %295 : vector<16x32xf32>
    %297 = vector.extract_strided_slice %284 {offsets = [0, 32], sizes = [16, 32], strides = [1, 1]} : vector<16x96xf32> to vector<16x32xf32>
    %298 = vector.extract_strided_slice %288 {offsets = [0, 32], sizes = [16, 32], strides = [1, 1]} : vector<16x96xf32> to vector<16x32xf32>
    %299 = arith.addf %297, %298 : vector<16x32xf32>
    %300 = arith.negf %299 : vector<16x32xf32>
    %301 = math.exp %300 : vector<16x32xf32>
    %cst_78 = arith.constant 1.000000e+00 : f32
    %302 = vector.broadcast %cst_78 : f32 to vector<16x32xf32>
    %303 = arith.addf %302, %301 : vector<16x32xf32>
    %304 = arith.divf %302, %303 : vector<16x32xf32>
    %305 = vector.extract_strided_slice %284 {offsets = [0, 64], sizes = [16, 32], strides = [1, 1]} : vector<16x96xf32> to vector<16x32xf32>
    %306 = vector.extract_strided_slice %288 {offsets = [0, 64], sizes = [16, 32], strides = [1, 1]} : vector<16x96xf32> to vector<16x32xf32>
    %307 = arith.mulf %296, %306 : vector<16x32xf32>
    %308 = arith.addf %305, %307 : vector<16x32xf32>
    %309 = math.tanh %308 : vector<16x32xf32>
    %cst_79 = arith.constant 1.000000e+00 : f32
    %310 = vector.broadcast %cst_79 : f32 to vector<16x32xf32>
    %311 = arith.subf %310, %304 : vector<16x32xf32>
    %312 = arith.mulf %311, %309 : vector<16x32xf32>
    %313 = arith.mulf %304, %277 : vector<16x32xf32>
    %314 = arith.addf %312, %313 : vector<16x32xf32>
    %315 = tpu.concatenate %314, %314 in 1 : vector<16x32xf32>, vector<16x32xf32> -> vector<16x64xf32>
    %316 = arith.mulf %315, %85 : vector<16x64xf32>
    %317 = vector.extract_strided_slice %314 {offsets = [0, 0], sizes = [8, 32], strides = [1, 1]} : vector<16x32xf32> to vector<8x32xf32>
    %318 = vector.extract_strided_slice %314 {offsets = [8, 0], sizes = [8, 32], strides = [1, 1]} : vector<16x32xf32> to vector<8x32xf32>
    %319 = vector.extract_strided_slice %92 {offsets = [48, 0], sizes = [8, 96], strides = [1, 1]} : vector<64x96xf32> to vector<8x96xf32>
    %320 = vector.extract_strided_slice %93 {offsets = [8, 0], sizes = [8, 96], strides = [1, 1]} : vector<64x96xf32> to vector<8x96xf32>
    %321 = tpu.concatenate %319, %320 in 0 : vector<8x96xf32>, vector<8x96xf32> -> vector<16x96xf32>
    %322 = arith.truncf %316 : vector<16x64xf32> to vector<16x64xbf16>
    %c0_80 = arith.constant 0 : index
    %c0_81 = arith.constant 0 : index
    %323 = vector.load %arg10[%c0_80, %c0_81] : memref<64x96xbf16, #tpu.memory_space<vmem>>, vector<64x96xbf16>
    %cst_82 = arith.constant dense<0.000000e+00> : vector<16x96xf32>
    %324 = tpu.matmul %322, %323, %cst_82 {dimension_numbers = #tpu.dot_dimension_numbers<[1], [0], [0], [1], [0, 0, 1, 1], [], []>} : vector<16x64xbf16>, vector<64x96xbf16>, vector<16x96xf32> -> vector<16x96xf32>
    %325 = arith.addf %324, %94 : vector<16x96xf32>
    %326 = vector.extract_strided_slice %321 {offsets = [0, 0], sizes = [16, 32], strides = [1, 1]} : vector<16x96xf32> to vector<16x32xf32>
    %327 = vector.extract_strided_slice %325 {offsets = [0, 0], sizes = [16, 32], strides = [1, 1]} : vector<16x96xf32> to vector<16x32xf32>
    %328 = arith.addf %326, %327 : vector<16x32xf32>
    %329 = arith.negf %328 : vector<16x32xf32>
    %330 = math.exp %329 : vector<16x32xf32>
    %cst_83 = arith.constant 1.000000e+00 : f32
    %331 = vector.broadcast %cst_83 : f32 to vector<16x32xf32>
    %332 = arith.addf %331, %330 : vector<16x32xf32>
    %333 = arith.divf %331, %332 : vector<16x32xf32>
    %334 = vector.extract_strided_slice %321 {offsets = [0, 32], sizes = [16, 32], strides = [1, 1]} : vector<16x96xf32> to vector<16x32xf32>
    %335 = vector.extract_strided_slice %325 {offsets = [0, 32], sizes = [16, 32], strides = [1, 1]} : vector<16x96xf32> to vector<16x32xf32>
    %336 = arith.addf %334, %335 : vector<16x32xf32>
    %337 = arith.negf %336 : vector<16x32xf32>
    %338 = math.exp %337 : vector<16x32xf32>
    %cst_84 = arith.constant 1.000000e+00 : f32
    %339 = vector.broadcast %cst_84 : f32 to vector<16x32xf32>
    %340 = arith.addf %339, %338 : vector<16x32xf32>
    %341 = arith.divf %339, %340 : vector<16x32xf32>
    %342 = vector.extract_strided_slice %321 {offsets = [0, 64], sizes = [16, 32], strides = [1, 1]} : vector<16x96xf32> to vector<16x32xf32>
    %343 = vector.extract_strided_slice %325 {offsets = [0, 64], sizes = [16, 32], strides = [1, 1]} : vector<16x96xf32> to vector<16x32xf32>
    %344 = arith.mulf %333, %343 : vector<16x32xf32>
    %345 = arith.addf %342, %344 : vector<16x32xf32>
    %346 = math.tanh %345 : vector<16x32xf32>
    %cst_85 = arith.constant 1.000000e+00 : f32
    %347 = vector.broadcast %cst_85 : f32 to vector<16x32xf32>
    %348 = arith.subf %347, %341 : vector<16x32xf32>
    %349 = arith.mulf %348, %346 : vector<16x32xf32>
    %350 = arith.mulf %341, %314 : vector<16x32xf32>
    %351 = arith.addf %349, %350 : vector<16x32xf32>
    %352 = tpu.concatenate %351, %351 in 1 : vector<16x32xf32>, vector<16x32xf32> -> vector<16x64xf32>
    %353 = arith.mulf %352, %85 : vector<16x64xf32>
    %354 = vector.extract_strided_slice %351 {offsets = [0, 0], sizes = [8, 32], strides = [1, 1]} : vector<16x32xf32> to vector<8x32xf32>
    %355 = vector.extract_strided_slice %351 {offsets = [8, 0], sizes = [8, 32], strides = [1, 1]} : vector<16x32xf32> to vector<8x32xf32>
    %356 = vector.extract_strided_slice %92 {offsets = [56, 0], sizes = [8, 96], strides = [1, 1]} : vector<64x96xf32> to vector<8x96xf32>
    %357 = vector.extract_strided_slice %93 {offsets = [0, 0], sizes = [8, 96], strides = [1, 1]} : vector<64x96xf32> to vector<8x96xf32>
    %358 = tpu.concatenate %356, %357 in 0 : vector<8x96xf32>, vector<8x96xf32> -> vector<16x96xf32>
    %359 = arith.truncf %353 : vector<16x64xf32> to vector<16x64xbf16>
    %c0_86 = arith.constant 0 : index
    %c0_87 = arith.constant 0 : index
    %360 = vector.load %arg10[%c0_86, %c0_87] : memref<64x96xbf16, #tpu.memory_space<vmem>>, vector<64x96xbf16>
    %cst_88 = arith.constant dense<0.000000e+00> : vector<16x96xf32>
    %361 = tpu.matmul %359, %360, %cst_88 {dimension_numbers = #tpu.dot_dimension_numbers<[1], [0], [0], [1], [0, 0, 1, 1], [], []>} : vector<16x64xbf16>, vector<64x96xbf16>, vector<16x96xf32> -> vector<16x96xf32>
    %362 = arith.addf %361, %94 : vector<16x96xf32>
    %363 = vector.extract_strided_slice %358 {offsets = [0, 0], sizes = [16, 32], strides = [1, 1]} : vector<16x96xf32> to vector<16x32xf32>
    %364 = vector.extract_strided_slice %362 {offsets = [0, 0], sizes = [16, 32], strides = [1, 1]} : vector<16x96xf32> to vector<16x32xf32>
    %365 = arith.addf %363, %364 : vector<16x32xf32>
    %366 = arith.negf %365 : vector<16x32xf32>
    %367 = math.exp %366 : vector<16x32xf32>
    %cst_89 = arith.constant 1.000000e+00 : f32
    %368 = vector.broadcast %cst_89 : f32 to vector<16x32xf32>
    %369 = arith.addf %368, %367 : vector<16x32xf32>
    %370 = arith.divf %368, %369 : vector<16x32xf32>
    %371 = vector.extract_strided_slice %358 {offsets = [0, 32], sizes = [16, 32], strides = [1, 1]} : vector<16x96xf32> to vector<16x32xf32>
    %372 = vector.extract_strided_slice %362 {offsets = [0, 32], sizes = [16, 32], strides = [1, 1]} : vector<16x96xf32> to vector<16x32xf32>
    %373 = arith.addf %371, %372 : vector<16x32xf32>
    %374 = arith.negf %373 : vector<16x32xf32>
    %375 = math.exp %374 : vector<16x32xf32>
    %cst_90 = arith.constant 1.000000e+00 : f32
    %376 = vector.broadcast %cst_90 : f32 to vector<16x32xf32>
    %377 = arith.addf %376, %375 : vector<16x32xf32>
    %378 = arith.divf %376, %377 : vector<16x32xf32>
    %379 = vector.extract_strided_slice %358 {offsets = [0, 64], sizes = [16, 32], strides = [1, 1]} : vector<16x96xf32> to vector<16x32xf32>
    %380 = vector.extract_strided_slice %362 {offsets = [0, 64], sizes = [16, 32], strides = [1, 1]} : vector<16x96xf32> to vector<16x32xf32>
    %381 = arith.mulf %370, %380 : vector<16x32xf32>
    %382 = arith.addf %379, %381 : vector<16x32xf32>
    %383 = math.tanh %382 : vector<16x32xf32>
    %cst_91 = arith.constant 1.000000e+00 : f32
    %384 = vector.broadcast %cst_91 : f32 to vector<16x32xf32>
    %385 = arith.subf %384, %378 : vector<16x32xf32>
    %386 = arith.mulf %385, %383 : vector<16x32xf32>
    %387 = arith.mulf %378, %351 : vector<16x32xf32>
    %388 = arith.addf %386, %387 : vector<16x32xf32>
    %389 = vector.extract_strided_slice %388 {offsets = [0, 0], sizes = [8, 32], strides = [1, 1]} : vector<16x32xf32> to vector<8x32xf32>
    %390 = vector.extract_strided_slice %388 {offsets = [8, 0], sizes = [8, 32], strides = [1, 1]} : vector<16x32xf32> to vector<8x32xf32>
    %391 = tpu.concatenate %132, %390 in 1 : vector<8x32xf32>, vector<8x32xf32> -> vector<8x64xf32>
    %392 = tpu.concatenate %169, %355 in 1 : vector<8x32xf32>, vector<8x32xf32> -> vector<8x64xf32>
    %393 = tpu.concatenate %206, %318 in 1 : vector<8x32xf32>, vector<8x32xf32> -> vector<8x64xf32>
    %394 = tpu.concatenate %243, %281 in 1 : vector<8x32xf32>, vector<8x32xf32> -> vector<8x64xf32>
    %395 = tpu.concatenate %280, %244 in 1 : vector<8x32xf32>, vector<8x32xf32> -> vector<8x64xf32>
    %396 = tpu.concatenate %317, %207 in 1 : vector<8x32xf32>, vector<8x32xf32> -> vector<8x64xf32>
    %397 = tpu.concatenate %354, %170 in 1 : vector<8x32xf32>, vector<8x32xf32> -> vector<8x64xf32>
    %398 = tpu.concatenate %389, %133 in 1 : vector<8x32xf32>, vector<8x32xf32> -> vector<8x64xf32>
    %399 = tpu.concatenate %391, %392, %393, %394, %395, %396, %397, %398 in 0 : vector<8x64xf32>, vector<8x64xf32>, vector<8x64xf32>, vector<8x64xf32>, vector<8x64xf32>, vector<8x64xf32>, vector<8x64xf32>, vector<8x64xf32> -> vector<64x64xf32>
    %400 = arith.truncf %399 : vector<64x64xf32> to vector<64x64xbf16>
    %c0_92 = arith.constant 0 : index
    %c0_93 = arith.constant 0 : index
    %401 = vector.load %arg13[%c0_92, %c0_93] : memref<64x192xbf16, #tpu.memory_space<vmem>>, vector<64x192xbf16>
    %cst_94 = arith.constant dense<0.000000e+00> : vector<64x192xf32>
    %402 = tpu.matmul %400, %401, %cst_94 {dimension_numbers = #tpu.dot_dimension_numbers<[1], [0], [0], [1], [0, 0, 1, 1], [], []>} : vector<64x64xbf16>, vector<64x192xbf16>, vector<64x192xf32> -> vector<64x192xf32>
    %c0_95 = arith.constant 0 : index
    %c0_96 = arith.constant 0 : index
    %403 = vector.load %arg15[%c0_95, %c0_96] : memref<1x192xf32, #tpu.memory_space<vmem>>, vector<1x192xf32>
    %404 = vector.broadcast %403 : vector<1x192xf32> to vector<64x192xf32>
    %405 = arith.addf %402, %404 : vector<64x192xf32>
    %406 = vector.extract_strided_slice %405 {offsets = [0, 0], sizes = [64, 96], strides = [1, 1]} : vector<64x192xf32> to vector<64x96xf32>
    %407 = vector.extract_strided_slice %405 {offsets = [0, 96], sizes = [64, 96], strides = [1, 1]} : vector<64x192xf32> to vector<64x96xf32>
    %c0_97 = arith.constant 0 : index
    %c0_98 = arith.constant 0 : index
    %408 = vector.load %arg16[%c0_97, %c0_98] : memref<16x96xf32, #tpu.memory_space<vmem>>, vector<16x96xf32>
    %cst_99 = arith.constant 0.000000e+00 : f32
    %409 = vector.broadcast %cst_99 : f32 to vector<16x32xf32>
    %cst_100 = arith.constant 0.000000e+00 : f32
    %410 = vector.broadcast %cst_100 : f32 to vector<16x64xf32>
    %411 = vector.extract_strided_slice %406 {offsets = [0, 0], sizes = [8, 96], strides = [1, 1]} : vector<64x96xf32> to vector<8x96xf32>
    %412 = vector.extract_strided_slice %407 {offsets = [56, 0], sizes = [8, 96], strides = [1, 1]} : vector<64x96xf32> to vector<8x96xf32>
    %413 = tpu.concatenate %411, %412 in 0 : vector<8x96xf32>, vector<8x96xf32> -> vector<16x96xf32>
    %414 = arith.truncf %410 : vector<16x64xf32> to vector<16x64xbf16>
    %c0_101 = arith.constant 0 : index
    %c0_102 = arith.constant 0 : index
    %415 = vector.load %arg14[%c0_101, %c0_102] : memref<64x96xbf16, #tpu.memory_space<vmem>>, vector<64x96xbf16>
    %cst_103 = arith.constant dense<0.000000e+00> : vector<16x96xf32>
    %416 = tpu.matmul %414, %415, %cst_103 {dimension_numbers = #tpu.dot_dimension_numbers<[1], [0], [0], [1], [0, 0, 1, 1], [], []>} : vector<16x64xbf16>, vector<64x96xbf16>, vector<16x96xf32> -> vector<16x96xf32>
    %417 = arith.addf %416, %408 : vector<16x96xf32>
    %418 = vector.extract_strided_slice %413 {offsets = [0, 0], sizes = [16, 32], strides = [1, 1]} : vector<16x96xf32> to vector<16x32xf32>
    %419 = vector.extract_strided_slice %417 {offsets = [0, 0], sizes = [16, 32], strides = [1, 1]} : vector<16x96xf32> to vector<16x32xf32>
    %420 = arith.addf %418, %419 : vector<16x32xf32>
    %421 = arith.negf %420 : vector<16x32xf32>
    %422 = math.exp %421 : vector<16x32xf32>
    %cst_104 = arith.constant 1.000000e+00 : f32
    %423 = vector.broadcast %cst_104 : f32 to vector<16x32xf32>
    %424 = arith.addf %423, %422 : vector<16x32xf32>
    %425 = arith.divf %423, %424 : vector<16x32xf32>
    %426 = vector.extract_strided_slice %413 {offsets = [0, 32], sizes = [16, 32], strides = [1, 1]} : vector<16x96xf32> to vector<16x32xf32>
    %427 = vector.extract_strided_slice %417 {offsets = [0, 32], sizes = [16, 32], strides = [1, 1]} : vector<16x96xf32> to vector<16x32xf32>
    %428 = arith.addf %426, %427 : vector<16x32xf32>
    %429 = arith.negf %428 : vector<16x32xf32>
    %430 = math.exp %429 : vector<16x32xf32>
    %cst_105 = arith.constant 1.000000e+00 : f32
    %431 = vector.broadcast %cst_105 : f32 to vector<16x32xf32>
    %432 = arith.addf %431, %430 : vector<16x32xf32>
    %433 = arith.divf %431, %432 : vector<16x32xf32>
    %434 = vector.extract_strided_slice %413 {offsets = [0, 64], sizes = [16, 32], strides = [1, 1]} : vector<16x96xf32> to vector<16x32xf32>
    %435 = vector.extract_strided_slice %417 {offsets = [0, 64], sizes = [16, 32], strides = [1, 1]} : vector<16x96xf32> to vector<16x32xf32>
    %436 = arith.mulf %425, %435 : vector<16x32xf32>
    %437 = arith.addf %434, %436 : vector<16x32xf32>
    %438 = math.tanh %437 : vector<16x32xf32>
    %cst_106 = arith.constant 1.000000e+00 : f32
    %439 = vector.broadcast %cst_106 : f32 to vector<16x32xf32>
    %440 = arith.subf %439, %433 : vector<16x32xf32>
    %441 = arith.mulf %440, %438 : vector<16x32xf32>
    %442 = arith.mulf %433, %409 : vector<16x32xf32>
    %443 = arith.addf %441, %442 : vector<16x32xf32>
    %444 = tpu.concatenate %443, %443 in 1 : vector<16x32xf32>, vector<16x32xf32> -> vector<16x64xf32>
    %445 = arith.mulf %444, %85 : vector<16x64xf32>
    %446 = vector.extract_strided_slice %406 {offsets = [8, 0], sizes = [8, 96], strides = [1, 1]} : vector<64x96xf32> to vector<8x96xf32>
    %447 = vector.extract_strided_slice %407 {offsets = [48, 0], sizes = [8, 96], strides = [1, 1]} : vector<64x96xf32> to vector<8x96xf32>
    %448 = tpu.concatenate %446, %447 in 0 : vector<8x96xf32>, vector<8x96xf32> -> vector<16x96xf32>
    %449 = arith.truncf %445 : vector<16x64xf32> to vector<16x64xbf16>
    %c0_107 = arith.constant 0 : index
    %c0_108 = arith.constant 0 : index
    %450 = vector.load %arg14[%c0_107, %c0_108] : memref<64x96xbf16, #tpu.memory_space<vmem>>, vector<64x96xbf16>
    %cst_109 = arith.constant dense<0.000000e+00> : vector<16x96xf32>
    %451 = tpu.matmul %449, %450, %cst_109 {dimension_numbers = #tpu.dot_dimension_numbers<[1], [0], [0], [1], [0, 0, 1, 1], [], []>} : vector<16x64xbf16>, vector<64x96xbf16>, vector<16x96xf32> -> vector<16x96xf32>
    %452 = arith.addf %451, %408 : vector<16x96xf32>
    %453 = vector.extract_strided_slice %448 {offsets = [0, 0], sizes = [16, 32], strides = [1, 1]} : vector<16x96xf32> to vector<16x32xf32>
    %454 = vector.extract_strided_slice %452 {offsets = [0, 0], sizes = [16, 32], strides = [1, 1]} : vector<16x96xf32> to vector<16x32xf32>
    %455 = arith.addf %453, %454 : vector<16x32xf32>
    %456 = arith.negf %455 : vector<16x32xf32>
    %457 = math.exp %456 : vector<16x32xf32>
    %cst_110 = arith.constant 1.000000e+00 : f32
    %458 = vector.broadcast %cst_110 : f32 to vector<16x32xf32>
    %459 = arith.addf %458, %457 : vector<16x32xf32>
    %460 = arith.divf %458, %459 : vector<16x32xf32>
    %461 = vector.extract_strided_slice %448 {offsets = [0, 32], sizes = [16, 32], strides = [1, 1]} : vector<16x96xf32> to vector<16x32xf32>
    %462 = vector.extract_strided_slice %452 {offsets = [0, 32], sizes = [16, 32], strides = [1, 1]} : vector<16x96xf32> to vector<16x32xf32>
    %463 = arith.addf %461, %462 : vector<16x32xf32>
    %464 = arith.negf %463 : vector<16x32xf32>
    %465 = math.exp %464 : vector<16x32xf32>
    %cst_111 = arith.constant 1.000000e+00 : f32
    %466 = vector.broadcast %cst_111 : f32 to vector<16x32xf32>
    %467 = arith.addf %466, %465 : vector<16x32xf32>
    %468 = arith.divf %466, %467 : vector<16x32xf32>
    %469 = vector.extract_strided_slice %448 {offsets = [0, 64], sizes = [16, 32], strides = [1, 1]} : vector<16x96xf32> to vector<16x32xf32>
    %470 = vector.extract_strided_slice %452 {offsets = [0, 64], sizes = [16, 32], strides = [1, 1]} : vector<16x96xf32> to vector<16x32xf32>
    %471 = arith.mulf %460, %470 : vector<16x32xf32>
    %472 = arith.addf %469, %471 : vector<16x32xf32>
    %473 = math.tanh %472 : vector<16x32xf32>
    %cst_112 = arith.constant 1.000000e+00 : f32
    %474 = vector.broadcast %cst_112 : f32 to vector<16x32xf32>
    %475 = arith.subf %474, %468 : vector<16x32xf32>
    %476 = arith.mulf %475, %473 : vector<16x32xf32>
    %477 = arith.mulf %468, %443 : vector<16x32xf32>
    %478 = arith.addf %476, %477 : vector<16x32xf32>
    %479 = tpu.concatenate %478, %478 in 1 : vector<16x32xf32>, vector<16x32xf32> -> vector<16x64xf32>
    %480 = arith.mulf %479, %85 : vector<16x64xf32>
    %481 = vector.extract_strided_slice %406 {offsets = [16, 0], sizes = [8, 96], strides = [1, 1]} : vector<64x96xf32> to vector<8x96xf32>
    %482 = vector.extract_strided_slice %407 {offsets = [40, 0], sizes = [8, 96], strides = [1, 1]} : vector<64x96xf32> to vector<8x96xf32>
    %483 = tpu.concatenate %481, %482 in 0 : vector<8x96xf32>, vector<8x96xf32> -> vector<16x96xf32>
    %484 = arith.truncf %480 : vector<16x64xf32> to vector<16x64xbf16>
    %c0_113 = arith.constant 0 : index
    %c0_114 = arith.constant 0 : index
    %485 = vector.load %arg14[%c0_113, %c0_114] : memref<64x96xbf16, #tpu.memory_space<vmem>>, vector<64x96xbf16>
    %cst_115 = arith.constant dense<0.000000e+00> : vector<16x96xf32>
    %486 = tpu.matmul %484, %485, %cst_115 {dimension_numbers = #tpu.dot_dimension_numbers<[1], [0], [0], [1], [0, 0, 1, 1], [], []>} : vector<16x64xbf16>, vector<64x96xbf16>, vector<16x96xf32> -> vector<16x96xf32>
    %487 = arith.addf %486, %408 : vector<16x96xf32>
    %488 = vector.extract_strided_slice %483 {offsets = [0, 0], sizes = [16, 32], strides = [1, 1]} : vector<16x96xf32> to vector<16x32xf32>
    %489 = vector.extract_strided_slice %487 {offsets = [0, 0], sizes = [16, 32], strides = [1, 1]} : vector<16x96xf32> to vector<16x32xf32>
    %490 = arith.addf %488, %489 : vector<16x32xf32>
    %491 = arith.negf %490 : vector<16x32xf32>
    %492 = math.exp %491 : vector<16x32xf32>
    %cst_116 = arith.constant 1.000000e+00 : f32
    %493 = vector.broadcast %cst_116 : f32 to vector<16x32xf32>
    %494 = arith.addf %493, %492 : vector<16x32xf32>
    %495 = arith.divf %493, %494 : vector<16x32xf32>
    %496 = vector.extract_strided_slice %483 {offsets = [0, 32], sizes = [16, 32], strides = [1, 1]} : vector<16x96xf32> to vector<16x32xf32>
    %497 = vector.extract_strided_slice %487 {offsets = [0, 32], sizes = [16, 32], strides = [1, 1]} : vector<16x96xf32> to vector<16x32xf32>
    %498 = arith.addf %496, %497 : vector<16x32xf32>
    %499 = arith.negf %498 : vector<16x32xf32>
    %500 = math.exp %499 : vector<16x32xf32>
    %cst_117 = arith.constant 1.000000e+00 : f32
    %501 = vector.broadcast %cst_117 : f32 to vector<16x32xf32>
    %502 = arith.addf %501, %500 : vector<16x32xf32>
    %503 = arith.divf %501, %502 : vector<16x32xf32>
    %504 = vector.extract_strided_slice %483 {offsets = [0, 64], sizes = [16, 32], strides = [1, 1]} : vector<16x96xf32> to vector<16x32xf32>
    %505 = vector.extract_strided_slice %487 {offsets = [0, 64], sizes = [16, 32], strides = [1, 1]} : vector<16x96xf32> to vector<16x32xf32>
    %506 = arith.mulf %495, %505 : vector<16x32xf32>
    %507 = arith.addf %504, %506 : vector<16x32xf32>
    %508 = math.tanh %507 : vector<16x32xf32>
    %cst_118 = arith.constant 1.000000e+00 : f32
    %509 = vector.broadcast %cst_118 : f32 to vector<16x32xf32>
    %510 = arith.subf %509, %503 : vector<16x32xf32>
    %511 = arith.mulf %510, %508 : vector<16x32xf32>
    %512 = arith.mulf %503, %478 : vector<16x32xf32>
    %513 = arith.addf %511, %512 : vector<16x32xf32>
    %514 = tpu.concatenate %513, %513 in 1 : vector<16x32xf32>, vector<16x32xf32> -> vector<16x64xf32>
    %515 = arith.mulf %514, %85 : vector<16x64xf32>
    %516 = vector.extract_strided_slice %406 {offsets = [24, 0], sizes = [8, 96], strides = [1, 1]} : vector<64x96xf32> to vector<8x96xf32>
    %517 = vector.extract_strided_slice %407 {offsets = [32, 0], sizes = [8, 96], strides = [1, 1]} : vector<64x96xf32> to vector<8x96xf32>
    %518 = tpu.concatenate %516, %517 in 0 : vector<8x96xf32>, vector<8x96xf32> -> vector<16x96xf32>
    %519 = arith.truncf %515 : vector<16x64xf32> to vector<16x64xbf16>
    %c0_119 = arith.constant 0 : index
    %c0_120 = arith.constant 0 : index
    %520 = vector.load %arg14[%c0_119, %c0_120] : memref<64x96xbf16, #tpu.memory_space<vmem>>, vector<64x96xbf16>
    %cst_121 = arith.constant dense<0.000000e+00> : vector<16x96xf32>
    %521 = tpu.matmul %519, %520, %cst_121 {dimension_numbers = #tpu.dot_dimension_numbers<[1], [0], [0], [1], [0, 0, 1, 1], [], []>} : vector<16x64xbf16>, vector<64x96xbf16>, vector<16x96xf32> -> vector<16x96xf32>
    %522 = arith.addf %521, %408 : vector<16x96xf32>
    %523 = vector.extract_strided_slice %518 {offsets = [0, 0], sizes = [16, 32], strides = [1, 1]} : vector<16x96xf32> to vector<16x32xf32>
    %524 = vector.extract_strided_slice %522 {offsets = [0, 0], sizes = [16, 32], strides = [1, 1]} : vector<16x96xf32> to vector<16x32xf32>
    %525 = arith.addf %523, %524 : vector<16x32xf32>
    %526 = arith.negf %525 : vector<16x32xf32>
    %527 = math.exp %526 : vector<16x32xf32>
    %cst_122 = arith.constant 1.000000e+00 : f32
    %528 = vector.broadcast %cst_122 : f32 to vector<16x32xf32>
    %529 = arith.addf %528, %527 : vector<16x32xf32>
    %530 = arith.divf %528, %529 : vector<16x32xf32>
    %531 = vector.extract_strided_slice %518 {offsets = [0, 32], sizes = [16, 32], strides = [1, 1]} : vector<16x96xf32> to vector<16x32xf32>
    %532 = vector.extract_strided_slice %522 {offsets = [0, 32], sizes = [16, 32], strides = [1, 1]} : vector<16x96xf32> to vector<16x32xf32>
    %533 = arith.addf %531, %532 : vector<16x32xf32>
    %534 = arith.negf %533 : vector<16x32xf32>
    %535 = math.exp %534 : vector<16x32xf32>
    %cst_123 = arith.constant 1.000000e+00 : f32
    %536 = vector.broadcast %cst_123 : f32 to vector<16x32xf32>
    %537 = arith.addf %536, %535 : vector<16x32xf32>
    %538 = arith.divf %536, %537 : vector<16x32xf32>
    %539 = vector.extract_strided_slice %518 {offsets = [0, 64], sizes = [16, 32], strides = [1, 1]} : vector<16x96xf32> to vector<16x32xf32>
    %540 = vector.extract_strided_slice %522 {offsets = [0, 64], sizes = [16, 32], strides = [1, 1]} : vector<16x96xf32> to vector<16x32xf32>
    %541 = arith.mulf %530, %540 : vector<16x32xf32>
    %542 = arith.addf %539, %541 : vector<16x32xf32>
    %543 = math.tanh %542 : vector<16x32xf32>
    %cst_124 = arith.constant 1.000000e+00 : f32
    %544 = vector.broadcast %cst_124 : f32 to vector<16x32xf32>
    %545 = arith.subf %544, %538 : vector<16x32xf32>
    %546 = arith.mulf %545, %543 : vector<16x32xf32>
    %547 = arith.mulf %538, %513 : vector<16x32xf32>
    %548 = arith.addf %546, %547 : vector<16x32xf32>
    %549 = tpu.concatenate %548, %548 in 1 : vector<16x32xf32>, vector<16x32xf32> -> vector<16x64xf32>
    %550 = arith.mulf %549, %85 : vector<16x64xf32>
    %551 = vector.extract_strided_slice %406 {offsets = [32, 0], sizes = [8, 96], strides = [1, 1]} : vector<64x96xf32> to vector<8x96xf32>
    %552 = vector.extract_strided_slice %407 {offsets = [24, 0], sizes = [8, 96], strides = [1, 1]} : vector<64x96xf32> to vector<8x96xf32>
    %553 = tpu.concatenate %551, %552 in 0 : vector<8x96xf32>, vector<8x96xf32> -> vector<16x96xf32>
    %554 = arith.truncf %550 : vector<16x64xf32> to vector<16x64xbf16>
    %c0_125 = arith.constant 0 : index
    %c0_126 = arith.constant 0 : index
    %555 = vector.load %arg14[%c0_125, %c0_126] : memref<64x96xbf16, #tpu.memory_space<vmem>>, vector<64x96xbf16>
    %cst_127 = arith.constant dense<0.000000e+00> : vector<16x96xf32>
    %556 = tpu.matmul %554, %555, %cst_127 {dimension_numbers = #tpu.dot_dimension_numbers<[1], [0], [0], [1], [0, 0, 1, 1], [], []>} : vector<16x64xbf16>, vector<64x96xbf16>, vector<16x96xf32> -> vector<16x96xf32>
    %557 = arith.addf %556, %408 : vector<16x96xf32>
    %558 = vector.extract_strided_slice %553 {offsets = [0, 0], sizes = [16, 32], strides = [1, 1]} : vector<16x96xf32> to vector<16x32xf32>
    %559 = vector.extract_strided_slice %557 {offsets = [0, 0], sizes = [16, 32], strides = [1, 1]} : vector<16x96xf32> to vector<16x32xf32>
    %560 = arith.addf %558, %559 : vector<16x32xf32>
    %561 = arith.negf %560 : vector<16x32xf32>
    %562 = math.exp %561 : vector<16x32xf32>
    %cst_128 = arith.constant 1.000000e+00 : f32
    %563 = vector.broadcast %cst_128 : f32 to vector<16x32xf32>
    %564 = arith.addf %563, %562 : vector<16x32xf32>
    %565 = arith.divf %563, %564 : vector<16x32xf32>
    %566 = vector.extract_strided_slice %553 {offsets = [0, 32], sizes = [16, 32], strides = [1, 1]} : vector<16x96xf32> to vector<16x32xf32>
    %567 = vector.extract_strided_slice %557 {offsets = [0, 32], sizes = [16, 32], strides = [1, 1]} : vector<16x96xf32> to vector<16x32xf32>
    %568 = arith.addf %566, %567 : vector<16x32xf32>
    %569 = arith.negf %568 : vector<16x32xf32>
    %570 = math.exp %569 : vector<16x32xf32>
    %cst_129 = arith.constant 1.000000e+00 : f32
    %571 = vector.broadcast %cst_129 : f32 to vector<16x32xf32>
    %572 = arith.addf %571, %570 : vector<16x32xf32>
    %573 = arith.divf %571, %572 : vector<16x32xf32>
    %574 = vector.extract_strided_slice %553 {offsets = [0, 64], sizes = [16, 32], strides = [1, 1]} : vector<16x96xf32> to vector<16x32xf32>
    %575 = vector.extract_strided_slice %557 {offsets = [0, 64], sizes = [16, 32], strides = [1, 1]} : vector<16x96xf32> to vector<16x32xf32>
    %576 = arith.mulf %565, %575 : vector<16x32xf32>
    %577 = arith.addf %574, %576 : vector<16x32xf32>
    %578 = math.tanh %577 : vector<16x32xf32>
    %cst_130 = arith.constant 1.000000e+00 : f32
    %579 = vector.broadcast %cst_130 : f32 to vector<16x32xf32>
    %580 = arith.subf %579, %573 : vector<16x32xf32>
    %581 = arith.mulf %580, %578 : vector<16x32xf32>
    %582 = arith.mulf %573, %548 : vector<16x32xf32>
    %583 = arith.addf %581, %582 : vector<16x32xf32>
    %584 = tpu.concatenate %583, %583 in 1 : vector<16x32xf32>, vector<16x32xf32> -> vector<16x64xf32>
    %585 = arith.mulf %584, %85 : vector<16x64xf32>
    %586 = vector.extract_strided_slice %406 {offsets = [40, 0], sizes = [8, 96], strides = [1, 1]} : vector<64x96xf32> to vector<8x96xf32>
    %587 = vector.extract_strided_slice %407 {offsets = [16, 0], sizes = [8, 96], strides = [1, 1]} : vector<64x96xf32> to vector<8x96xf32>
    %588 = tpu.concatenate %586, %587 in 0 : vector<8x96xf32>, vector<8x96xf32> -> vector<16x96xf32>
    %589 = arith.truncf %585 : vector<16x64xf32> to vector<16x64xbf16>
    %c0_131 = arith.constant 0 : index
    %c0_132 = arith.constant 0 : index
    %590 = vector.load %arg14[%c0_131, %c0_132] : memref<64x96xbf16, #tpu.memory_space<vmem>>, vector<64x96xbf16>
    %cst_133 = arith.constant dense<0.000000e+00> : vector<16x96xf32>
    %591 = tpu.matmul %589, %590, %cst_133 {dimension_numbers = #tpu.dot_dimension_numbers<[1], [0], [0], [1], [0, 0, 1, 1], [], []>} : vector<16x64xbf16>, vector<64x96xbf16>, vector<16x96xf32> -> vector<16x96xf32>
    %592 = arith.addf %591, %408 : vector<16x96xf32>
    %593 = vector.extract_strided_slice %588 {offsets = [0, 0], sizes = [16, 32], strides = [1, 1]} : vector<16x96xf32> to vector<16x32xf32>
    %594 = vector.extract_strided_slice %592 {offsets = [0, 0], sizes = [16, 32], strides = [1, 1]} : vector<16x96xf32> to vector<16x32xf32>
    %595 = arith.addf %593, %594 : vector<16x32xf32>
    %596 = arith.negf %595 : vector<16x32xf32>
    %597 = math.exp %596 : vector<16x32xf32>
    %cst_134 = arith.constant 1.000000e+00 : f32
    %598 = vector.broadcast %cst_134 : f32 to vector<16x32xf32>
    %599 = arith.addf %598, %597 : vector<16x32xf32>
    %600 = arith.divf %598, %599 : vector<16x32xf32>
    %601 = vector.extract_strided_slice %588 {offsets = [0, 32], sizes = [16, 32], strides = [1, 1]} : vector<16x96xf32> to vector<16x32xf32>
    %602 = vector.extract_strided_slice %592 {offsets = [0, 32], sizes = [16, 32], strides = [1, 1]} : vector<16x96xf32> to vector<16x32xf32>
    %603 = arith.addf %601, %602 : vector<16x32xf32>
    %604 = arith.negf %603 : vector<16x32xf32>
    %605 = math.exp %604 : vector<16x32xf32>
    %cst_135 = arith.constant 1.000000e+00 : f32
    %606 = vector.broadcast %cst_135 : f32 to vector<16x32xf32>
    %607 = arith.addf %606, %605 : vector<16x32xf32>
    %608 = arith.divf %606, %607 : vector<16x32xf32>
    %609 = vector.extract_strided_slice %588 {offsets = [0, 64], sizes = [16, 32], strides = [1, 1]} : vector<16x96xf32> to vector<16x32xf32>
    %610 = vector.extract_strided_slice %592 {offsets = [0, 64], sizes = [16, 32], strides = [1, 1]} : vector<16x96xf32> to vector<16x32xf32>
    %611 = arith.mulf %600, %610 : vector<16x32xf32>
    %612 = arith.addf %609, %611 : vector<16x32xf32>
    %613 = math.tanh %612 : vector<16x32xf32>
    %cst_136 = arith.constant 1.000000e+00 : f32
    %614 = vector.broadcast %cst_136 : f32 to vector<16x32xf32>
    %615 = arith.subf %614, %608 : vector<16x32xf32>
    %616 = arith.mulf %615, %613 : vector<16x32xf32>
    %617 = arith.mulf %608, %583 : vector<16x32xf32>
    %618 = arith.addf %616, %617 : vector<16x32xf32>
    %619 = tpu.concatenate %618, %618 in 1 : vector<16x32xf32>, vector<16x32xf32> -> vector<16x64xf32>
    %620 = arith.mulf %619, %85 : vector<16x64xf32>
    %621 = vector.extract_strided_slice %406 {offsets = [48, 0], sizes = [8, 96], strides = [1, 1]} : vector<64x96xf32> to vector<8x96xf32>
    %622 = vector.extract_strided_slice %407 {offsets = [8, 0], sizes = [8, 96], strides = [1, 1]} : vector<64x96xf32> to vector<8x96xf32>
    %623 = tpu.concatenate %621, %622 in 0 : vector<8x96xf32>, vector<8x96xf32> -> vector<16x96xf32>
    %624 = arith.truncf %620 : vector<16x64xf32> to vector<16x64xbf16>
    %c0_137 = arith.constant 0 : index
    %c0_138 = arith.constant 0 : index
    %625 = vector.load %arg14[%c0_137, %c0_138] : memref<64x96xbf16, #tpu.memory_space<vmem>>, vector<64x96xbf16>
    %cst_139 = arith.constant dense<0.000000e+00> : vector<16x96xf32>
    %626 = tpu.matmul %624, %625, %cst_139 {dimension_numbers = #tpu.dot_dimension_numbers<[1], [0], [0], [1], [0, 0, 1, 1], [], []>} : vector<16x64xbf16>, vector<64x96xbf16>, vector<16x96xf32> -> vector<16x96xf32>
    %627 = arith.addf %626, %408 : vector<16x96xf32>
    %628 = vector.extract_strided_slice %623 {offsets = [0, 0], sizes = [16, 32], strides = [1, 1]} : vector<16x96xf32> to vector<16x32xf32>
    %629 = vector.extract_strided_slice %627 {offsets = [0, 0], sizes = [16, 32], strides = [1, 1]} : vector<16x96xf32> to vector<16x32xf32>
    %630 = arith.addf %628, %629 : vector<16x32xf32>
    %631 = arith.negf %630 : vector<16x32xf32>
    %632 = math.exp %631 : vector<16x32xf32>
    %cst_140 = arith.constant 1.000000e+00 : f32
    %633 = vector.broadcast %cst_140 : f32 to vector<16x32xf32>
    %634 = arith.addf %633, %632 : vector<16x32xf32>
    %635 = arith.divf %633, %634 : vector<16x32xf32>
    %636 = vector.extract_strided_slice %623 {offsets = [0, 32], sizes = [16, 32], strides = [1, 1]} : vector<16x96xf32> to vector<16x32xf32>
    %637 = vector.extract_strided_slice %627 {offsets = [0, 32], sizes = [16, 32], strides = [1, 1]} : vector<16x96xf32> to vector<16x32xf32>
    %638 = arith.addf %636, %637 : vector<16x32xf32>
    %639 = arith.negf %638 : vector<16x32xf32>
    %640 = math.exp %639 : vector<16x32xf32>
    %cst_141 = arith.constant 1.000000e+00 : f32
    %641 = vector.broadcast %cst_141 : f32 to vector<16x32xf32>
    %642 = arith.addf %641, %640 : vector<16x32xf32>
    %643 = arith.divf %641, %642 : vector<16x32xf32>
    %644 = vector.extract_strided_slice %623 {offsets = [0, 64], sizes = [16, 32], strides = [1, 1]} : vector<16x96xf32> to vector<16x32xf32>
    %645 = vector.extract_strided_slice %627 {offsets = [0, 64], sizes = [16, 32], strides = [1, 1]} : vector<16x96xf32> to vector<16x32xf32>
    %646 = arith.mulf %635, %645 : vector<16x32xf32>
    %647 = arith.addf %644, %646 : vector<16x32xf32>
    %648 = math.tanh %647 : vector<16x32xf32>
    %cst_142 = arith.constant 1.000000e+00 : f32
    %649 = vector.broadcast %cst_142 : f32 to vector<16x32xf32>
    %650 = arith.subf %649, %643 : vector<16x32xf32>
    %651 = arith.mulf %650, %648 : vector<16x32xf32>
    %652 = arith.mulf %643, %618 : vector<16x32xf32>
    %653 = arith.addf %651, %652 : vector<16x32xf32>
    %654 = tpu.concatenate %653, %653 in 1 : vector<16x32xf32>, vector<16x32xf32> -> vector<16x64xf32>
    %655 = arith.mulf %654, %85 : vector<16x64xf32>
    %656 = vector.extract_strided_slice %406 {offsets = [56, 0], sizes = [8, 96], strides = [1, 1]} : vector<64x96xf32> to vector<8x96xf32>
    %657 = vector.extract_strided_slice %407 {offsets = [0, 0], sizes = [8, 96], strides = [1, 1]} : vector<64x96xf32> to vector<8x96xf32>
    %658 = tpu.concatenate %656, %657 in 0 : vector<8x96xf32>, vector<8x96xf32> -> vector<16x96xf32>
    %659 = arith.truncf %655 : vector<16x64xf32> to vector<16x64xbf16>
    %c0_143 = arith.constant 0 : index
    %c0_144 = arith.constant 0 : index
    %660 = vector.load %arg14[%c0_143, %c0_144] : memref<64x96xbf16, #tpu.memory_space<vmem>>, vector<64x96xbf16>
    %cst_145 = arith.constant dense<0.000000e+00> : vector<16x96xf32>
    %661 = tpu.matmul %659, %660, %cst_145 {dimension_numbers = #tpu.dot_dimension_numbers<[1], [0], [0], [1], [0, 0, 1, 1], [], []>} : vector<16x64xbf16>, vector<64x96xbf16>, vector<16x96xf32> -> vector<16x96xf32>
    %662 = arith.addf %661, %408 : vector<16x96xf32>
    %663 = vector.extract_strided_slice %658 {offsets = [0, 0], sizes = [16, 32], strides = [1, 1]} : vector<16x96xf32> to vector<16x32xf32>
    %664 = vector.extract_strided_slice %662 {offsets = [0, 0], sizes = [16, 32], strides = [1, 1]} : vector<16x96xf32> to vector<16x32xf32>
    %665 = arith.addf %663, %664 : vector<16x32xf32>
    %666 = arith.negf %665 : vector<16x32xf32>
    %667 = math.exp %666 : vector<16x32xf32>
    %cst_146 = arith.constant 1.000000e+00 : f32
    %668 = vector.broadcast %cst_146 : f32 to vector<16x32xf32>
    %669 = arith.addf %668, %667 : vector<16x32xf32>
    %670 = arith.divf %668, %669 : vector<16x32xf32>
    %671 = vector.extract_strided_slice %658 {offsets = [0, 32], sizes = [16, 32], strides = [1, 1]} : vector<16x96xf32> to vector<16x32xf32>
    %672 = vector.extract_strided_slice %662 {offsets = [0, 32], sizes = [16, 32], strides = [1, 1]} : vector<16x96xf32> to vector<16x32xf32>
    %673 = arith.addf %671, %672 : vector<16x32xf32>
    %674 = arith.negf %673 : vector<16x32xf32>
    %675 = math.exp %674 : vector<16x32xf32>
    %cst_147 = arith.constant 1.000000e+00 : f32
    %676 = vector.broadcast %cst_147 : f32 to vector<16x32xf32>
    %677 = arith.addf %676, %675 : vector<16x32xf32>
    %678 = arith.divf %676, %677 : vector<16x32xf32>
    %679 = vector.extract_strided_slice %658 {offsets = [0, 64], sizes = [16, 32], strides = [1, 1]} : vector<16x96xf32> to vector<16x32xf32>
    %680 = vector.extract_strided_slice %662 {offsets = [0, 64], sizes = [16, 32], strides = [1, 1]} : vector<16x96xf32> to vector<16x32xf32>
    %681 = arith.mulf %670, %680 : vector<16x32xf32>
    %682 = arith.addf %679, %681 : vector<16x32xf32>
    %683 = math.tanh %682 : vector<16x32xf32>
    %cst_148 = arith.constant 1.000000e+00 : f32
    %684 = vector.broadcast %cst_148 : f32 to vector<16x32xf32>
    %685 = arith.subf %684, %678 : vector<16x32xf32>
    %686 = arith.mulf %685, %683 : vector<16x32xf32>
    %687 = arith.mulf %678, %653 : vector<16x32xf32>
    %688 = arith.addf %686, %687 : vector<16x32xf32>
    %689 = vector.extract_strided_slice %688 {offsets = [0, 0], sizes = [8, 32], strides = [1, 1]} : vector<16x32xf32> to vector<8x32xf32>
    %690 = vector.extract_strided_slice %688 {offsets = [8, 0], sizes = [8, 32], strides = [1, 1]} : vector<16x32xf32> to vector<8x32xf32>
    %691 = tpu.concatenate %689, %690 in 1 : vector<8x32xf32>, vector<8x32xf32> -> vector<8x64xf32>
    %692 = arith.truncf %691 : vector<8x64xf32> to vector<8x64xbf16>
    %c0_149 = arith.constant 0 : index
    %c0_150 = arith.constant 0 : index
    %693 = vector.load %arg17[%c0_149, %c0_150] : memref<64x128xbf16, #tpu.memory_space<vmem>>, vector<64x128xbf16>
    %cst_151 = arith.constant dense<0.000000e+00> : vector<8x128xf32>
    %694 = tpu.matmul %692, %693, %cst_151 {dimension_numbers = #tpu.dot_dimension_numbers<[1], [0], [0], [1], [0, 0, 1, 1], [], []>} : vector<8x64xbf16>, vector<64x128xbf16>, vector<8x128xf32> -> vector<8x128xf32>
    %c0_152 = arith.constant 0 : index
    %c0_153 = arith.constant 0 : index
    %695 = vector.load %arg18[%c0_152, %c0_153] : memref<1x128xf32, #tpu.memory_space<vmem>>, vector<1x128xf32>
    %696 = vector.broadcast %695 : vector<1x128xf32> to vector<8x128xf32>
    %697 = arith.addf %694, %696 : vector<8x128xf32>
    %c0_154 = arith.constant 0 : index
    %c0_155 = arith.constant 0 : index
    %698 = vector.load %arg19[%c0_154, %c0_155] : memref<8x128xf32, #tpu.memory_space<vmem>>, vector<8x128xf32>
    tpu.vector_store %arg19[%c0_154, %c0_155], %697 {strides = array<i32>} : memref<8x128xf32, #tpu.memory_space<vmem>>, vector<8x128xf32>,
    return
  }
}

</mosaic_0001>

<bundles_post_ra>
// kernel: review_sentiment_bert_forward.1
= control target key start
LH: loop header
LB: loop body
LE: loop exit
PB: predicated region body
PF: predicated region fallthrough
CT: control target
= control target key end

     0   :  { %vm73_vm0 = vcmask 261120   ;;  %vm3706_vm1 = vmmov 0   ;;  %s3708_s22 = smov 64   ;;  %vm3710_vm3 = vmmov 1   ;;  %vm846_vm7 = vcmask 523264   ;;  %s5034_s0 = inlined_call_operand.vmem [shape: f32[64,32], index: 0, kind: input, shape index: {}]   ;;  %s5035_s1 = inlined_call_operand.vmem [shape: bf16[32,128], index: 1, kind: input, shape index: {}]   ;;  %s5036_s5 = inlined_call_operand.vmem [shape: f32[1,32], index: 5, kind: input, shape index: {}]   ;;  %s5037_s6 = inlined_call_operand.vmem [shape: f32[1,32], index: 6, kind: input, shape index: {}]   ;;  %s5038_s3 = inlined_call_operand.vmem [shape: bf16[128,32], index: 3, kind: input, shape index: {}]   ;;  %s5039_s2 = inlined_call_operand.vmem [shape: f32[1,128], index: 2, kind: input, shape index: {}]   ;;  %s5040_s4 = inlined_call_operand.vmem [shape: f32[1,32], index: 4, kind: input, shape index: {}]   ;;  %s5041_s10 = inlined_call_operand.vmem [shape: bf16[64,96], index: 10, kind: input, shape index: {}]   ;;  %s5042_s9 = inlined_call_operand.vmem [shape: bf16[32,192], index: 9, kind: input, shape index: {}]   ;;  %s5043_s7 = inlined_call_operand.vmem [shape: f32[1,32], index: 7, kind: input, shape index: {}]   ;;  %s5044_s8 = inlined_call_operand.vmem [shape: f32[1,32], index: 8, kind: input, shape index: {}]   ;;  %s5045_s11 = inlined_call_operand.vmem [shape: f32[1,192], index: 11, kind: input, shape index: {}]   ;;  %s5046_s12 = inlined_call_operand.vmem [shape: f32[16,96], index: 12, kind: input, shape index: {}]   ;;  %s5047_s13 = inlined_call_operand.vmem [shape: bf16[64,192], index: 13, kind: input, shape index: {}]   ;;  %s5048_s14 = inlined_call_operand.vmem [shape: bf16[64,96], index: 14, kind: input, shape index: {}]   ;;  %s5049_s15 = inlined_call_operand.vmem [shape: f32[1,192], index: 15, kind: input, shape index: {}]   ;;  %s5050_s16 = inlined_call_operand.vmem [shape: f32[16,96], index: 16, kind: input, shape index: {}]   ;;  %s5051_s17 = inlined_call_operand.vmem [shape: bf16[64,128], index: 17, kind: input, shape index: {}]   ;;  %s5052_s18 = inlined_call_operand.vmem [shape: f32[1,128], index: 18, kind: input, shape index: {}]   ;;  %s5053_s19 = inlined_call_operand.vmem [shape: f32[8,128], index: 19, kind: output, shape index: {}]  }
   0x1   :  { %5056 = sst [smem:[#allocation2_spill]] %s5034_s0 }
   0x2   :  { %5057 = sst [smem:[#allocation3_spill]] %s5035_s1  ;;  %s5060_s20 = sld [smem:[#allocation2_spill]] }
   0x3   :  { %5058 = sst [smem:[#allocation4_spill]] %s5036_s5  ;;  %s5061_s1 = sld [smem:[#allocation3_spill]] }
   0x4   :  { %5059 = sst [smem:[#allocation5_spill]] %s5037_s6  ;;  %s5062_s25 = sld [smem:[#allocation4_spill]] }
   0x5   :  { %s5063_s27 = sld [smem:[#allocation5_spill]] }
   0x8   :  { %v3814_v0 = vld [vmem:[%s5060_s20] sm:$0xff]  ;;  %v3819_v1 = vld [vmem:[%s5060_s20 + $0x10] sm:$0xff]  ;;  %v3824_v2 = vld [vmem:[%s5060_s20 + $0x8] sm:$0xff] }
   0x9   :  { %v74_v3 = vsel %vm73_vm0, %v3814_v0, 0.0  ;;  %v80_v4 = vsel %vm73_vm0, %v3819_v1, 0.0  ;;  %v3833_v5 = vld [vmem:[%s5060_s20 + $0x18] sm:$0xff]  ;;  %v77_v6 = vsel %vm73_vm0, %v3824_v2, 0.0  ;;  %v3842_v8 = vld [vmem:[%s5060_s20 + $0x20] sm:$0xff]  ;;  %v3847_v9 = vld [vmem:[%s5060_s20 + $0x28] sm:$0xff] }
   0xa   :  { %75 = vadd.xlane.f32.xlu0 %v74_v3  ;;  %81 = vadd.xlane.f32.xlu1 %v80_v4  ;;  %v83_v7 = vsel %vm73_vm0, %v3833_v5, 0.0  ;;  %v86_v10 = vsel %vm73_vm0, %v3842_v8, 0.0  ;;  %v89_v11 = vsel %vm73_vm0, %v3847_v9, 0.0  ;;  %v3856_v12 = vld [vmem:[%s5060_s20 + $0x30] sm:$0xff]  ;;  %v3861_v13 = vld [vmem:[%s5060_s20 + $0x38] sm:$0xff]  ;;  %v3420_v56 = vld [vmem:[%s5061_s1] sm:$0xff]  }
   0xb   :  { %v92_v14 = vsel %vm73_vm0, %v3856_v12, 0.0  ;;  %v95_v15 = vsel %vm73_vm0, %v3861_v13, 0.0  ;;  %v3421_v57 = vld [vmem:[%s5061_s1 + $0x8] sm:$0xff]   ;;  %3173 = vmatprep.subr.bf16.mxu0 %v3420_v56  ;;  %s3707_s20 = smov 32  }
   0xc   :  { %3174 = vmatpush3.bf16.msra.mxu0 %v3420_v56 }
   0xd   :  { %3175 = vmatprep.subr.bf16.mxu0 %v3421_v57 }
   0xe   :  { %78 = vadd.xlane.f32.xlu0 %v77_v6  ;;  %84 = vadd.xlane.f32.xlu1 %v83_v7 }
  0x10   :  { %3176 = vmatpush3.bf16.msra.mxu0 %v3421_v57 }
  0x12   :  { %87 = vadd.xlane.f32.xlu0 %v86_v10  ;;  %90 = vadd.xlane.f32.xlu1 %v89_v11 }
  0x16   :  { %93 = vadd.xlane.f32.xlu0 %v92_v14  ;;  %96 = vadd.xlane.f32.xlu1 %v95_v15 }
  0x97   :  { %v76_v16 = vpop.xlane.xlu0 %75  ;;  %v82_v17 = vpop.xlane.xlu1 %81 }
  0x98   :  { %v99_v18 = vmul.f32 0.03125, %v76_v16  ;;  %v101_v19 = vmul.f32 0.03125, %v82_v17 }
  0x9a   :  { %v3868_v20 = vsub.f32 %v3814_v0, %v99_v18  ;;  %v3871_v21 = vsub.f32 %v3819_v1, %v101_v19 }
  0x9b   :  { %v79_v22 = vpop.xlane.xlu0 %78  ;;  %v85_v23 = vpop.xlane.xlu1 %84 }
  0x9c   :  { %v100_v24 = vmul.f32 0.03125, %v79_v22  ;;  %v102_v25 = vmul.f32 0.03125, %v85_v23  ;;  %v115_v26 = vmul.f32 %v3868_v20, %v3868_v20  ;;  %v117_v27 = vmul.f32 %v3871_v21, %v3871_v21 }
  0x9e   :  { %v3878_v28 = vsub.f32 %v3824_v2, %v100_v24  ;;  %v3881_v29 = vsub.f32 %v3833_v5, %v102_v25  ;;  %v123_v30 = vsel %vm73_vm0, %v115_v26, 0.0  ;;  %v129_v33 = vsel %vm73_vm0, %v117_v27, 0.0 }
  0x9f   :  { %124 = vadd.xlane.f32.xlu0 %v123_v30  ;;  %v88_v31 = vpop.xlane.xlu0 %87  ;;  %v91_v32 = vpop.xlane.xlu1 %90 }
  0xa0   :  { %v103_v34 = vmul.f32 0.03125, %v88_v31  ;;  %v104_v35 = vmul.f32 0.03125, %v91_v32  ;;  %v116_v36 = vmul.f32 %v3878_v28, %v3878_v28  ;;  %v118_v37 = vmul.f32 %v3881_v29, %v3881_v29  ;;  %v2970_v31 = vld [vmem:[%s5062_s25] ss:$0 sm:$0xff] }
  0xa2   :  { %v3890_v38 = vsub.f32 %v3842_v8, %v103_v34  ;;  %v3893_v39 = vsub.f32 %v3847_v9, %v104_v35  ;;  %v126_v40 = vsel %vm73_vm0, %v116_v36, 0.0  ;;  %v132_v43 = vsel %vm73_vm0, %v118_v37, 0.0  ;;  %v2971_v37 = vld [vmem:[%s5063_s27] ss:$0 sm:$0xff] }
  0xa3   :  { %130 = vadd.xlane.f32.xlu0 %v129_v33  ;;  %127 = vadd.xlane.f32.xlu1 %v126_v40  ;;  %v94_v41 = vpop.xlane.xlu0 %93  ;;  %v97_v42 = vpop.xlane.xlu1 %96 }
  0xa4   :  { %v105_v44 = vmul.f32 0.03125, %v94_v41  ;;  %v106_v45 = vmul.f32 0.03125, %v97_v42  ;;  %v119_v46 = vmul.f32 %v3890_v38, %v3890_v38  ;;  %v120_v47 = vmul.f32 %v3893_v39, %v3893_v39 }
  0xa6   :  { %v3902_v48 = vsub.f32 %v3856_v12, %v105_v44  ;;  %v3905_v49 = vsub.f32 %v3861_v13, %v106_v45  ;;  %v135_v50 = vsel %vm73_vm0, %v119_v46, 0.0  ;;  %v138_v51 = vsel %vm73_vm0, %v120_v47, 0.0 }
  0xa7   :  { %133 = vadd.xlane.f32.xlu1 %v132_v43  ;;  %136 = vadd.xlane.f32.xlu0 %v135_v50 }
  0xa8   :  { %v121_v52 = vmul.f32 %v3902_v48, %v3902_v48  ;;  %v122_v53 = vmul.f32 %v3905_v49, %v3905_v49 }
  0xaa   :  { %v141_v54 = vsel %vm73_vm0, %v121_v52, 0.0  ;;  %v144_v55 = vsel %vm73_vm0, %v122_v53, 0.0 }
  0xab   :  { %139 = vadd.xlane.f32.xlu1 %v138_v51  ;;  %142 = vadd.xlane.f32.xlu0 %v141_v54 }
  0xaf   :  { %145 = vadd.xlane.f32.xlu1 %v144_v55 }
 0x12c   :  { %v125_v58 = vpop.xlane.xlu0 %124 }
 0x12d   :  { %v147_v59 = vmul.f32 0.03125, %v125_v58 }
 0x12f   :  { %v155_v60 = vadd.f32 1e-12, %v147_v59 }
 0x130   :  { %v128_v61 = vpop.xlane.xlu1 %127  ;;  %v131_v62 = vpop.xlane.xlu0 %130 }
 0x131   :  { %3460 = vrsqrt.f32 %v155_v60  ;;  %v148_v63 = vmul.f32 0.03125, %v128_v61  ;;  %v149_v3 = vmul.f32 0.03125, %v131_v62 }
 0x133   :  { %v156_v4 = vadd.f32 1e-12, %v148_v63  ;;  %v157_v6 = vadd.f32 1e-12, %v149_v3 }
 0x134   :  { %v134_v7 = vpop.xlane.xlu1 %133  ;;  %v137_v10 = vpop.xlane.xlu0 %136 }
 0x135   :  { %3462 = vrsqrt.f32 %v156_v4  ;;  %v150_v11 = vmul.f32 0.03125, %v134_v7  ;;  %v151_v14 = vmul.f32 0.03125, %v137_v10  ;;  %v3425_v7 = vld [vmem:[%s5038_s3 + $0x18] sm:$0xff]   ;;  %v3426_v10 = vld [vmem:[%s5038_s3 + $0x20] sm:$0xff]  }
 0x136   :  { %3464 = vrsqrt.f32 %v157_v6  ;;  %v3424_v6 = vld [vmem:[%s5038_s3 + $0x10] sm:$0xff]  }
 0x137   :  { %v158_v15 = vadd.f32 1e-12, %v150_v11  ;;  %v159_v16 = vadd.f32 1e-12, %v151_v14  ;;  %v3427_v11 = vld [vmem:[%s5038_s3 + $0x28] sm:$0xff]   ;;  %v3428_v14 = vld [vmem:[%s5038_s3 + $0x30] sm:$0xff]  }
 0x138   :  { %v140_v17 = vpop.xlane.xlu1 %139  ;;  %v143_v18 = vpop.xlane.xlu0 %142 }
 0x139   :  { %3466 = vrsqrt.f32 %v158_v15  ;;  %v152_v19 = vmul.f32 0.03125, %v140_v17  ;;  %v153_v22 = vmul.f32 0.03125, %v143_v18  ;;  %v3429_v15 = vld [vmem:[%s5038_s3 + $0x38] sm:$0xff]  }
 0x13a   :  { %3468 = vrsqrt.f32 %v159_v16  ;;  %v2972_v16 = vld [vmem:[%s5039_s2] ss:$0 sm:$0xff] }
 0x13b   :  { %v3461_v23 = vpop.eup %3460  ;;  %v160_v24 = vadd.f32 1e-12, %v152_v19  ;;  %v161_v25 = vadd.f32 1e-12, %v153_v22 }
 0x13c   :  { %v146_v26 = vpop.xlane.xlu1 %145  ;;  %v171_v27 = vmul.f32 %v3461_v23, %v3868_v20 }
 0x13d   :  { %3470 = vrsqrt.f32 %v160_v24  ;;  %v154_v30 = vmul.f32 0.03125, %v146_v26 }
 0x13e   :  { %3472 = vrsqrt.f32 %v161_v25  ;;  %v185_v36 = vmul.f32 %v2970_v31, %v171_v27 }
 0x13f   :  { %v3463_v32 = vpop.eup %3462  ;;  %v162_v33 = vadd.f32 1e-12, %v154_v30 }
 0x140   :  { %v3465_v34 = vpop.eup %3464  ;;  %v172_v35 = vmul.f32 %v3463_v32, %v3878_v28  ;;  %v199_v43 = vadd.f32 %v2971_v37, %v185_v36 }
 0x141   :  { %3474 = vrsqrt.f32 %v162_v33  ;;  %v173_v20 = vmul.f32 %v3465_v34, %v3871_v21 }
 0x142   :  { %v186_v40 = vmul.f32 %v2970_v31, %v172_v35 }
 0x143   :  { %v3467_v41 = vpop.eup %3466  ;;  %v187_v46 = vmul.f32 %v2970_v31, %v173_v20 }
 0x144   :  { %v3469_v42 = vpop.eup %3468  ;;  %v200_v44 = vadd.f32 %v2971_v37, %v186_v40  ;;  %v174_v45 = vmul.f32 %v3467_v41, %v3881_v29 }
 0x145   :  { %v175_v47 = vmul.f32 %v3469_v42, %v3890_v38  ;;  %v201_v53 = vadd.f32 %v2971_v37, %v187_v46 }
 0x146   :  { %v207_v50 = vpack.c.bf16 %v200_v44, %v199_v43  ;;  %v188_v28 = vmul.f32 %v2970_v31, %v174_v45 }
 0x147   :  { %v3471_v51 = vpop.eup %3470  ;;  %v189_v55 = vmul.f32 %v2970_v31, %v175_v47 }
 0x148   :  { %v3473_v52 = vpop.eup %3472  ;;  %3177 = vmatprep.mubr.msk.bf16.mxu0 %vm73_vm0, %v207_v50  ;;  %v202_v54 = vadd.f32 %v2971_v37, %v188_v28  ;;  %v176_v21 = vmul.f32 %v3471_v51, %v3893_v39 }
 0x149   :  { %v177_v56 = vmul.f32 %v3473_v52, %v3902_v48  ;;  %v203_v29 = vadd.f32 %v2971_v37, %v189_v55  ;;  %v3422_v48 = vld [vmem:[%s5038_s3] sm:$0xff]  }
 0x14a   :  { %v208_v57 = vpack.c.bf16 %v202_v54, %v201_v53  ;;  %v190_v58 = vmul.f32 %v2970_v31, %v176_v21  ;;  %3185 = vmatprep.subr.bf16.mxu1 %v3422_v48 }
 0x14b   :  { %v3475_v59 = vpop.eup %3474  ;;  %v191_v61 = vmul.f32 %v2970_v31, %v177_v56  ;;  %3186 = vmatpush3.bf16.msra.mxu1 %v3422_v48 }
 0x14c   :  { %3178 = vmatmul.mubr.msk.bf16.vlgmr.msra.gmra.mrb[0].mxu0 %vm73_vm0, %v208_v57  ;;  %v204_v38 = vadd.f32 %v2971_v37, %v190_v58  ;;  %v178_v60 = vmul.f32 %v3475_v59, %v3905_v49  ;;  %v3423_v49 = vld [vmem:[%s5038_s3 + $0x8] sm:$0xff]  }
 0x14d   :  { %v205_v3 = vadd.f32 %v2971_v37, %v191_v61  ;;  %3187 = vmatprep.subr.bf16.mxu1 %v3423_v49 }
 0x14e   :  { %v209_v62 = vpack.c.bf16 %v204_v38, %v203_v29  ;;  %v192_v63 = vmul.f32 %v2970_v31, %v178_v60 }
 0x14f   :  { %3188 = vmatpush3.bf16.msra.mxu1 %v3423_v49 }
 0x150   :  { %3181 = vmatprep.mubr.msk.bf16.mxu0 %vm73_vm0, %v209_v62  ;;  %v206_v4 = vadd.f32 %v2971_v37, %v192_v63  ;;  %3189 = vmatprep.subr.bf16.mxu1 %v3424_v6 }
 0x152   :  { %v210_v39 = vpack.c.bf16 %v206_v4, %v205_v3 }
 0x153   :  { %3190 = vmatpush3.bf16.msra.mxu1 %v3424_v6 }
 0x154   :  { %3182 = vmatmul.mubr.msk.bf16.gmra.mrb[4].mxu0 %vm73_vm0, %v210_v39  ;;  %3191 = vmatprep.subr.bf16.mxu1 %v3425_v7 }
 0x157   :  { %3192 = vmatpush3.bf16.msra.mxu1 %v3425_v7 }
 0x158   :  { %3193 = vmatprep.subr.bf16.mxu1 %v3426_v10 }
 0x15b   :  { %3194 = vmatpush3.bf16.msra.mxu1 %v3426_v10 }
 0x15c   :  { %3195 = vmatprep.subr.bf16.mxu1 %v3427_v11 }
 0x15f   :  { %3196 = vmatpush3.bf16.msra.mxu1 %v3427_v11 }
 0x160   :  { %3197 = vmatprep.subr.bf16.mxu1 %v3428_v14 }
 0x163   :  { %3198 = vmatpush3.bf16.msra.mxu1 %v3428_v14 }
 0x164   :  { %3199 = vmatprep.subr.bf16.mxu1 %v3429_v15 }
 0x167   :  { %3200 = vmatpush3.bf16.msra.mxu1 %v3429_v15 }
 0x21f   :  { %v3179_v17 = vpop.f32.mrb[0].mxu0 }
 0x220   :  { %v3966_v18 = vadd.f32 %v3179_v17, %v2972_v16  ;;  %v280_v19 = vpop.f32.mrb[1].mxu0 }
 0x221   :  { %v3968_v22 = vadd.f32 %v2972_v16, %v280_v19  ;;  %v3180_v23 = vpop.f32.mrb[2].mxu0 }
 0x222   :  { %v313_v24 = vmul.f32 %v3966_v18, %v3966_v18  ;;  %v3972_v25 = vadd.f32 %v3180_v23, %v2972_v16  ;;  %v283_v26 = vpop.f32.mrb[3].mxu0 }
 0x223   :  { %v311_v27 = vmul.f32 %v3968_v22, %v3968_v22  ;;  %v3976_v30 = vadd.f32 %v2972_v16, %v283_v26 }
 0x224   :  { %v321_v31 = vmul.f32 %v313_v24, %v3966_v18  ;;  %v314_v32 = vmul.f32 %v3972_v25, %v3972_v25 }
 0x225   :  { %v319_v33 = vmul.f32 %v311_v27, %v3968_v22  ;;  %v312_v34 = vmul.f32 %v3976_v30, %v3976_v30 }
 0x226   :  { %v329_v35 = vmul.f32 0.044715, %v321_v31  ;;  %v322_v36 = vmul.f32 %v314_v32, %v3972_v25 }
 0x227   :  { %v327_v37 = vmul.f32 0.044715, %v319_v33  ;;  %v320_v20 = vmul.f32 %v312_v34, %v3976_v30  ;;  %v3183_v40 = vpop.f32.mrb[4].mxu0 }
 0x228   :  { %v337_v41 = vadd.f32 %v329_v35, %v3966_v18  ;;  %v330_v42 = vmul.f32 0.044715, %v322_v36  ;;  %v3987_v43 = vadd.f32 %v3183_v40, %v2972_v16  ;;  %v296_v44 = vpop.f32.mrb[5].mxu0 }
 0x229   :  { %v328_v45 = vmul.f32 0.044715, %v320_v20  ;;  %v3989_v46 = vadd.f32 %v2972_v16, %v296_v44  ;;  %v3184_v47 = vpop.f32.mrb[6].mxu0  ;;  %v335_v50 = vadd.f32 %v327_v37, %v3968_v22 }
 0x22a   :  { %v345_v28 = vmul.f32 0.7978846, %v337_v41  ;;  %v338_v51 = vadd.f32 %v330_v42, %v3972_v25  ;;  %v317_v52 = vmul.f32 %v3987_v43, %v3987_v43  ;;  %v3995_v53 = vadd.f32 %v3184_v47, %v2972_v16  ;;  %v299_v54 = vpop.f32.mrb[7].mxu0 }
 0x22b   :  { %v315_v21 = vmul.f32 %v3989_v46, %v3989_v46  ;;  %v3999_v55 = vadd.f32 %v2972_v16, %v299_v54  ;;  %v336_v56 = vadd.f32 %v328_v45, %v3976_v30  ;;  %v343_v57 = vmul.f32 0.7978846, %v335_v50 }
 0x22c   :  { %3476 = vtanh.f32 %v345_v28  ;;  %v346_v58 = vmul.f32 0.7978846, %v338_v51  ;;  %v325_v59 = vmul.f32 %v317_v52, %v3987_v43  ;;  %v318_v29 = vmul.f32 %v3995_v53, %v3995_v53 }
 0x22d   :  { %v323_v38 = vmul.f32 %v315_v21, %v3989_v46  ;;  %v316_v60 = vmul.f32 %v3999_v55, %v3999_v55  ;;  %v344_v61 = vmul.f32 0.7978846, %v336_v56  ;;  %3478 = vtanh.f32 %v343_v57 }
 0x22e   :  { %3480 = vtanh.f32 %v346_v58  ;;  %v333_v62 = vmul.f32 0.044715, %v325_v59  ;;  %v326_v63 = vmul.f32 %v318_v29, %v3995_v53 }
 0x22f   :  { %v331_v3 = vmul.f32 0.044715, %v323_v38  ;;  %v324_v4 = vmul.f32 %v316_v60, %v3999_v55  ;;  %3482 = vtanh.f32 %v344_v61  ;;  %v2979_v60 = vld [vmem:[%s5040_s4] ss:$0 sm:$0xff] }
 0x230   :  { %v341_v39 = vadd.f32 %v333_v62, %v3987_v43  ;;  %v334_v48 = vmul.f32 0.044715, %v326_v63 }
 0x231   :  { %v339_v49 = vadd.f32 %v331_v3, %v3989_v46  ;;  %v332_v6 = vmul.f32 0.044715, %v324_v4 }
 0x232   :  { %v349_v7 = vmul.f32 0.7978846, %v341_v39  ;;  %v342_v10 = vadd.f32 %v334_v48, %v3995_v53 }
 0x233   :  { %v347_v11 = vmul.f32 0.7978846, %v339_v49  ;;  %v340_v14 = vadd.f32 %v332_v6, %v3999_v55 }
 0x234   :  { %3484 = vtanh.f32 %v349_v7  ;;  %v350_v15 = vmul.f32 0.7978846, %v342_v10 }
 0x235   :  { %3486 = vtanh.f32 %v347_v11  ;;  %v348_v16 = vmul.f32 0.7978846, %v340_v14 }
 0x236   :  { %v3477_v17 = vpop.eup %3476  ;;  %3488 = vtanh.f32 %v350_v15 }
 0x237   :  { %v3479_v19 = vpop.eup %3478  ;;  %3490 = vtanh.f32 %v348_v16  ;;  %v361_v23 = vadd.f32 1.0, %v3477_v17 }
 0x238   :  { %v3481_v24 = vpop.eup %3480  ;;  %v359_v26 = vadd.f32 1.0, %v3479_v19 }
 0x239   :  { %v3483_v27 = vpop.eup %3482  ;;  %v362_v31 = vadd.f32 1.0, %v3481_v24  ;;  %v369_v32 = vmul.f32 0.5, %v361_v23 }
 0x23a   :  { %v360_v33 = vadd.f32 1.0, %v3483_v27  ;;  %v367_v34 = vmul.f32 0.5, %v359_v26 }
 0x23b   :  { %v370_v35 = vmul.f32 0.5, %v362_v31  ;;  %v377_v37 = vmul.f32 %v369_v32, %v3966_v18 }
 0x23c   :  { %v368_v36 = vmul.f32 0.5, %v360_v33  ;;  %v375_v41 = vmul.f32 %v367_v34, %v3968_v22 }
 0x23d   :  { %v378_v20 = vmul.f32 %v370_v35, %v3972_v25 }
 0x23e   :  { %v3485_v40 = vpop.eup %3484  ;;  %v376_v42 = vmul.f32 %v368_v36, %v3976_v30 }
 0x23f   :  { %v3487_v44 = vpop.eup %3486  ;;  %v384_v45 = vpack.c.bf16 %v378_v20, %v377_v37  ;;  %v365_v47 = vadd.f32 1.0, %v3485_v40 }
 0x240   :  { %v3489_v50 = vpop.eup %3488  ;;  %v383_v28 = vpack.c.bf16 %v376_v42, %v375_v41  ;;  %v363_v51 = vadd.f32 1.0, %v3487_v44 }
 0x241   :  { %v3491_v52 = vpop.eup %3490  ;;  %v366_v54 = vadd.f32 1.0, %v3489_v50  ;;  %v373_v21 = vmul.f32 0.5, %v365_v47 }
 0x242   :  { %3201 = vmatprep.mubr.bf16.mxu1 %v383_v28  ;;  %v364_v56 = vadd.f32 1.0, %v3491_v52  ;;  %v371_v57 = vmul.f32 0.5, %v363_v51 }
 0x243   :  { %3202 = vmatmul.mubr.bf16.vlgmr.msra.gmra.mrb[0].mxu1 %v384_v45  ;;  %v374_v18 = vmul.f32 0.5, %v366_v54  ;;  %v381_v58 = vmul.f32 %v373_v21, %v3987_v43 }
 0x244   :  { %v372_v25 = vmul.f32 0.5, %v364_v56  ;;  %v379_v30 = vmul.f32 %v371_v57, %v3989_v46 }
 0x245   :  { %v382_v22 = vmul.f32 %v374_v18, %v3995_v53 }
 0x246   :  { %v380_v59 = vmul.f32 %v372_v25, %v3999_v55 }
 0x247   :  { %v386_v29 = vpack.c.bf16 %v382_v22, %v381_v58 }
 0x248   :  { %v385_v38 = vpack.c.bf16 %v380_v59, %v379_v30 }
 0x24a   :  { %3205 = vmatprep.mubr.bf16.mxu1 %v385_v38 }
 0x24b   :  { %3206 = vmatmul.mubr.bf16.gmra.mrb[4].mxu1 %v386_v29 }
 0x316   :  { %v3203_v61 = vpop.f32.mrb[0].mxu1 }
 0x317   :  { %v492_v62 = vpop.f32.mrb[1].mxu1  ;;  %v501_v63 = vadd.f32 %v3203_v61, %v2979_v60 }
 0x318   :  { %v493_v3 = vadd.f32 %v2979_v60, %v492_v62  ;;  %v3204_v4 = vpop.f32.mrb[2].mxu1 }
 0x319   :  { %v495_v43 = vpop.f32.mrb[3].mxu1  ;;  %v504_v39 = vadd.f32 %v3204_v4, %v2979_v60  ;;  %v525_v49 = vadd.f32 %v501_v63, %v3819_v1 }
 0x31a   :  { %v496_v53 = vadd.f32 %v2979_v60, %v495_v43  ;;  %v523_v46 = vadd.f32 %v493_v3, %v3814_v0 }
 0x31b   :  { %v526_v10 = vadd.f32 %v504_v39, %v3833_v5  ;;  %v539_v17 = vsel %vm73_vm0, %v525_v49, 0.0 }
 0x31c   :  { %v533_v55 = vsel %vm73_vm0, %v523_v46, 0.0  ;;  %v524_v48 = vadd.f32 %v496_v53, %v3824_v2 }
 0x31d   :  { %534 = vadd.xlane.f32.xlu0 %v533_v55  ;;  %v542_v2 = vsel %vm73_vm0, %v526_v10, 0.0  ;;  %v3704_v55 = vmov 0.0  }
 0x31e   :  { %v3207_v6 = vpop.f32.mrb[4].mxu1  ;;  %v536_v7 = vsel %vm73_vm0, %v524_v48, 0.0  ;;  %3209 = vmatprep.subr.bf16.mxu1 %v3704_v55  ;;  %3217 = vmatprep.mubr.msk.bf16.mxu1 %vm3706_vm1, %v3704_v55 }
 0x31f   :  { %537 = vadd.xlane.f32.xlu1 %v536_v7  ;;  %v508_v11 = vpop.f32.mrb[5].mxu1  ;;  %v517_v14 = vadd.f32 %v3207_v6, %v2979_v60  ;;  %v3430_v6 = vld [vmem:[%s5042_s9] ss:$8 sps:$4 sm:$0xff]   ;;  %v4105_v7 = vld [vmem:[%s5041_s10 + $0x10] sm:$0xff]  }
 0x320   :  { %v509_v15 = vadd.f32 %v2979_v60, %v508_v11  ;;  %v3208_v16 = vpop.f32.mrb[6].mxu1  ;;  %v3435_v11 = vld [vmem:[%s5042_s9 + $0x10] ss:$8 sps:$4 sm:$0xff]  }
 0x321   :  { %540 = vadd.xlane.f32.xlu0 %v539_v17  ;;  %v511_v0 = vpop.f32.mrb[7].mxu1  ;;  %v520_v19 = vadd.f32 %v3208_v16, %v2979_v60  ;;  %v529_v26 = vadd.f32 %v517_v14, %v3856_v12  ;;  %v4118_v14 = vld [vmem:[%s5041_s10 + $0x18] sm:$0xff]  }
 0x322   :  { %v512_v23 = vadd.f32 %v2979_v60, %v511_v0  ;;  %v527_v1 = vadd.f32 %v509_v15, %v3842_v8  ;;  %v3705_v15 = vmov 0  }
 0x323   :  { %543 = vadd.xlane.f32.xlu1 %v542_v2  ;;  %v530_v31 = vadd.f32 %v520_v19, %v3861_v13  ;;  %v551_v32 = vsel %vm73_vm0, %v529_v26, 0.0  ;;  %763 = vmatprep.mubr.bf16.mxu0 %v3705_v15 }
 0x324   :  { %v545_v24 = vsel %vm73_vm0, %v527_v1, 0.0  ;;  %v528_v5 = vadd.f32 %v512_v23, %v3847_v9 }
 0x325   :  { %546 = vadd.xlane.f32.xlu0 %v545_v24  ;;  %v554_v33 = vsel %vm73_vm0, %v530_v31, 0.0 }
 0x326   :  { %v548_v27 = vsel %vm73_vm0, %v528_v5, 0.0 }
 0x327   :  { %549 = vadd.xlane.f32.xlu1 %v548_v27 }
 0x329   :  { %552 = vadd.xlane.f32.xlu0 %v551_v32 }
 0x32b   :  { %555 = vadd.xlane.f32.xlu1 %v554_v33 }
 0x3aa   :  { %v535_v8 = vpop.xlane.xlu0 %534 }
 0x3ab   :  { %v557_v34 = vmul.f32 0.03125, %v535_v8 }
 0x3ac   :  { %v538_v35 = vpop.xlane.xlu1 %537 }
 0x3ad   :  { %v4041_v36 = vsub.f32 %v523_v46, %v557_v34  ;;  %v558_v9 = vmul.f32 0.03125, %v538_v35  ;;  %v4084_v46 = vld [vmem:[%s5041_s10] sm:$0xff]  }
 0x3ae   :  { %v541_v37 = vpop.xlane.xlu0 %540  ;;  %3210 = vmatpush3.bf16.msra.mxu1 %v4084_v46 }
 0x3af   :  { %v4043_v12 = vsub.f32 %v524_v48, %v558_v9  ;;  %v559_v20 = vmul.f32 0.03125, %v541_v37  ;;  %v573_v13 = vmul.f32 %v4041_v36, %v4041_v36  ;;  %3211 = vmatprep.subr.bf16.mxu1 %v3704_v55  ;;  %v4092_v48 = vld [vmem:[%s5041_s10 + $0x8] sm:$0xff]  }
 0x3b0   :  { %v544_v40 = vpop.xlane.xlu1 %543 }
 0x3b1   :  { %v4047_v41 = vsub.f32 %v525_v49, %v559_v20  ;;  %v560_v42 = vmul.f32 0.03125, %v544_v40  ;;  %v581_v44 = vsel %vm73_vm0, %v573_v13, 0.0  ;;  %v574_v45 = vmul.f32 %v4043_v12, %v4043_v12  ;;  %v3432_v49 = vld [vmem:[%s5042_s9 + $0x4] ss:$8 sps:$4 sm:$0xff]   ;;  %v2988_v40 = vld [vmem:[%s5043_s7] ss:$0 sm:$0xff] }
 0x3b2   :  { %582 = vadd.xlane.f32.xlu0 %v581_v44  ;;  %v547_v47 = vpop.xlane.xlu0 %546  ;;  %3212 = vmatpush3.bf16.msra.mxu1 %v4092_v48 }
 0x3b3   :  { %v4052_v50 = vsub.f32 %v526_v10, %v560_v42  ;;  %v561_v28 = vmul.f32 0.03125, %v547_v47  ;;  %v584_v51 = vsel %vm73_vm0, %v574_v45, 0.0  ;;  %v575_v52 = vmul.f32 %v4047_v41, %v4047_v41  ;;  %3213 = vmatprep.subr.bf16.mxu1 %v3704_v55  ;;  %731 = vmatprep.subr.bf16.mxu0 %v3432_v49  ;;  %v3437_v10 = vld [vmem:[%s5042_s9 + $0x14] ss:$8 sps:$4 sm:$0xff]  }
 0x3b4   :  { %585 = vadd.xlane.f32.xlu1 %v584_v51  ;;  %v550_v54 = vpop.xlane.xlu1 %549  ;;  %732 = vmatpush1.bf16.msra.mxu0 %v3430_v6 }
 0x3b5   :  { %v4057_v21 = vsub.f32 %v527_v1, %v561_v28  ;;  %v562_v56 = vmul.f32 0.03125, %v550_v54  ;;  %v587_v57 = vsel %vm73_vm0, %v575_v52, 0.0  ;;  %v576_v18 = vmul.f32 %v4052_v50, %v4052_v50  ;;  %733 = vmatprep.subr.bf16.mxu0 %v3437_v10  ;;  %v2989_v54 = vld [vmem:[%s5044_s8] ss:$0 sm:$0xff] }
 0x3b6   :  { %588 = vadd.xlane.f32.xlu0 %v587_v57  ;;  %v553_v25 = vpop.xlane.xlu0 %552  ;;  %3214 = vmatpush3.bf16.msra.mxu1 %v4105_v7 }
 0x3b7   :  { %v4062_v58 = vsub.f32 %v528_v5, %v562_v56  ;;  %v563_v22 = vmul.f32 0.03125, %v553_v25  ;;  %v590_v30 = vsel %vm73_vm0, %v576_v18, 0.0  ;;  %v577_v59 = vmul.f32 %v4057_v21, %v4057_v21  ;;  %3215 = vmatprep.subr.bf16.mxu1 %v3704_v55 }
 0x3b8   :  { %591 = vadd.xlane.f32.xlu1 %v590_v30  ;;  %v556_v29 = vpop.xlane.xlu1 %555  ;;  %734 = vmatpush1.bf16.msra.mxu0 %v3435_v11 }
 0x3b9   :  { %v4067_v38 = vsub.f32 %v529_v26, %v563_v22  ;;  %v564_v60 = vmul.f32 0.03125, %v556_v29  ;;  %v593_v61 = vsel %vm73_vm0, %v577_v59, 0.0  ;;  %v578_v62 = vmul.f32 %v4062_v58, %v4062_v58  ;;  %3221 = vmatprep.subr.bf16.mxu0 %v3704_v55 }
 0x3ba   :  { %594 = vadd.xlane.f32.xlu0 %v593_v61  ;;  %3216 = vmatpush3.bf16.msra.mxu1 %v4118_v14 }
 0x3bb   :  { %v4072_v63 = vsub.f32 %v530_v31, %v564_v60  ;;  %v596_v3 = vsel %vm73_vm0, %v578_v62, 0.0  ;;  %v579_v4 = vmul.f32 %v4067_v38, %v4067_v38  ;;  %3233 = vmatprep.subr.bf16.mxu1 %v3704_v55 }
 0x3bc   :  { %597 = vadd.xlane.f32.xlu1 %v596_v3 }
 0x3bd   :  { %v599_v43 = vsel %vm73_vm0, %v579_v4, 0.0  ;;  %v580_v39 = vmul.f32 %v4072_v63, %v4072_v63  ;;  %3218 = vmatmul.mubr.bf16.vlgmr.msra.gmra.mrb[8].mxu1 %v3705_v15 }
 0x3be   :  { %600 = vadd.xlane.f32.xlu0 %v599_v43  ;;  %3234 = vmatpush3.bf16.msra.mxu1 %v4084_v46 }
 0x3bf   :  { %v602_v53 = vsel %vm73_vm0, %v580_v39, 0.0  ;;  %3241 = vmatprep.mubr.msk.bf16.mxu1 %vm3706_vm1, %v3704_v55  ;;  %3235 = vmatprep.subr.bf16.mxu1 %v3704_v55 }
 0x3c0   :  { %603 = vadd.xlane.f32.xlu1 %v602_v53 }
 0x3c2   :  { %3236 = vmatpush3.bf16.msra.mxu1 %v4092_v48 }
 0x3c3   :  { %3237 = vmatprep.subr.bf16.mxu1 %v3704_v55 }
 0x3c6   :  { %3238 = vmatpush3.bf16.msra.mxu1 %v4105_v7 }
 0x3c7   :  { %3239 = vmatprep.subr.bf16.mxu1 %v3704_v55 }
 0x3ca   :  { %3240 = vmatpush3.bf16.msra.mxu1 %v4118_v14 }
 0x3cb   :  { %3257 = vmatprep.subr.bf16.mxu1 %v3704_v55 }
 0x43f   :  { %v583_v16 = vpop.xlane.xlu0 %582 }
 0x440   :  { %v605_v17 = vmul.f32 0.03125, %v583_v16 }
 0x441   :  { %v586_v0 = vpop.xlane.xlu1 %585 }
 0x442   :  { %v613_v19 = vadd.f32 1e-12, %v605_v17  ;;  %v606_v23 = vmul.f32 0.03125, %v586_v0 }
 0x443   :  { %v589_v2 = vpop.xlane.xlu0 %588 }
 0x444   :  { %3492 = vrsqrt.f32 %v613_v19  ;;  %v614_v1 = vadd.f32 1e-12, %v606_v23  ;;  %v607_v24 = vmul.f32 0.03125, %v589_v2 }
 0x445   :  { %v592_v5 = vpop.xlane.xlu1 %591 }
 0x446   :  { %3494 = vrsqrt.f32 %v614_v1  ;;  %v615_v26 = vadd.f32 1e-12, %v607_v24  ;;  %v608_v27 = vmul.f32 0.03125, %v592_v5  ;;  %v668_v5 = vlaneseq }
 0x447   :  { %v595_v31 = vpop.xlane.xlu0 %594 }
 0x448   :  { %3496 = vrsqrt.f32 %v615_v26  ;;  %v616_v32 = vadd.f32 1e-12, %v608_v27  ;;  %v609_v33 = vmul.f32 0.03125, %v595_v31  ;;  %v4169_v26 = vshrl.u32 %v668_v5, 7  ;;  %v687_v31 = vld [vmem:[%s5045_s11] sm:$0x3] }
 0x449   :  { %v598_v8 = vpop.xlane.xlu1 %597 }
 0x44a   :  { %3498 = vrsqrt.f32 %v616_v32  ;;  %v610_v34 = vmul.f32 0.03125, %v598_v8  ;;  %v617_v35 = vadd.f32 1e-12, %v609_v33  ;;  %v691_v27 = vsub.s32 0, %v4169_v26 }
 0x44b   :  { %v601_v37 = vpop.xlane.xlu0 %600  ;;  %v695_v32 = vsub.s32 1, %v4169_v26 }
 0x44c   :  { %v618_v9 = vadd.f32 1e-12, %v610_v34  ;;  %v611_v47 = vmul.f32 0.03125, %v601_v37  ;;  %v692_v33 = vrot.slane %v687_v31, %v691_v27 }
 0x44d   :  { %v604_v20 = vpop.xlane.xlu1 %603  ;;  %v696_v8 = vrot.slane %v687_v31, %v695_v32 }
 0x44e   :  { %v3493_v13 = vpop.eup %3492  ;;  %3500 = vrsqrt.f32 %v618_v9  ;;  %v612_v42 = vmul.f32 0.03125, %v604_v20  ;;  %v619_v25 = vadd.f32 1e-12, %v611_v47 }
 0x44f   :  { %v629_v44 = vmul.f32 %v3493_v13, %v4041_v36  ;;  %3502 = vrsqrt.f32 %v617_v35 }
 0x450   :  { %v3495_v45 = vpop.eup %3494  ;;  %v620_v56 = vadd.f32 1e-12, %v612_v42 }
 0x451   :  { %v643_v28 = vmul.f32 %v2988_v40, %v629_v44  ;;  %v630_v51 = vmul.f32 %v3495_v45, %v4043_v12 }
 0x452   :  { %v3497_v52 = vpop.eup %3496  ;;  %3504 = vrsqrt.f32 %v620_v56 }
 0x453   :  { %v644_v57 = vmul.f32 %v2988_v40, %v630_v51  ;;  %v657_v22 = vadd.f32 %v2989_v54, %v643_v28  ;;  %v631_v59 = vmul.f32 %v3497_v52, %v4047_v41  ;;  %3506 = vrsqrt.f32 %v619_v25 }
 0x454   :  { %v3499_v18 = vpop.eup %3498 }
 0x455   :  { %v658_v30 = vadd.f32 %v2989_v54, %v644_v57  ;;  %v632_v36 = vmul.f32 %v3499_v18, %v4052_v50  ;;  %v645_v12 = vmul.f32 %v2988_v40, %v631_v59 }
 0x457   :  { %v679_v29 = vpack.c.bf16 %v658_v30, %v657_v22  ;;  %v646_v60 = vmul.f32 %v2988_v40, %v632_v36  ;;  %v659_v41 = vadd.f32 %v2989_v54, %v645_v12 }
 0x458   :  { %v3501_v61 = vpop.eup %3500 }
 0x459   :  { %2994 = vmatmul.mubr.msk.bf16.vlgmr.msra.gmra.mrb[8].mxu0 %vm73_vm0, %v679_v29  ;;  %v3503_v62 = vpop.eup %3502  ;;  %v660_v3 = vadd.f32 %v2989_v54, %v646_v60  ;;  %v634_v4 = vmul.f32 %v3501_v61, %v4062_v58 }
 0x45a   :  { %773 = vmatprep.mubr.bf16.mxu0 %v3705_v15  ;;  %3222 = vmatpush3.bf16.msra.mxu0 %v4084_v46  ;;  %v633_v50 = vmul.f32 %v3503_v62, %v4057_v21 }
 0x45b   :  { %3223 = vmatprep.subr.bf16.mxu0 %v3704_v55  ;;  %v680_v43 = vpack.c.bf16 %v660_v3, %v659_v41  ;;  %v648_v39 = vmul.f32 %v2988_v40, %v634_v4 }
 0x45c   :  { %v3505_v53 = vpop.eup %3504  ;;  %v647_v49 = vmul.f32 %v2988_v40, %v633_v50 }
 0x45d   :  { %v3507_v6 = vpop.eup %3506  ;;  %v662_v58 = vadd.f32 %v2989_v54, %v648_v39  ;;  %v636_v10 = vmul.f32 %v3505_v53, %v4072_v63  ;;  %v4219_v39 = vld [vmem:[%s5046_s12 + $0x8] sm:$0xff] }
 0x45e   :  { %3224 = vmatpush3.bf16.msra.mxu0 %v4092_v48  ;;  %v661_v21 = vadd.f32 %v2989_v54, %v647_v49  ;;  %v635_v11 = vmul.f32 %v3507_v6, %v4067_v38 }
 0x45f   :  { %3225 = vmatprep.subr.bf16.mxu0 %v3704_v55  ;;  %v650_v17 = vmul.f32 %v2988_v40, %v636_v10 }
 0x460   :  { %v681_v16 = vpack.c.bf16 %v662_v58, %v661_v21  ;;  %v649_v0 = vmul.f32 %v2988_v40, %v635_v11 }
 0x461   :  { %2995 = vmatmul.mubr.msk.bf16.gmra.mrb[12].mxu0 %vm73_vm0, %v680_v43  ;;  %v664_v19 = vadd.f32 %v2989_v54, %v650_v17  ;;  %v4211_v43 = vld [vmem:[%s5046_s12] sm:$0xff]  ;;  %s3709_s12 = smov 96  }
 0x462   :  { %783 = vmatprep.mubr.bf16.mxu0 %v3705_v15  ;;  %3226 = vmatpush3.bf16.msra.mxu0 %v4105_v7  ;;  %v663_v23 = vadd.f32 %v2989_v54, %v649_v0 }
 0x463   :  { %3227 = vmatprep.subr.bf16.mxu0 %v3704_v55 }
 0x464   :  { %v682_v2 = vpack.c.bf16 %v664_v19, %v663_v23 }
 0x466   :  { %3228 = vmatpush3.bf16.msra.mxu0 %v4118_v14 }
 0x467   :  { %3245 = vmatprep.subr.bf16.mxu0 %v3704_v55 }
 0x469   :  { %2996 = vmatmul.mubr.msk.bf16.gmra.mrb[16].mxu0 %vm73_vm0, %v681_v16 }
 0x46a   :  { %793 = vmatprep.mubr.bf16.mxu0 %v3705_v15 }
 0x471   :  { %2997 = vmatmul.mubr.msk.bf16.gmra.mrb[20].mxu0 %vm73_vm0, %v682_v2 }
 0x472   :  { %3229 = vmatprep.mubr.msk.bf16.mxu0 %vm3706_vm1, %v3704_v55 }
 0x490   :  { %v884_v38 = vpop.f32.mrb[8].mxu1 }
 0x491   :  { %v3219_v63 = vpop.f32.mrb[9].mxu1  ;;  %v885_v53 = vadd.f32 %v884_v38, %v4211_v43 }
 0x492   :  { %v887_v1 = vpop.f32.mrb[10].mxu1 }
 0x493   :  { %v3220_v24 = vpop.f32.mrb[11].mxu1  ;;  %v888_v49 = vadd.f32 %v887_v1, %v4219_v39 }
 0x52c   :  { %v765_v34 = vpop.f32.mrb[8].mxu0 }
 0x52d   :  { %v4180_v35 = vadd.f32 %v765_v34, %v692_v33  ;;  %v767_v9 = vpop.f32.mrb[9].mxu0 }
 0x52e   :  { %v4182_v37 = vadd.f32 %v767_v9, %v696_v8  ;;  %v769_v20 = vpop.f32.mrb[10].mxu0 }
 0x52f   :  { %v4184_v13 = vadd.f32 %v769_v20, %v692_v33  ;;  %v771_v40 = vpop.f32.mrb[11].mxu0  ;;  %v891_v6 = vadd.f32 %v885_v53, %v4180_v35 }
 0x530   :  { %v4186_v42 = vadd.f32 %v771_v40, %v696_v8 }
 0x531   :  { %v3002_v58 = vmul.f32 -1.442695, %v891_v6 }
 0x533   :  { %3508 = vpow2.f32 %v3002_v58 }
 0x534   :  { %v775_v44 = vpop.f32.mrb[12].mxu0 }
 0x535   :  { %v4188_v45 = vadd.f32 %v775_v44, %v692_v33  ;;  %v777_v47 = vpop.f32.mrb[13].mxu0 }
 0x536   :  { %v4190_v28 = vadd.f32 %v777_v47, %v696_v8  ;;  %v779_v51 = vpop.f32.mrb[14].mxu0 }
 0x537   :  { %v4192_v52 = vadd.f32 %v779_v51, %v692_v33  ;;  %v781_v54 = vpop.f32.mrb[15].mxu0 }
 0x538   :  { %v4194_v56 = vadd.f32 %v781_v54, %v696_v8 }
 0x53c   :  { %v785_v57 = vpop.f32.mrb[16].mxu0 }
 0x53d   :  { %v4196_v18 = vadd.f32 %v785_v57, %v692_v33  ;;  %v787_v25 = vpop.f32.mrb[17].mxu0  ;;  %v3509_v10 = vpop.eup %3508 }
 0x53e   :  { %v4198_v22 = vadd.f32 %v787_v25, %v696_v8  ;;  %v789_v30 = vpop.f32.mrb[18].mxu0  ;;  %v899_v21 = vadd.f32 1.0, %v3509_v10 }
 0x53f   :  { %v4200_v59 = vadd.f32 %v789_v30, %v692_v33  ;;  %v791_v36 = vpop.f32.mrb[19].mxu0 }
 0x540   :  { %v4202_v29 = vadd.f32 %v791_v36, %v696_v8  ;;  %3510 = vrcp.f32 %v899_v21 }
 0x544   :  { %v795_v60 = vpop.f32.mrb[20].mxu0 }
 0x545   :  { %v4204_v61 = vadd.f32 %v795_v60, %v692_v33  ;;  %v797_v12 = vpop.f32.mrb[21].mxu0 }
 0x546   :  { %v798_v62 = vadd.f32 %v797_v12, %v696_v8  ;;  %v799_v3 = vpop.f32.mrb[22].mxu0 }
 0x547   :  { %v4206_v4 = vadd.f32 %v799_v3, %v692_v33  ;;  %v801_v41 = vpop.f32.mrb[23].mxu0 }
 0x548   :  { %v802_v50 = vadd.f32 %v801_v41, %v696_v8  ;;  %v669_v41 = vand.u32 127, %v668_v5 }
 0x549   :  { %808 = vrot.lane.b32.xlu0 %v4206_v4, %s3707_s20 }
 0x54a   :  { %810 = vrot.lane.b32.xlu1 %v802_v50, %s3707_s20  ;;  %v3511_v19 = vpop.eup %3510  ;;  %vm672_vm2 = vcmp.lt.s32.totalorder %v669_v41, 32 }
 0x54b   :  { %v927_v47 = vsub.f32 1.0, %v3511_v19  ;;  %v939_v54 = vmul.f32 0.0, %v3511_v19  ;;  %vm673_vm4 = vmxor %vm3710_vm3, %vm672_vm2 }
 0x54c   :  { %vm675_vm5 = vmxor %vm673_vm4, %vm3710_vm3 }
 0x54d   :  { %vm676_vm6 = vmxor %vm672_vm2, %vm3710_vm3 }
 0x54e   :  { %907 = vrot.lane.b32.xlu1 %v885_v53, %s3708_s22  ;;  %v4247_v53 = vsel %vm675_vm5, 1.0, %v3704_v55 }
 0x552   :  { %909 = vrot.lane.b32.xlu1 %v888_v49, %s3708_s22 }
 0x5bb   :  { %v809_v11 = vpop.permute.xlu0 %808 }
 0x5bc   :  { %v811_v16 = vpop.permute.xlu1 %810 }
 0x5bd   :  { %v812_v17 = vsel %vm73_vm0, %v809_v11, %v811_v16 }
 0x5be   :  { %v892_v0 = vadd.f32 %v888_v49, %v812_v17  ;;  %v4250_v49 = vsel %vm676_vm6, 1.0, %v3704_v55 }
 0x5c0   :  { %v3003_v23 = vmul.f32 -1.442695, %v892_v0  ;;  %v908_v2 = vpop.permute.xlu1 %907 }
 0x5c1   :  { %v913_v38 = vmul.f32 %v3511_v19, %v908_v2 }
 0x5c2   :  { %3512 = vpow2.f32 %v3003_v23 }
 0x5c3   :  { %917 = vrot.lane.b32.xlu0 %v913_v38, %s3708_s22 }
 0x5c4   :  { %v910_v31 = vpop.permute.xlu1 %909 }
 0x5cc   :  { %v3513_v63 = vpop.eup %3512 }
 0x5cd   :  { %v900_v1 = vadd.f32 1.0, %v3513_v63 }
 0x5cf   :  { %3514 = vrcp.f32 %v900_v1 }
 0x5d9   :  { %v3515_v24 = vpop.eup %3514 }
 0x5da   :  { %v914_v33 = vmul.f32 %v3515_v24, %v910_v31  ;;  %v928_v30 = vsub.f32 1.0, %v3515_v24  ;;  %v940_v60 = vmul.f32 0.0, %v3515_v24 }
 0x5dc   :  { %919 = vrot.lane.b32.xlu1 %v914_v33, %s3708_s22 }
 0x635   :  { %v918_v8 = vpop.permute.xlu0 %917 }
 0x636   :  { %v923_v34 = vadd.f32 %v918_v8, %v4180_v35 }
 0x638   :  { %3516 = vtanh.f32 %v923_v34 }
 0x642   :  { %v3517_v9 = vpop.eup %3516 }
 0x643   :  { %931 = vrot.lane.b32.xlu0 %v3517_v9, %s3709_s12 }
 0x64e   :  { %v920_v20 = vpop.permute.xlu1 %919 }
 0x64f   :  { %v924_v40 = vadd.f32 %v920_v20, %v812_v17 }
 0x651   :  { %3518 = vtanh.f32 %v924_v40 }
 0x65b   :  { %v3519_v44 = vpop.eup %3518 }
 0x65c   :  { %933 = vrot.lane.b32.xlu1 %v3519_v44, %s3709_s12 }
 0x6b5   :  { %v932_v51 = vpop.permute.xlu0 %931 }
 0x6b6   :  { %v937_v57 = vmul.f32 %v932_v51, %v927_v47 }
 0x6b8   :  { %v4232_v25 = vadd.f32 %v939_v54, %v937_v57 }
 0x6ba   :  { %945 = vrot.lane.b32.xlu0 %v4232_v25, %s3709_s12 }
 0x6be   :  { %957 = vrot.lane.b32.xlu0 %v4204_v61, %s3707_s20 }
 0x6ce   :  { %v934_v36 = vpop.permute.xlu1 %933 }
 0x6cf   :  { %v938_v12 = vmul.f32 %v934_v36, %v928_v30 }
 0x6d1   :  { %v4238_v3 = vadd.f32 %v940_v60, %v938_v12 }
 0x6d3   :  { %947 = vrot.lane.b32.xlu1 %v4238_v3, %s3709_s12 }
 0x6d7   :  { %959 = vrot.lane.b32.xlu1 %v798_v62, %s3707_s20 }
 0x72c   :  { %v4244_v50 = vpop.permute.xlu0 %945 }
 0x72d   :  { %v951_v6 = vsel %vm73_vm0, %v4244_v50, %v4232_v25 }
 0x72e   :  { %v953_v58 = vmul.f32 %v951_v6, %v4247_v53 }
 0x730   :  { %v958_v38 = vpop.permute.xlu0 %957 }
 0x745   :  { %v948_v62 = vpop.permute.xlu1 %947 }
 0x746   :  { %v952_v5 = vsel %vm73_vm0, %v948_v62, %v4238_v3 }
 0x747   :  { %v954_v10 = vmul.f32 %v952_v5, %v4250_v49 }
 0x749   :  { %v963_v21 = vpack.c.bf16 %v954_v10, %v953_v58  ;;  %v960_v2 = vpop.permute.xlu1 %959 }
 0x74a   :  { %v961_v1 = vsel %vm73_vm0, %v958_v38, %v960_v2 }
 0x74b   :  { %3230 = vmatmul.mubr.msk.bf16.vlgmr.msra.gmra.mrb[24].mxu0 %vm846_vm7, %v963_v21 }
 0x74c   :  { %3246 = vmatpush3.bf16.msra.mxu0 %v4084_v46  ;;  %3253 = vmatprep.mubr.msk.bf16.mxu0 %vm3706_vm1, %v3704_v55 }
 0x74d   :  { %3247 = vmatprep.subr.bf16.mxu0 %v3704_v55 }
 0x750   :  { %3248 = vmatpush3.bf16.msra.mxu0 %v4092_v48 }
 0x751   :  { %3249 = vmatprep.subr.bf16.mxu0 %v3704_v55 }
 0x754   :  { %3250 = vmatpush3.bf16.msra.mxu0 %v4105_v7 }
 0x755   :  { %3251 = vmatprep.subr.bf16.mxu0 %v3704_v55 }
 0x758   :  { %3252 = vmatpush3.bf16.msra.mxu0 %v4118_v14 }
 0x759   :  { %3269 = vmatprep.subr.bf16.mxu0 %v3704_v55 }
 0x81e   :  { %v1001_v11 = vpop.f32.mrb[24].mxu0 }
 0x81f   :  { %v1002_v16 = vadd.f32 %v1001_v11, %v4211_v43  ;;  %v3231_v17 = vpop.f32.mrb[25].mxu0 }
 0x820   :  { %v1004_v0 = vpop.f32.mrb[26].mxu0 }
 0x821   :  { %v1005_v19 = vadd.f32 %v1004_v0, %v4219_v39  ;;  %v3232_v23 = vpop.f32.mrb[27].mxu0  ;;  %1024 = vrot.lane.b32.xlu0 %v1002_v16, %s3708_s22  ;;  %v1008_v63 = vadd.f32 %v1002_v16, %v4184_v13 }
 0x823   :  { %1026 = vrot.lane.b32.xlu1 %v1005_v19, %s3708_s22  ;;  %v1009_v24 = vadd.f32 %v1005_v19, %v961_v1  ;;  %v3005_v31 = vmul.f32 -1.442695, %v1008_v63 }
 0x825   :  { %v3006_v33 = vmul.f32 -1.442695, %v1009_v24  ;;  %3520 = vpow2.f32 %v3005_v31 }
 0x827   :  { %3522 = vpow2.f32 %v3006_v33 }
 0x82f   :  { %v3521_v8 = vpop.eup %3520 }
 0x830   :  { %v1016_v9 = vadd.f32 1.0, %v3521_v8 }
 0x831   :  { %v3523_v34 = vpop.eup %3522 }
 0x832   :  { %v1017_v20 = vadd.f32 1.0, %v3523_v34  ;;  %3524 = vrcp.f32 %v1016_v9 }
 0x834   :  { %3526 = vrcp.f32 %v1017_v20 }
 0x83c   :  { %v3525_v40 = vpop.eup %3524 }
 0x83d   :  { %v1044_v62 = vsub.f32 1.0, %v3525_v40  ;;  %v1056_v58 = vmul.f32 %v3525_v40, %v4232_v25 }
 0x83e   :  { %v3527_v51 = vpop.eup %3526 }
 0x83f   :  { %v1045_v21 = vsub.f32 1.0, %v3527_v51  ;;  %v1057_v17 = vmul.f32 %v3527_v51, %v4238_v3 }
 0x893   :  { %v1025_v44 = vpop.permute.xlu0 %1024 }
 0x894   :  { %v1030_v47 = vmul.f32 %v3525_v40, %v1025_v44 }
 0x895   :  { %v1027_v54 = vpop.permute.xlu1 %1026 }
 0x896   :  { %v1031_v57 = vmul.f32 %v3527_v51, %v1027_v54  ;;  %1034 = vrot.lane.b32.xlu0 %v1030_v47, %s3708_s22 }
 0x898   :  { %1036 = vrot.lane.b32.xlu1 %v1031_v57, %s3708_s22 }
 0x908   :  { %v1035_v30 = vpop.permute.xlu0 %1034 }
 0x909   :  { %v1040_v36 = vadd.f32 %v1035_v30, %v4184_v13 }
 0x90a   :  { %v1037_v60 = vpop.permute.xlu1 %1036 }
 0x90b   :  { %3528 = vtanh.f32 %v1040_v36  ;;  %v1041_v12 = vadd.f32 %v1037_v60, %v961_v1 }
 0x90d   :  { %3530 = vtanh.f32 %v1041_v12 }
 0x915   :  { %v3529_v41 = vpop.eup %3528 }
 0x916   :  { %1048 = vrot.lane.b32.xlu0 %v3529_v41, %s3709_s12 }
 0x917   :  { %v3531_v6 = vpop.eup %3530 }
 0x918   :  { %1050 = vrot.lane.b32.xlu1 %v3531_v6, %s3709_s12 }
 0x988   :  { %v1049_v5 = vpop.permute.xlu0 %1048 }
 0x989   :  { %v1054_v10 = vmul.f32 %v1049_v5, %v1044_v62 }
 0x98a   :  { %v1051_v11 = vpop.permute.xlu1 %1050 }
 0x98b   :  { %v4282_v16 = vadd.f32 %v1056_v58, %v1054_v10  ;;  %v1055_v0 = vmul.f32 %v1051_v11, %v1045_v21 }
 0x98d   :  { %v4285_v19 = vadd.f32 %v1057_v17, %v1055_v0  ;;  %1062 = vrot.lane.b32.xlu0 %v4282_v16, %s3709_s12 }
 0x98f   :  { %1064 = vrot.lane.b32.xlu1 %v4285_v19, %s3709_s12 }
 0x991   :  { %1074 = vrot.lane.b32.xlu0 %v4200_v59, %s3707_s20 }
 0x993   :  { %1076 = vrot.lane.b32.xlu1 %v4202_v29, %s3707_s20 }
 0x9ff   :  { %v4295_v25 = vpop.permute.xlu0 %1062 }
 0xa00   :  { %v1068_v23 = vsel %vm73_vm0, %v4295_v25, %v4282_v16 }
 0xa01   :  { %v1065_v2 = vpop.permute.xlu1 %1064  ;;  %v1070_v63 = vmul.f32 %v1068_v23, %v4247_v53 }
 0xa02   :  { %v1069_v38 = vsel %vm73_vm0, %v1065_v2, %v4285_v19 }
 0xa03   :  { %v1071_v1 = vmul.f32 %v1069_v38, %v4250_v49  ;;  %v1075_v40 = vpop.permute.xlu0 %1074 }
 0xa05   :  { %v1080_v24 = vpack.c.bf16 %v1071_v1, %v1070_v63  ;;  %v1077_v20 = vpop.permute.xlu1 %1076 }
 0xa06   :  { %v1078_v47 = vsel %vm73_vm0, %v1075_v40, %v1077_v20 }
 0xa07   :  { %3242 = vmatmul.mubr.msk.bf16.vlgmr.msra.gmra.mrb[12].mxu1 %vm846_vm7, %v1080_v24 }
 0xa08   :  { %3258 = vmatpush3.bf16.msra.mxu1 %v4084_v46  ;;  %3265 = vmatprep.mubr.msk.bf16.mxu1 %vm3706_vm1, %v3704_v55 }
 0xa09   :  { %3259 = vmatprep.subr.bf16.mxu1 %v3704_v55 }
 0xa0c   :  { %3260 = vmatpush3.bf16.msra.mxu1 %v4092_v48 }
 0xa0d   :  { %3261 = vmatprep.subr.bf16.mxu1 %v3704_v55 }
 0xa10   :  { %3262 = vmatpush3.bf16.msra.mxu1 %v4105_v7 }
 0xa11   :  { %3263 = vmatprep.subr.bf16.mxu1 %v3704_v55 }
 0xa14   :  { %3264 = vmatpush3.bf16.msra.mxu1 %v4118_v14 }
 0xa15   :  { %3281 = vmatprep.subr.bf16.mxu1 %v3704_v55 }
 0xada   :  { %v1118_v29 = vpop.f32.mrb[12].mxu1 }
 0xadb   :  { %v1119_v31 = vadd.f32 %v1118_v29, %v4211_v43  ;;  %v3243_v33 = vpop.f32.mrb[13].mxu1 }
 0xadc   :  { %v1121_v8 = vpop.f32.mrb[14].mxu1 }
 0xadd   :  { %v1122_v34 = vadd.f32 %v1121_v8, %v4219_v39  ;;  %1141 = vrot.lane.b32.xlu0 %v1119_v31, %s3708_s22  ;;  %v3244_v9 = vpop.f32.mrb[15].mxu1  ;;  %v1125_v44 = vadd.f32 %v1119_v31, %v4188_v45 }
 0xadf   :  { %1143 = vrot.lane.b32.xlu1 %v1122_v34, %s3708_s22  ;;  %v1126_v51 = vadd.f32 %v1122_v34, %v1078_v47  ;;  %v3008_v54 = vmul.f32 -1.442695, %v1125_v44 }
 0xae1   :  { %v3009_v57 = vmul.f32 -1.442695, %v1126_v51  ;;  %3532 = vpow2.f32 %v3008_v54 }
 0xae3   :  { %3534 = vpow2.f32 %v3009_v57 }
 0xaeb   :  { %v3533_v30 = vpop.eup %3532 }
 0xaec   :  { %v1133_v60 = vadd.f32 1.0, %v3533_v30 }
 0xaed   :  { %v3535_v36 = vpop.eup %3534 }
 0xaee   :  { %v1134_v12 = vadd.f32 1.0, %v3535_v36  ;;  %3536 = vrcp.f32 %v1133_v60 }
 0xaf0   :  { %3538 = vrcp.f32 %v1134_v12 }
 0xaf8   :  { %v3537_v41 = vpop.eup %3536 }
 0xaf9   :  { %v1161_v38 = vsub.f32 1.0, %v3537_v41  ;;  %v1173_v1 = vmul.f32 %v3537_v41, %v4282_v16 }
 0xafa   :  { %v3539_v5 = vpop.eup %3538 }
 0xafb   :  { %v1162_v29 = vsub.f32 1.0, %v3539_v5  ;;  %v1174_v8 = vmul.f32 %v3539_v5, %v4285_v19 }
 0xb4f   :  { %v1142_v6 = vpop.permute.xlu0 %1141 }
 0xb50   :  { %v1147_v62 = vmul.f32 %v3537_v41, %v1142_v6 }
 0xb51   :  { %v1144_v58 = vpop.permute.xlu1 %1143 }
 0xb52   :  { %v1148_v10 = vmul.f32 %v3539_v5, %v1144_v58  ;;  %1151 = vrot.lane.b32.xlu0 %v1147_v62, %s3708_s22 }
 0xb54   :  { %1153 = vrot.lane.b32.xlu1 %v1148_v10, %s3708_s22 }
 0xbc4   :  { %v1152_v21 = vpop.permute.xlu0 %1151 }
 0xbc5   :  { %v1157_v11 = vadd.f32 %v1152_v21, %v4188_v45 }
 0xbc6   :  { %v1154_v17 = vpop.permute.xlu1 %1153 }
 0xbc7   :  { %3540 = vtanh.f32 %v1157_v11  ;;  %v1158_v0 = vadd.f32 %v1154_v17, %v1078_v47 }
 0xbc9   :  { %3542 = vtanh.f32 %v1158_v0 }
 0xbd1   :  { %v3541_v23 = vpop.eup %3540 }
 0xbd2   :  { %1165 = vrot.lane.b32.xlu0 %v3541_v23, %s3709_s12 }
 0xbd3   :  { %v3543_v2 = vpop.eup %3542 }
 0xbd4   :  { %1167 = vrot.lane.b32.xlu1 %v3543_v2, %s3709_s12 }
 0xc44   :  { %v1166_v63 = vpop.permute.xlu0 %1165 }
 0xc45   :  { %v1171_v24 = vmul.f32 %v1166_v63, %v1161_v38 }
 0xc46   :  { %v1168_v31 = vpop.permute.xlu1 %1167 }
 0xc47   :  { %v4327_v33 = vadd.f32 %v1173_v1, %v1171_v24  ;;  %v1172_v34 = vmul.f32 %v1168_v31, %v1162_v29 }
 0xc49   :  { %v4330_v9 = vadd.f32 %v1174_v8, %v1172_v34  ;;  %1179 = vrot.lane.b32.xlu0 %v4327_v33, %s3709_s12 }
 0xc4b   :  { %1181 = vrot.lane.b32.xlu1 %v4330_v9, %s3709_s12 }
 0xc4d   :  { %1191 = vrot.lane.b32.xlu0 %v4196_v18, %s3707_s20 }
 0xc4f   :  { %1193 = vrot.lane.b32.xlu1 %v4198_v22, %s3707_s20 }
 0xcbb   :  { %v4340_v16 = vpop.permute.xlu0 %1179 }
 0xcbc   :  { %v1185_v20 = vsel %vm73_vm0, %v4340_v16, %v4327_v33 }
 0xcbd   :  { %v1182_v40 = vpop.permute.xlu1 %1181  ;;  %v1187_v47 = vmul.f32 %v1185_v20, %v4247_v53 }
 0xcbe   :  { %v1186_v44 = vsel %vm73_vm0, %v1182_v40, %v4330_v9 }
 0xcbf   :  { %v1188_v51 = vmul.f32 %v1186_v44, %v4250_v49  ;;  %v1192_v6 = vpop.permute.xlu0 %1191 }
 0xcc1   :  { %v1197_v54 = vpack.c.bf16 %v1188_v51, %v1187_v47  ;;  %v1194_v41 = vpop.permute.xlu1 %1193 }
 0xcc2   :  { %v1195_v5 = vsel %vm73_vm0, %v1192_v6, %v1194_v41 }
 0xcc3   :  { %3254 = vmatmul.mubr.msk.bf16.vlgmr.msra.gmra.mrb[28].mxu0 %vm846_vm7, %v1197_v54 }
 0xcc4   :  { %3270 = vmatpush3.bf16.msra.mxu0 %v4084_v46  ;;  %3277 = vmatprep.mubr.msk.bf16.mxu0 %vm3706_vm1, %v3704_v55 }
 0xcc5   :  { %3271 = vmatprep.subr.bf16.mxu0 %v3704_v55 }
 0xcc8   :  { %3272 = vmatpush3.bf16.msra.mxu0 %v4092_v48 }
 0xcc9   :  { %3273 = vmatprep.subr.bf16.mxu0 %v3704_v55 }
 0xccc   :  { %3274 = vmatpush3.bf16.msra.mxu0 %v4105_v7 }
 0xccd   :  { %3275 = vmatprep.subr.bf16.mxu0 %v3704_v55 }
 0xcd0   :  { %3276 = vmatpush3.bf16.msra.mxu0 %v4118_v14 }
 0xcd1   :  { %3293 = vmatprep.subr.bf16.mxu0 %v3704_v55 }
 0xd96   :  { %v1235_v22 = vpop.f32.mrb[28].mxu0 }
 0xd97   :  { %v1236_v57 = vadd.f32 %v1235_v22, %v4211_v43  ;;  %v3255_v30 = vpop.f32.mrb[29].mxu0 }
 0xd98   :  { %v1238_v36 = vpop.f32.mrb[30].mxu0 }
 0xd99   :  { %v1239_v60 = vadd.f32 %v1238_v36, %v4219_v39  ;;  %1258 = vrot.lane.b32.xlu0 %v1236_v57, %s3708_s22  ;;  %v3256_v12 = vpop.f32.mrb[31].mxu0  ;;  %v1242_v62 = vadd.f32 %v1236_v57, %v4192_v52 }
 0xd9b   :  { %1260 = vrot.lane.b32.xlu1 %v1239_v60, %s3708_s22  ;;  %v1243_v58 = vadd.f32 %v1239_v60, %v1195_v5  ;;  %v3011_v10 = vmul.f32 -1.442695, %v1242_v62 }
 0xd9d   :  { %v3012_v21 = vmul.f32 -1.442695, %v1243_v58  ;;  %3544 = vpow2.f32 %v3011_v10 }
 0xd9f   :  { %3546 = vpow2.f32 %v3012_v21 }
 0xda7   :  { %v3545_v11 = vpop.eup %3544 }
 0xda8   :  { %v1250_v0 = vadd.f32 1.0, %v3545_v11 }
 0xda9   :  { %v3547_v17 = vpop.eup %3546 }
 0xdaa   :  { %v1251_v23 = vadd.f32 1.0, %v3547_v17  ;;  %3548 = vrcp.f32 %v1250_v0 }
 0xdac   :  { %3550 = vrcp.f32 %v1251_v23 }
 0xdb4   :  { %v3549_v2 = vpop.eup %3548 }
 0xdb5   :  { %v1278_v47 = vsub.f32 1.0, %v3549_v2  ;;  %v1290_v54 = vmul.f32 %v3549_v2, %v4327_v33 }
 0xdb6   :  { %v3551_v1 = vpop.eup %3550 }
 0xdb7   :  { %v1279_v57 = vsub.f32 1.0, %v3551_v1  ;;  %v1291_v60 = vmul.f32 %v3551_v1, %v4330_v9 }
 0xe0b   :  { %v1259_v38 = vpop.permute.xlu0 %1258 }
 0xe0c   :  { %v1264_v63 = vmul.f32 %v3549_v2, %v1259_v38 }
 0xe0d   :  { %v1261_v24 = vpop.permute.xlu1 %1260 }
 0xe0e   :  { %v1265_v29 = vmul.f32 %v3551_v1, %v1261_v24  ;;  %1268 = vrot.lane.b32.xlu0 %v1264_v63, %s3708_s22 }
 0xe10   :  { %1270 = vrot.lane.b32.xlu1 %v1265_v29, %s3708_s22 }
 0xe80   :  { %v1269_v31 = vpop.permute.xlu0 %1268 }
 0xe81   :  { %v1274_v8 = vadd.f32 %v1269_v31, %v4192_v52 }
 0xe82   :  { %v1271_v34 = vpop.permute.xlu1 %1270 }
 0xe83   :  { %3552 = vtanh.f32 %v1274_v8  ;;  %v1275_v20 = vadd.f32 %v1271_v34, %v1195_v5 }
 0xe85   :  { %3554 = vtanh.f32 %v1275_v20 }
 0xe8d   :  { %v3553_v40 = vpop.eup %3552 }
 0xe8e   :  { %1282 = vrot.lane.b32.xlu0 %v3553_v40, %s3709_s12 }
 0xe8f   :  { %v3555_v44 = vpop.eup %3554 }
 0xe90   :  { %1284 = vrot.lane.b32.xlu1 %v3555_v44, %s3709_s12 }
 0xf00   :  { %v1283_v51 = vpop.permute.xlu0 %1282 }
 0xf01   :  { %v1288_v22 = vmul.f32 %v1283_v51, %v1278_v47 }
 0xf02   :  { %v1285_v30 = vpop.permute.xlu1 %1284 }
 0xf03   :  { %v4372_v36 = vadd.f32 %v1290_v54, %v1288_v22  ;;  %v1289_v12 = vmul.f32 %v1285_v30, %v1279_v57 }
 0xf05   :  { %v4375_v41 = vadd.f32 %v1291_v60, %v1289_v12  ;;  %1296 = vrot.lane.b32.xlu0 %v4372_v36, %s3709_s12 }
 0xf07   :  { %1298 = vrot.lane.b32.xlu1 %v4375_v41, %s3709_s12 }
 0xf09   :  { %1308 = vrot.lane.b32.xlu0 %v4192_v52, %s3707_s20 }
 0xf0b   :  { %1310 = vrot.lane.b32.xlu1 %v4194_v56, %s3707_s20 }
 0xf77   :  { %v4385_v33 = vpop.permute.xlu0 %1296 }
 0xf78   :  { %v1302_v6 = vsel %vm73_vm0, %v4385_v33, %v4372_v36 }
 0xf79   :  { %v1299_v62 = vpop.permute.xlu1 %1298  ;;  %v1304_v58 = vmul.f32 %v1302_v6, %v4247_v53 }
 0xf7a   :  { %v1303_v5 = vsel %vm73_vm0, %v1299_v62, %v4375_v41 }
 0xf7b   :  { %v1305_v10 = vmul.f32 %v1303_v5, %v4250_v49  ;;  %v1309_v23 = vpop.permute.xlu0 %1308 }
 0xf7d   :  { %v1314_v21 = vpack.c.bf16 %v1305_v10, %v1304_v58 }
 0xf7f   :  { %3266 = vmatmul.mubr.msk.bf16.vlgmr.msra.gmra.mrb[16].mxu1 %vm846_vm7, %v1314_v21 }
 0xf80   :  { %3282 = vmatpush3.bf16.msra.mxu1 %v4084_v46  ;;  %3289 = vmatprep.mubr.msk.bf16.mxu1 %vm3706_vm1, %v3704_v55 }
 0xf81   :  { %3283 = vmatprep.subr.bf16.mxu1 %v3704_v55 }
 0xf84   :  { %3284 = vmatpush3.bf16.msra.mxu1 %v4092_v48  ;;  %v1311_v48 = vpop.permute.xlu1 %1310 }
 0xf85   :  { %3285 = vmatprep.subr.bf16.mxu1 %v3704_v55  ;;  %v1312_v2 = vsel %vm73_vm0, %v1309_v23, %v1311_v48 }
 0xf88   :  { %3286 = vmatpush3.bf16.msra.mxu1 %v4105_v7 }
 0xf89   :  { %3287 = vmatprep.subr.bf16.mxu1 %v3704_v55 }
 0xf8c   :  { %3288 = vmatpush3.bf16.msra.mxu1 %v4118_v14 }
0x1052   :  { %v1352_v52 = vpop.f32.mrb[16].mxu1 }
0x1053   :  { %v1353_v56 = vadd.f32 %v1352_v52, %v4211_v43  ;;  %v3267_v11 = vpop.f32.mrb[17].mxu1 }
0x1054   :  { %v1355_v46 = vpop.f32.mrb[18].mxu1 }
0x1055   :  { %v1356_v17 = vadd.f32 %v1355_v46, %v4219_v39  ;;  %1375 = vrot.lane.b32.xlu0 %v1353_v56, %s3708_s22  ;;  %v3268_v0 = vpop.f32.mrb[19].mxu1  ;;  %v1359_v7 = vadd.f32 %v1353_v56, %v4196_v18 }
0x1057   :  { %1377 = vrot.lane.b32.xlu1 %v1356_v17, %s3708_s22  ;;  %v1360_v38 = vadd.f32 %v1356_v17, %v1312_v2  ;;  %v3014_v14 = vmul.f32 -1.442695, %v1359_v7  ;;  %v3702_v7 = vld [vmem:[%s5041_s10 + $0x10] sm:$0xff]  }
0x1059   :  { %v3015_v63 = vmul.f32 -1.442695, %v1360_v38  ;;  %3556 = vpow2.f32 %v3014_v14 }
0x105b   :  { %3558 = vpow2.f32 %v3015_v63 }
0x1063   :  { %v3557_v1 = vpop.eup %3556 }
0x1064   :  { %v1367_v29 = vadd.f32 1.0, %v3557_v1 }
0x1065   :  { %v3559_v24 = vpop.eup %3558 }
0x1066   :  { %v1368_v31 = vadd.f32 1.0, %v3559_v24  ;;  %3560 = vrcp.f32 %v1367_v29 }
0x1068   :  { %3562 = vrcp.f32 %v1368_v31 }
0x1070   :  { %v3561_v8 = vpop.eup %3560 }
0x1071   :  { %v1395_v12 = vsub.f32 1.0, %v3561_v8  ;;  %v1407_v62 = vmul.f32 %v3561_v8, %v4372_v36 }
0x1072   :  { %v3563_v40 = vpop.eup %3562 }
0x1073   :  { %v1396_v58 = vsub.f32 1.0, %v3563_v40 }
0x10c7   :  { %v1376_v34 = vpop.permute.xlu0 %1375 }
0x10c8   :  { %v1381_v20 = vmul.f32 %v3561_v8, %v1376_v34 }
0x10c9   :  { %v1378_v44 = vpop.permute.xlu1 %1377 }
0x10ca   :  { %v1382_v47 = vmul.f32 %v3563_v40, %v1378_v44  ;;  %1385 = vrot.lane.b32.xlu0 %v1381_v20, %s3708_s22 }
0x10cc   :  { %1387 = vrot.lane.b32.xlu1 %v1382_v47, %s3708_s22 }
0x113c   :  { %v1386_v51 = vpop.permute.xlu0 %1385 }
0x113d   :  { %v1391_v54 = vadd.f32 %v1386_v51, %v4196_v18  ;;  %v1408_v18 = vmul.f32 %v3563_v40, %v4375_v41 }
0x113e   :  { %v1388_v22 = vpop.permute.xlu1 %1387 }
0x113f   :  { %3564 = vtanh.f32 %v1391_v54  ;;  %v1392_v57 = vadd.f32 %v1388_v22, %v1312_v2  ;;  %v3703_v2 = vld [vmem:[%s5041_s10 + $0x18] sm:$0xff]  }
0x1141   :  { %3566 = vtanh.f32 %v1392_v57 }
0x1149   :  { %v3565_v30 = vpop.eup %3564 }
0x114a   :  { %1399 = vrot.lane.b32.xlu0 %v3565_v30, %s3709_s12 }
0x114b   :  { %v3567_v60 = vpop.eup %3566 }
0x114c   :  { %1401 = vrot.lane.b32.xlu1 %v3567_v60, %s3709_s12 }
0x11bc   :  { %v1400_v6 = vpop.permute.xlu0 %1399 }
0x11bd   :  { %v1405_v5 = vmul.f32 %v1400_v6, %v1395_v12 }
0x11be   :  { %v1402_v10 = vpop.permute.xlu1 %1401 }
0x11bf   :  { %v4416_v21 = vadd.f32 %v1407_v62, %v1405_v5  ;;  %v1406_v52 = vmul.f32 %v1402_v10, %v1396_v58 }
0x11c1   :  { %v4419_v56 = vadd.f32 %v1408_v18, %v1406_v52  ;;  %1413 = vrot.lane.b32.xlu0 %v4416_v21, %s3709_s12 }
0x11c3   :  { %1415 = vrot.lane.b32.xlu1 %v4419_v56, %s3709_s12 }
0x11c5   :  { %1425 = vrot.lane.b32.xlu0 %v4188_v45, %s3707_s20  ;;  %v3700_v45 = vld [vmem:[%s5041_s10] sm:$0xff]  }
0x11c7   :  { %1427 = vrot.lane.b32.xlu1 %v4190_v28, %s3707_s20  ;;  %v3701_v28 = vld [vmem:[%s5041_s10 + $0x8] sm:$0xff]  }
0x1233   :  { %v4429_v36 = vpop.permute.xlu0 %1413 }
0x1234   :  { %v1419_v11 = vsel %vm73_vm0, %v4429_v36, %v4416_v21 }
0x1235   :  { %v1416_v46 = vpop.permute.xlu1 %1415  ;;  %v1421_v0 = vmul.f32 %v1419_v11, %v4247_v53 }
0x1236   :  { %v1420_v17 = vsel %vm73_vm0, %v1416_v46, %v4419_v56 }
0x1237   :  { %v1422_v48 = vmul.f32 %v1420_v17, %v4250_v49  ;;  %v1426_v8 = vpop.permute.xlu0 %1425 }
0x1239   :  { %v1431_v23 = vpack.c.bf16 %v1422_v48, %v1421_v0  ;;  %v1428_v31 = vpop.permute.xlu1 %1427 }
0x123a   :  { %v1429_v20 = vsel %vm73_vm0, %v1426_v8, %v1428_v31 }
0x123b   :  { %3278 = vmatmul.mubr.msk.bf16.vlgmr.msra.gmra.mrb[32].mxu0 %vm846_vm7, %v1431_v23 }
0x123c   :  { %3294 = vmatpush3.bf16.msra.mxu0 %v3700_v45  ;;  %3301 = vmatprep.mubr.msk.bf16.mxu0 %vm3706_vm1, %v3704_v55 }
0x123d   :  { %3295 = vmatprep.subr.bf16.mxu0 %v3704_v55 }
0x1240   :  { %3296 = vmatpush3.bf16.msra.mxu0 %v3701_v28 }
0x1241   :  { %3297 = vmatprep.subr.bf16.mxu0 %v3704_v55 }
0x1244   :  { %3298 = vmatpush3.bf16.msra.mxu0 %v3702_v7 }
0x1245   :  { %3299 = vmatprep.subr.bf16.mxu0 %v3704_v55 }
0x1248   :  { %3300 = vmatpush3.bf16.msra.mxu0 %v3703_v2 }
0x1249   :  { %3305 = vmatprep.subr.bf16.mxu0 %v3704_v55 }
0x130e   :  { %v1469_v38 = vpop.f32.mrb[32].mxu0 }
0x130f   :  { %v1470_v14 = vadd.f32 %v1469_v38, %v4211_v43  ;;  %v3279_v63 = vpop.f32.mrb[33].mxu0 }
0x1310   :  { %v1472_v1 = vpop.f32.mrb[34].mxu0 }
0x1311   :  { %v1473_v24 = vadd.f32 %v1472_v1, %v4219_v39  ;;  %1492 = vrot.lane.b32.xlu0 %v1470_v14, %s3708_s22  ;;  %v3280_v29 = vpop.f32.mrb[35].mxu0  ;;  %v1476_v34 = vadd.f32 %v1470_v14, %v4200_v59 }
0x1313   :  { %1494 = vrot.lane.b32.xlu1 %v1473_v24, %s3708_s22  ;;  %v1477_v40 = vadd.f32 %v1473_v24, %v1429_v20  ;;  %v3017_v44 = vmul.f32 -1.442695, %v1476_v34 }
0x1315   :  { %v3018_v47 = vmul.f32 -1.442695, %v1477_v40  ;;  %3568 = vpow2.f32 %v3017_v44 }
0x1317   :  { %3570 = vpow2.f32 %v3018_v47 }
0x131f   :  { %v3569_v51 = vpop.eup %3568 }
0x1320   :  { %v1484_v22 = vadd.f32 1.0, %v3569_v51 }
0x1321   :  { %v3571_v54 = vpop.eup %3570 }
0x1322   :  { %v1485_v57 = vadd.f32 1.0, %v3571_v54  ;;  %3572 = vrcp.f32 %v1484_v22 }
0x1324   :  { %3574 = vrcp.f32 %v1485_v57 }
0x132c   :  { %v3573_v30 = vpop.eup %3572 }
0x132d   :  { %v1512_v17 = vsub.f32 1.0, %v3573_v30  ;;  %v1524_v48 = vmul.f32 %v3573_v30, %v4416_v21 }
0x132e   :  { %v3575_v6 = vpop.eup %3574 }
0x132f   :  { %v1513_v45 = vsub.f32 1.0, %v3575_v6 }
0x1383   :  { %v1493_v60 = vpop.permute.xlu0 %1492 }
0x1384   :  { %v1498_v12 = vmul.f32 %v3573_v30, %v1493_v60 }
0x1385   :  { %v1495_v62 = vpop.permute.xlu1 %1494 }
0x1386   :  { %v1499_v5 = vmul.f32 %v3575_v6, %v1495_v62  ;;  %1502 = vrot.lane.b32.xlu0 %v1498_v12, %s3708_s22 }
0x1388   :  { %1504 = vrot.lane.b32.xlu1 %v1499_v5, %s3708_s22 }
0x13f8   :  { %v1503_v58 = vpop.permute.xlu0 %1502 }
0x13f9   :  { %v1508_v10 = vadd.f32 %v1503_v58, %v4200_v59  ;;  %v1525_v59 = vmul.f32 %v3575_v6, %v4419_v56 }
0x13fa   :  { %v1505_v18 = vpop.permute.xlu1 %1504 }
0x13fb   :  { %3576 = vtanh.f32 %v1508_v10  ;;  %v1509_v52 = vadd.f32 %v1505_v18, %v1429_v20 }
0x13fd   :  { %3578 = vtanh.f32 %v1509_v52 }
0x1405   :  { %v3577_v11 = vpop.eup %3576 }
0x1406   :  { %1516 = vrot.lane.b32.xlu0 %v3577_v11, %s3709_s12 }
0x1407   :  { %v3579_v46 = vpop.eup %3578 }
0x1408   :  { %1518 = vrot.lane.b32.xlu1 %v3579_v46, %s3709_s12 }
0x1478   :  { %v1517_v0 = vpop.permute.xlu0 %1516 }
0x1479   :  { %v1522_v23 = vmul.f32 %v1517_v0, %v1512_v17 }
0x147a   :  { %v1519_v28 = vpop.permute.xlu1 %1518 }
0x147b   :  { %v1526_v7 = vadd.f32 %v1524_v48, %v1522_v23  ;;  %v1523_v2 = vmul.f32 %v1519_v28, %v1513_v45 }
0x147d   :  { %v4470_v38 = vadd.f32 %v1525_v59, %v1523_v2  ;;  %1530 = vrot.lane.b32.xlu0 %v1526_v7, %s3709_s12 }
0x147f   :  { %1532 = vrot.lane.b32.xlu1 %v4470_v38, %s3709_s12 }
0x1481   :  { %1542 = vrot.lane.b32.xlu0 %v4184_v13, %s3707_s20 }
0x1483   :  { %1544 = vrot.lane.b32.xlu1 %v4186_v42, %s3707_s20 }
0x14ef   :  { %v4479_v21 = vpop.permute.xlu0 %1530 }
0x14f0   :  { %v1536_v14 = vsel %vm73_vm0, %v4479_v21, %v1526_v7 }
0x14f1   :  { %v1533_v63 = vpop.permute.xlu1 %1532  ;;  %v1538_v24 = vmul.f32 %v1536_v14, %v4247_v53 }
0x14f2   :  { %v1537_v1 = vsel %vm73_vm0, %v1533_v63, %v4470_v38 }
0x14f3   :  { %v1539_v29 = vmul.f32 %v1537_v1, %v4250_v49  ;;  %v1543_v47 = vpop.permute.xlu0 %1542 }
0x14f5   :  { %v1548_v31 = vpack.c.bf16 %v1539_v29, %v1538_v24  ;;  %v1545_v44 = vpop.permute.xlu1 %1544 }
0x14f6   :  { %v1546_v54 = vsel %vm73_vm0, %v1543_v47, %v1545_v44 }
0x14f7   :  { %3290 = vmatmul.mubr.msk.bf16.vlgmr.msra.gmra.mrb[20].mxu1 %vm846_vm7, %v1548_v31 }
0x14f8   :  { %1882 = vmatprep.mubr.bf16.mxu1 %v3705_v15 }
0x15ca   :  { %v1586_v13 = vpop.f32.mrb[20].mxu1 }
0x15cb   :  { %v1587_v42 = vadd.f32 %v1586_v13, %v4211_v43  ;;  %v3291_v8 = vpop.f32.mrb[21].mxu1 }
0x15cc   :  { %v1589_v34 = vpop.f32.mrb[22].mxu1 }
0x15cd   :  { %v1590_v20 = vadd.f32 %v1589_v34, %v4219_v39  ;;  %1609 = vrot.lane.b32.xlu0 %v1587_v42, %s3708_s22  ;;  %v3292_v40 = vpop.f32.mrb[23].mxu1  ;;  %v1593_v51 = vadd.f32 %v1587_v42, %v4204_v61 }
0x15cf   :  { %1611 = vrot.lane.b32.xlu1 %v1590_v20, %s3708_s22  ;;  %v1594_v22 = vadd.f32 %v1590_v20, %v1546_v54  ;;  %v3020_v57 = vmul.f32 -1.442695, %v1593_v51 }
0x15d1   :  { %v3021_v30 = vmul.f32 -1.442695, %v1594_v22  ;;  %3580 = vpow2.f32 %v3020_v57 }
0x15d3   :  { %3582 = vpow2.f32 %v3021_v30 }
0x15db   :  { %v3581_v60 = vpop.eup %3580 }
0x15dc   :  { %v1601_v6 = vadd.f32 1.0, %v3581_v60 }
0x15dd   :  { %v3583_v12 = vpop.eup %3582 }
0x15de   :  { %v1602_v62 = vadd.f32 1.0, %v3583_v12  ;;  %3584 = vrcp.f32 %v1601_v6 }
0x15e0   :  { %3586 = vrcp.f32 %v1602_v62 }
0x15e8   :  { %v3585_v5 = vpop.eup %3584 }
0x15e9   :  { %v1629_v28 = vsub.f32 1.0, %v3585_v5  ;;  %v1641_v2 = vmul.f32 %v3585_v5, %v1526_v7 }
0x15ea   :  { %v3587_v18 = vpop.eup %3586 }
0x15eb   :  { %v1630_v63 = vsub.f32 1.0, %v3587_v18 }
0x163f   :  { %v1610_v58 = vpop.permute.xlu0 %1609 }
0x1640   :  { %v1615_v10 = vmul.f32 %v3585_v5, %v1610_v58 }
0x1641   :  { %v1612_v52 = vpop.permute.xlu1 %1611 }
0x1642   :  { %v1616_v11 = vmul.f32 %v3587_v18, %v1612_v52  ;;  %1619 = vrot.lane.b32.xlu0 %v1615_v10, %s3708_s22 }
0x1644   :  { %1621 = vrot.lane.b32.xlu1 %v1616_v11, %s3708_s22 }
0x16b4   :  { %v1620_v46 = vpop.permute.xlu0 %1619 }
0x16b5   :  { %v1625_v17 = vadd.f32 %v1620_v46, %v4204_v61  ;;  %v1642_v61 = vmul.f32 %v3587_v18, %v4470_v38 }
0x16b6   :  { %v1622_v0 = vpop.permute.xlu1 %1621 }
0x16b7   :  { %3588 = vtanh.f32 %v1625_v17  ;;  %v1626_v48 = vadd.f32 %v1622_v0, %v1546_v54 }
0x16b9   :  { %3590 = vtanh.f32 %v1626_v48 }
0x16c1   :  { %v3589_v23 = vpop.eup %3588 }
0x16c2   :  { %1633 = vrot.lane.b32.xlu0 %v3589_v23, %s3709_s12  ;;  %v3440_v23 = vld [vmem:[%s5047_s13] ss:$8 sps:$4 sm:$0xff]  }
0x16c3   :  { %v3591_v45 = vpop.eup %3590 }
0x16c4   :  { %1635 = vrot.lane.b32.xlu1 %v3591_v45, %s3709_s12  ;;  %v3442_v45 = vld [vmem:[%s5047_s13 + $0x4] ss:$8 sps:$4 sm:$0xff]  }
0x16c5   :  { %1850 = vmatprep.subr.bf16.mxu1 %v3442_v45 }
0x16c6   :  { %1851 = vmatpush1.bf16.msra.mxu1 %v3440_v23 }
0x1734   :  { %v1634_v59 = vpop.permute.xlu0 %1633 }
0x1735   :  { %v1639_v14 = vmul.f32 %v1634_v59, %v1629_v28  ;;  %v4549_v28 = vld [vmem:[%s5048_s14] sm:$0xff]   ;;  %v3446_v59 = vld [vmem:[%s5047_s13 + $0x14] ss:$8 sps:$4 sm:$0xff]  }
0x1736   :  { %v1636_v1 = vpop.permute.xlu1 %1635  ;;  %1852 = vmatprep.subr.bf16.mxu1 %v3446_v59 }
0x1737   :  { %v4500_v24 = vadd.f32 %v1641_v2, %v1639_v14  ;;  %v1640_v29 = vmul.f32 %v1636_v1, %v1630_v63  ;;  %v4562_v2 = vld [vmem:[%s5048_s14 + $0x8] sm:$0xff]  }
0x1738   :  { %v3450_v14 = vld [vmem:[%s5047_s13 + $0x24] ss:$8 sps:$4 sm:$0xff]   ;;  %v3448_v1 = vld [vmem:[%s5047_s13 + $0x20] ss:$8 sps:$4 sm:$0xff]  }
0x1739   :  { %v4503_v31 = vadd.f32 %v1642_v61, %v1640_v29  ;;  %1647 = vrot.lane.b32.xlu0 %v4500_v24, %s3709_s12  ;;  %v4576_v29 = vld [vmem:[%s5048_s14 + $0x10] sm:$0xff]  }
0x173b   :  { %1649 = vrot.lane.b32.xlu1 %v4503_v31, %s3709_s12 }
0x173f   :  { %1659 = vrot.lane.b32.xlu1 %v4180_v35, %s3707_s20 }
0x17ab   :  { %v4511_v7 = vpop.permute.xlu0 %1647 }
0x17ac   :  { %v1653_v13 = vsel %vm73_vm0, %v4511_v7, %v4500_v24 }
0x17ad   :  { %v1650_v42 = vpop.permute.xlu1 %1649  ;;  %v1655_v34 = vmul.f32 %v1653_v13, %v4247_v53 }
0x17ae   :  { %v1654_v8 = vsel %vm73_vm0, %v1650_v42, %v4503_v31  ;;  %v3454_v42 = vld [vmem:[%s5047_s13 + $0x34] ss:$8 sps:$4 sm:$0xff]  }
0x17af   :  { %v1656_v20 = vmul.f32 %v1654_v8, %v4250_v49  ;;  %v3452_v8 = vld [vmem:[%s5047_s13 + $0x30] ss:$8 sps:$4 sm:$0xff]  }
0x17b1   :  { %v1665_v40 = vpack.c.bf16 %v1656_v20, %v1655_v34  ;;  %v1660_v62 = vpop.permute.xlu1 %1659  ;;  %v4589_v34 = vld [vmem:[%s5048_s14 + $0x18] sm:$0xff]  }
0x17b3   :  { %3302 = vmatmul.mubr.msk.bf16.vlgmr.msra.gmra.mrb[36].mxu0 %vm846_vm7, %v1665_v40 }
0x17b4   :  { %3313 = vmatprep.mubr.msk.bf16.mxu0 %vm3706_vm1, %v3704_v55  ;;  %3306 = vmatpush3.bf16.msra.mxu0 %v4549_v28 }
0x17b5   :  { %3307 = vmatprep.subr.bf16.mxu0 %v3704_v55 }
0x17b8   :  { %3308 = vmatpush3.bf16.msra.mxu0 %v4562_v2 }
0x17b9   :  { %3309 = vmatprep.subr.bf16.mxu0 %v3704_v55 }
0x17bc   :  { %3310 = vmatpush3.bf16.msra.mxu0 %v4576_v29 }
0x17bd   :  { %3311 = vmatprep.subr.bf16.mxu0 %v3704_v55 }
0x17c0   :  { %3312 = vmatpush3.bf16.msra.mxu0 %v4589_v34 }
0x17c1   :  { %3317 = vmatprep.subr.bf16.mxu0 %v3704_v55 }
0x17c3   :  { %3314 = vmatmul.mubr.bf16.vlgmr.msra.gmra.mrb[40].mxu0 %v3705_v15 }
0x17c4   :  { %3318 = vmatpush3.bf16.msra.mxu0 %v4549_v28  ;;  %3325 = vmatprep.mubr.msk.bf16.mxu0 %vm3706_vm1, %v3704_v55 }
0x17c5   :  { %3319 = vmatprep.subr.bf16.mxu0 %v3704_v55 }
0x17c8   :  { %3320 = vmatpush3.bf16.msra.mxu0 %v4562_v2 }
0x17c9   :  { %3321 = vmatprep.subr.bf16.mxu0 %v3704_v55 }
0x17cc   :  { %3322 = vmatpush3.bf16.msra.mxu0 %v4576_v29 }
0x17cd   :  { %3323 = vmatprep.subr.bf16.mxu0 %v3704_v55 }
0x17d0   :  { %3324 = vmatpush3.bf16.msra.mxu0 %v4589_v34 }
0x17d1   :  { %3341 = vmatprep.subr.bf16.mxu0 %v3704_v55 }
0x1886   :  { %v1703_v35 = vpop.f32.mrb[36].mxu0 }
0x1887   :  { %v1704_v44 = vadd.f32 %v1703_v35, %v4211_v43  ;;  %v3303_v47 = vpop.f32.mrb[37].mxu0 }
0x1888   :  { %v1706_v51 = vpop.f32.mrb[38].mxu0 }
0x1889   :  { %v1707_v54 = vadd.f32 %v1706_v51, %v4219_v39  ;;  %1726 = vrot.lane.b32.xlu0 %v1704_v44, %s3708_s22  ;;  %v3304_v22 = vpop.f32.mrb[39].mxu0  ;;  %v1710_v57 = vadd.f32 %v1704_v44, %v4206_v4 }
0x188b   :  { %1728 = vrot.lane.b32.xlu1 %v1707_v54, %s3708_s22  ;;  %v3023_v30 = vmul.f32 -1.442695, %v1710_v57 }
0x188d   :  { %1661 = vrot.lane.b32.xlu0 %v4182_v37, %s3707_s20  ;;  %3592 = vpow2.f32 %v3023_v30 }
0x1897   :  { %v3593_v60 = vpop.eup %3592 }
0x1898   :  { %v1718_v12 = vadd.f32 1.0, %v3593_v60 }
0x189a   :  { %3594 = vrcp.f32 %v1718_v12  ;;  %v1763_v12 = vsel %vm73_vm0, %v4295_v25, %v4503_v31  ;;  %v1765_v25 = vsel %vm73_vm0, %v4385_v33, %v4419_v56  ;;  %v1766_v33 = vsel %vm73_vm0, %v4429_v36, %v4375_v41  ;;  %v1999_v41 = vpop.f32.mrb[40].mxu0 }
0x189b   :  { %v3315_v36 = vpop.f32.mrb[41].mxu0 }
0x18a4   :  { %v4530_v43 = vpop.eup %3594 }
0x18a5   :  { %v1746_v40 = vsub.f32 1.0, %v4530_v43  ;;  %v1758_v44 = vmul.f32 %v4530_v43, %v4500_v24 }
0x18fb   :  { %v1727_v6 = vpop.permute.xlu0 %1726 }
0x18fc   :  { %v1732_v39 = vmul.f32 %v4530_v43, %v1727_v6  ;;  %v1764_v43 = vsel %vm73_vm0, %v4340_v16, %v4470_v38  ;;  %v1767_v16 = vsel %vm73_vm0, %v4479_v21, %v4330_v9 }
0x18fd   :  { %v1729_v46 = vpop.permute.xlu1 %1728  ;;  %v1776_v56 = vpack.c.bf16 %v1767_v16, %v1766_v33 }
0x18fe   :  { %1736 = vrot.lane.b32.xlu0 %v1732_v39, %s3708_s22  ;;  %v2002_v39 = vpop.f32.mrb[42].mxu0 }
0x18ff   :  { %v1662_v5 = vpop.permute.xlu0 %1661 }
0x1900   :  { %v1663_v58 = vsel %vm73_vm0, %v1660_v62, %v1662_v5  ;;  %v3316_v62 = vpop.f32.mrb[43].mxu0 }
0x1901   :  { %v1711_v10 = vadd.f32 %v1707_v54, %v1663_v58 }
0x1903   :  { %v3024_v37 = vmul.f32 -1.442695, %v1711_v10 }
0x1905   :  { %3596 = vpow2.f32 %v3024_v37 }
0x190f   :  { %v3597_v18 = vpop.eup %3596 }
0x1910   :  { %v1719_v52 = vadd.f32 1.0, %v3597_v18 }
0x1912   :  { %3598 = vrcp.f32 %v1719_v52 }
0x191c   :  { %v4535_v11 = vpop.eup %3598 }
0x191d   :  { %v1733_v17 = vmul.f32 %v4535_v11, %v1729_v46  ;;  %v1747_v54 = vsub.f32 1.0, %v4535_v11  ;;  %v1759_v57 = vmul.f32 %v4535_v11, %v4503_v31  ;;  %v1768_v31 = vsel %vm73_vm0, %v4511_v7, %v4285_v19 }
0x191f   :  { %1738 = vrot.lane.b32.xlu1 %v1733_v17, %s3708_s22  ;;  %v1786_v17 = vld [vmem:[%s5049_s15] sm:$0x3] }
0x1920   :  { %v4683_v45 = vrot.slane %v1786_v17, %v695_v32 }
0x1970   :  { %v1737_v0 = vpop.permute.xlu0 %1736 }
0x1971   :  { %v1742_v48 = vadd.f32 %v1737_v0, %v4206_v4  ;;  %v3444_v4 = vld [vmem:[%s5047_s13 + $0x10] ss:$8 sps:$4 sm:$0xff]  }
0x1972   :  { %1853 = vmatpush1.bf16.msra.mxu1 %v3444_v4 }
0x1973   :  { %3600 = vtanh.f32 %v1742_v48  ;;  %1854 = vmatprep.subr.bf16.mxu1 %v3450_v14  ;;  %v4679_v48 = vrot.slane %v1786_v17, %v691_v27  ;;  %v4696_v27 = vld [vmem:[%s5050_s16] sm:$0xff] }
0x1974   :  { %v2000_v32 = vadd.f32 %v1999_v41, %v4696_v27 }
0x1976   :  { %1855 = vmatpush1.bf16.msra.mxu1 %v3448_v1 }
0x1977   :  { %1856 = vmatprep.subr.bf16.mxu1 %v3454_v42 }
0x197a   :  { %1857 = vmatpush1.bf16.msra.mxu1 %v3452_v8 }
0x197b   :  { %3329 = vmatprep.subr.bf16.mxu1 %v3704_v55 }
0x197d   :  { %v3601_v63 = vpop.eup %3600 }
0x197e   :  { %1750 = vrot.lane.b32.xlu0 %v3601_v63, %s3709_s12  ;;  %v4691_v63 = vld [vmem:[%s5050_s16 + $0x8] sm:$0xff] }
0x197f   :  { %v2003_v26 = vadd.f32 %v2002_v39, %v4691_v63 }
0x1991   :  { %v1739_v61 = vpop.permute.xlu1 %1738 }
0x1992   :  { %v1743_v13 = vadd.f32 %v1739_v61, %v1663_v58 }
0x1994   :  { %3602 = vtanh.f32 %v1743_v13 }
0x199e   :  { %v3603_v20 = vpop.eup %3602 }
0x199f   :  { %1752 = vrot.lane.b32.xlu1 %v3603_v20, %s3709_s12 }
0x19f0   :  { %v1751_v35 = vpop.permute.xlu0 %1750 }
0x19f1   :  { %v1756_v47 = vmul.f32 %v1751_v35, %v1746_v40 }
0x19f3   :  { %v1760_v51 = vadd.f32 %v1758_v44, %v1756_v47 }
0x19f5   :  { %1770 = vrot.lane.b32.xlu0 %v1760_v51, %s3709_s12 }
0x1a11   :  { %v1753_v22 = vpop.permute.xlu1 %1752 }
0x1a12   :  { %v1757_v30 = vmul.f32 %v1753_v22, %v1747_v54 }
0x1a14   :  { %v1761_v60 = vadd.f32 %v1759_v57, %v1757_v30 }
0x1a16   :  { %v1762_v6 = vsel %vm73_vm0, %v4244_v50, %v1761_v60  ;;  %v1775_v50 = vpack.c.bf16 %v1765_v25, %v1764_v43 }
0x1a17   :  { %v1774_v24 = vpack.c.bf16 %v1763_v12, %v1762_v6 }
0x1a19   :  { %3033 = vmatmul.mubr.msk.bf16.vlgmr.msra.gmra.mrb[24].mxu1 %vm846_vm7, %v1774_v24 }
0x1a1a   :  { %1892 = vmatprep.mubr.bf16.mxu1 %v3705_v15  ;;  %3330 = vmatpush3.bf16.msra.mxu1 %v4549_v28 }
0x1a1b   :  { %3331 = vmatprep.subr.bf16.mxu1 %v3704_v55 }
0x1a1e   :  { %3332 = vmatpush3.bf16.msra.mxu1 %v4562_v2 }
0x1a1f   :  { %3333 = vmatprep.subr.bf16.mxu1 %v3704_v55 }
0x1a21   :  { %3034 = vmatmul.mubr.msk.bf16.gmra.mrb[28].mxu1 %vm846_vm7, %v1775_v50 }
0x1a22   :  { %1902 = vmatprep.mubr.bf16.mxu1 %v3705_v15  ;;  %3334 = vmatpush3.bf16.msra.mxu1 %v4576_v29 }
0x1a23   :  { %3335 = vmatprep.subr.bf16.mxu1 %v3704_v55 }
0x1a26   :  { %3336 = vmatpush3.bf16.msra.mxu1 %v4589_v34 }
0x1a27   :  { %3353 = vmatprep.subr.bf16.mxu1 %v3704_v55 }
0x1a29   :  { %3035 = vmatmul.mubr.msk.bf16.gmra.mrb[32].mxu1 %vm846_vm7, %v1776_v56 }
0x1a2a   :  { %1912 = vmatprep.mubr.bf16.mxu1 %v3705_v15 }
0x1a67   :  { %v1771_v38 = vpop.permute.xlu0 %1770 }
0x1a68   :  { %v1773_v9 = vsel %vm73_vm0, %v1771_v38, %v4238_v3 }
0x1a69   :  { %v1777_v21 = vpack.c.bf16 %v1773_v9, %v1768_v31 }
0x1a6b   :  { %3036 = vmatmul.mubr.msk.bf16.gmra.mrb[36].mxu1 %vm846_vm7, %v1777_v21 }
0x1a6c   :  { %3337 = vmatprep.mubr.msk.bf16.mxu1 %vm3706_vm1, %v3704_v55 }
0x1aec   :  { %v1884_v5 = vpop.f32.mrb[24].mxu1 }
0x1aed   :  { %v4652_v15 = vpop.f32.mrb[25].mxu1  ;;  %v4707_v61 = vadd.f32 %v1884_v5, %v4679_v48 }
0x1aee   :  { %v4654_v58 = vpop.f32.mrb[26].mxu1 }
0x1aef   :  { %v4656_v10 = vpop.f32.mrb[27].mxu1  ;;  %v2006_v13 = vadd.f32 %v2000_v32, %v4707_v61 }
0x1af1   :  { %v3041_v42 = vmul.f32 -1.442695, %v2006_v13 }
0x1af3   :  { %3604 = vpow2.f32 %v3041_v42 }
0x1af4   :  { %v4658_v19 = vpop.f32.mrb[28].mxu1 }
0x1af5   :  { %v4660_v3 = vpop.f32.mrb[29].mxu1 }
0x1af6   :  { %v4662_v7 = vpop.f32.mrb[30].mxu1 }
0x1af7   :  { %v4664_v37 = vpop.f32.mrb[31].mxu1 }
0x1afc   :  { %v4666_v18 = vpop.f32.mrb[32].mxu1 }
0x1afd   :  { %v4668_v52 = vpop.f32.mrb[33].mxu1  ;;  %v3605_v8 = vpop.eup %3604 }
0x1afe   :  { %v4670_v11 = vpop.f32.mrb[34].mxu1  ;;  %v2014_v20 = vadd.f32 1.0, %v3605_v8 }
0x1aff   :  { %v4672_v46 = vpop.f32.mrb[35].mxu1 }
0x1b00   :  { %3606 = vrcp.f32 %v2014_v20 }
0x1b0a   :  { %v3607_v51 = vpop.eup %3606 }
0x1b0b   :  { %v2042_v38 = vsub.f32 1.0, %v3607_v51  ;;  %v2054_v9 = vmul.f32 0.0, %v3607_v51 }
0x1b3e   :  { %v1914_v0 = vpop.f32.mrb[36].mxu1 }
0x1b3f   :  { %v1916_v23 = vpop.f32.mrb[37].mxu1  ;;  %v4721_v36 = vadd.f32 %v1914_v0, %v4679_v48 }
0x1b40   :  { %v1918_v59 = vpop.f32.mrb[38].mxu1 }
0x1b41   :  { %v4686_v4 = vadd.f32 %v1918_v59, %v4679_v48  ;;  %v1920_v14 = vpop.f32.mrb[39].mxu1 }
0x1b42   :  { %v1921_v1 = vadd.f32 %v1920_v14, %v4683_v45  ;;  %v1917_v14 = vadd.f32 %v1916_v23, %v4683_v45 }
0x1b43   :  { %1927 = vrot.lane.b32.xlu1 %v4686_v4, %s3707_s20 }
0x1b44   :  { %1929 = vrot.lane.b32.xlu0 %v1921_v1, %s3707_s20 }
0x1b47   :  { %2022 = vrot.lane.b32.xlu1 %v2000_v32, %s3708_s22 }
0x1b48   :  { %2024 = vrot.lane.b32.xlu0 %v2003_v26, %s3708_s22 }
0x1bb5   :  { %v1928_v40 = vpop.permute.xlu1 %1927 }
0x1bb6   :  { %v1930_v35 = vpop.permute.xlu0 %1929 }
0x1bb7   :  { %v1931_v44 = vsel %vm73_vm0, %v1928_v40, %v1930_v35 }
0x1bb8   :  { %v2007_v47 = vadd.f32 %v2003_v26, %v1931_v44 }
0x1bb9   :  { %v2023_v54 = vpop.permute.xlu1 %2022 }
0x1bba   :  { %v3042_v22 = vmul.f32 -1.442695, %v2007_v47  ;;  %v2028_v57 = vmul.f32 %v3607_v51, %v2023_v54  ;;  %v2025_v6 = vpop.permute.xlu0 %2024  ;;  %v4754_v51 = vadd.f32 %v4654_v58, %v4679_v48 }
0x1bbc   :  { %3608 = vpow2.f32 %v3042_v22  ;;  %2032 = vrot.lane.b32.xlu1 %v2028_v57, %s3708_s22 }
0x1bc6   :  { %v3609_v30 = vpop.eup %3608 }
0x1bc7   :  { %v2015_v60 = vadd.f32 1.0, %v3609_v30 }
0x1bc9   :  { %3610 = vrcp.f32 %v2015_v60 }
0x1bd3   :  { %v3611_v12 = vpop.eup %3610 }
0x1bd4   :  { %v2029_v24 = vmul.f32 %v3611_v12, %v2025_v6  ;;  %v2043_v39 = vsub.f32 1.0, %v3611_v12  ;;  %v2055_v5 = vmul.f32 0.0, %v3611_v12 }
0x1bd6   :  { %2034 = vrot.lane.b32.xlu0 %v2029_v24, %s3708_s22 }
0x1c2e   :  { %v2033_v43 = vpop.permute.xlu1 %2032 }
0x1c2f   :  { %v2038_v25 = vadd.f32 %v2033_v43, %v4707_v61 }
0x1c31   :  { %3612 = vtanh.f32 %v2038_v25 }
0x1c3b   :  { %v3613_v50 = vpop.eup %3612 }
0x1c3c   :  { %2046 = vrot.lane.b32.xlu1 %v3613_v50, %s3709_s12 }
0x1c48   :  { %v2035_v16 = vpop.permute.xlu0 %2034 }
0x1c49   :  { %v2039_v33 = vadd.f32 %v2035_v16, %v1931_v44 }
0x1c4b   :  { %3614 = vtanh.f32 %v2039_v33 }
0x1c55   :  { %v3615_v56 = vpop.eup %3614 }
0x1c56   :  { %2048 = vrot.lane.b32.xlu0 %v3615_v56, %s3709_s12 }
0x1cae   :  { %v2047_v31 = vpop.permute.xlu1 %2046 }
0x1caf   :  { %v2052_v21 = vmul.f32 %v2047_v31, %v2042_v38 }
0x1cb1   :  { %v4716_v41 = vadd.f32 %v2054_v9, %v2052_v21 }
0x1cb3   :  { %2060 = vrot.lane.b32.xlu1 %v4716_v41, %s3709_s12 }
0x1cb7   :  { %2072 = vrot.lane.b32.xlu1 %v4721_v36, %s3707_s20 }
0x1cc8   :  { %v2049_v62 = vpop.permute.xlu0 %2048 }
0x1cc9   :  { %v2053_v17 = vmul.f32 %v2049_v62, %v2043_v39 }
0x1ccb   :  { %v4725_v59 = vadd.f32 %v2055_v5, %v2053_v17 }
0x1ccd   :  { %2062 = vrot.lane.b32.xlu0 %v4725_v59, %s3709_s12 }
0x1cd1   :  { %2074 = vrot.lane.b32.xlu0 %v1917_v14, %s3707_s20 }
0x1d25   :  { %v2061_v1 = vpop.permute.xlu1 %2060 }
0x1d26   :  { %v2066_v0 = vsel %vm73_vm0, %v2061_v1, %v4716_v41 }
0x1d27   :  { %v2068_v13 = vmul.f32 %v2066_v0, %v4247_v53 }
0x1d29   :  { %v2073_v22 = vpop.permute.xlu1 %2072 }
0x1d3f   :  { %v2063_v26 = vpop.permute.xlu0 %2062 }
0x1d40   :  { %v2067_v32 = vsel %vm73_vm0, %v2063_v26, %v4725_v59 }
0x1d41   :  { %v2069_v42 = vmul.f32 %v2067_v32, %v4250_v49 }
0x1d43   :  { %v2078_v8 = vpack.c.bf16 %v2069_v42, %v2068_v13  ;;  %v2075_v54 = vpop.permute.xlu0 %2074 }
0x1d44   :  { %v2076_v30 = vsel %vm73_vm0, %v2073_v22, %v2075_v54 }
0x1d45   :  { %3326 = vmatmul.mubr.msk.bf16.vlgmr.msra.gmra.mrb[44].mxu0 %vm846_vm7, %v2078_v8 }
0x1d46   :  { %3342 = vmatpush3.bf16.msra.mxu0 %v4549_v28  ;;  %3349 = vmatprep.mubr.msk.bf16.mxu0 %vm3706_vm1, %v3704_v55 }
0x1d47   :  { %3343 = vmatprep.subr.bf16.mxu0 %v3704_v55 }
0x1d4a   :  { %3344 = vmatpush3.bf16.msra.mxu0 %v4562_v2 }
0x1d4b   :  { %3345 = vmatprep.subr.bf16.mxu0 %v3704_v55 }
0x1d4e   :  { %3346 = vmatpush3.bf16.msra.mxu0 %v4576_v29 }
0x1d4f   :  { %3347 = vmatprep.subr.bf16.mxu0 %v3704_v55 }
0x1d52   :  { %3348 = vmatpush3.bf16.msra.mxu0 %v4589_v34 }
0x1d53   :  { %3365 = vmatprep.subr.bf16.mxu0 %v3704_v55 }
0x1e18   :  { %v2116_v23 = vpop.f32.mrb[44].mxu0 }
0x1e19   :  { %v2117_v20 = vadd.f32 %v2116_v23, %v4696_v27  ;;  %v3327_v40 = vpop.f32.mrb[45].mxu0 }
0x1e1a   :  { %v2119_v35 = vpop.f32.mrb[46].mxu0  ;;  %v4773_v40 = vadd.f32 %v4670_v11, %v4679_v48 }
0x1e1b   :  { %v2120_v44 = vadd.f32 %v2119_v35, %v4691_v63  ;;  %2139 = vrot.lane.b32.xlu1 %v2117_v20, %s3708_s22  ;;  %v3328_v47 = vpop.f32.mrb[47].mxu0  ;;  %v2123_v57 = vadd.f32 %v2117_v20, %v4754_v51 }
0x1e1d   :  { %2141 = vrot.lane.b32.xlu0 %v2120_v44, %s3708_s22  ;;  %v2124_v60 = vadd.f32 %v2120_v44, %v2076_v30  ;;  %v3044_v12 = vmul.f32 -1.442695, %v2123_v57 }
0x1e1f   :  { %v3045_v6 = vmul.f32 -1.442695, %v2124_v60  ;;  %3616 = vpow2.f32 %v3044_v12 }
0x1e21   :  { %3618 = vpow2.f32 %v3045_v6 }
0x1e29   :  { %v3617_v24 = vpop.eup %3616 }
0x1e2a   :  { %v2131_v25 = vadd.f32 1.0, %v3617_v24  ;;  %v4805_v24 = vadd.f32 %v4658_v19, %v4679_v48 }
0x1e2b   :  { %v3619_v43 = vpop.eup %3618 }
0x1e2c   :  { %v2132_v50 = vadd.f32 1.0, %v3619_v43  ;;  %3620 = vrcp.f32 %v2131_v25 }
0x1e2e   :  { %3622 = vrcp.f32 %v2132_v50 }
0x1e36   :  { %v3621_v16 = vpop.eup %3620 }
0x1e37   :  { %v2159_v14 = vsub.f32 1.0, %v3621_v16  ;;  %v2171_v0 = vmul.f32 %v3621_v16, %v4716_v41  ;;  %v1911_v41 = vadd.f32 %v4672_v46, %v4683_v45 }
0x1e38   :  { %v3623_v56 = vpop.eup %3622 }
0x1e39   :  { %v2160_v32 = vsub.f32 1.0, %v3623_v56  ;;  %v2172_v8 = vmul.f32 %v3623_v56, %v4725_v59 }
0x1e8d   :  { %v2140_v58 = vpop.permute.xlu1 %2139 }
0x1e8e   :  { %v2145_v33 = vmul.f32 %v3621_v16, %v2140_v58 }
0x1e8f   :  { %v2142_v38 = vpop.permute.xlu0 %2141 }
0x1e90   :  { %v2146_v31 = vmul.f32 %v3623_v56, %v2142_v38  ;;  %2149 = vrot.lane.b32.xlu1 %v2145_v33, %s3708_s22 }
0x1e92   :  { %2151 = vrot.lane.b32.xlu0 %v2146_v31, %s3708_s22 }
0x1f02   :  { %v2150_v9 = vpop.permute.xlu1 %2149 }
0x1f03   :  { %v2155_v21 = vadd.f32 %v2150_v9, %v4754_v51 }
0x1f04   :  { %v2152_v39 = vpop.permute.xlu0 %2151 }
0x1f05   :  { %3624 = vtanh.f32 %v2155_v21  ;;  %v2156_v62 = vadd.f32 %v2152_v39, %v2076_v30 }
0x1f07   :  { %3626 = vtanh.f32 %v2156_v62 }
0x1f0f   :  { %v3625_v5 = vpop.eup %3624 }
0x1f10   :  { %2163 = vrot.lane.b32.xlu1 %v3625_v5, %s3709_s12 }
0x1f11   :  { %v3627_v17 = vpop.eup %3626 }
0x1f12   :  { %2165 = vrot.lane.b32.xlu0 %v3627_v17, %s3709_s12 }
0x1f82   :  { %v2164_v1 = vpop.permute.xlu1 %2163 }
0x1f83   :  { %v2169_v26 = vmul.f32 %v2164_v1, %v2159_v14 }
0x1f84   :  { %v2166_v13 = vpop.permute.xlu0 %2165 }
0x1f85   :  { %v4764_v42 = vadd.f32 %v2171_v0, %v2169_v26  ;;  %v2170_v23 = vmul.f32 %v2166_v13, %v2160_v32 }
0x1f87   :  { %v4767_v20 = vadd.f32 %v2172_v8, %v2170_v23  ;;  %2177 = vrot.lane.b32.xlu1 %v4764_v42, %s3709_s12 }
0x1f89   :  { %2179 = vrot.lane.b32.xlu0 %v4767_v20, %s3709_s12 }
0x1f8b   :  { %2189 = vrot.lane.b32.xlu1 %v4773_v40, %s3707_s20 }
0x1f8d   :  { %2191 = vrot.lane.b32.xlu0 %v1911_v41, %s3707_s20 }
0x1ff9   :  { %v2178_v59 = vpop.permute.xlu1 %2177 }
0x1ffa   :  { %v2183_v35 = vsel %vm73_vm0, %v2178_v59, %v4764_v42 }
0x1ffb   :  { %v2180_v44 = vpop.permute.xlu0 %2179  ;;  %v2185_v47 = vmul.f32 %v2183_v35, %v4247_v53 }
0x1ffc   :  { %v2184_v11 = vsel %vm73_vm0, %v2180_v44, %v4767_v20 }
0x1ffd   :  { %v2186_v54 = vmul.f32 %v2184_v11, %v4250_v49  ;;  %v2190_v25 = vpop.permute.xlu1 %2189 }
0x1fff   :  { %v2195_v22 = vpack.c.bf16 %v2186_v54, %v2185_v47  ;;  %v2192_v43 = vpop.permute.xlu0 %2191 }
0x2000   :  { %v2193_v16 = vsel %vm73_vm0, %v2190_v25, %v2192_v43 }
0x2001   :  { %3338 = vmatmul.mubr.msk.bf16.vlgmr.msra.gmra.mrb[40].mxu1 %vm846_vm7, %v2195_v22 }
0x2002   :  { %3354 = vmatpush3.bf16.msra.mxu1 %v4549_v28  ;;  %3361 = vmatprep.mubr.msk.bf16.mxu1 %vm3706_vm1, %v3704_v55 }
0x2003   :  { %3355 = vmatprep.subr.bf16.mxu1 %v3704_v55 }
0x2006   :  { %3356 = vmatpush3.bf16.msra.mxu1 %v4562_v2 }
0x2007   :  { %3357 = vmatprep.subr.bf16.mxu1 %v3704_v55 }
0x200a   :  { %3358 = vmatpush3.bf16.msra.mxu1 %v4576_v29 }
0x200b   :  { %3359 = vmatprep.subr.bf16.mxu1 %v3704_v55 }
0x200e   :  { %3360 = vmatpush3.bf16.msra.mxu1 %v4589_v34 }
0x200f   :  { %3377 = vmatprep.subr.bf16.mxu1 %v3704_v55 }
0x20d4   :  { %v2233_v46 = vpop.f32.mrb[40].mxu1 }
0x20d5   :  { %v2234_v57 = vadd.f32 %v2233_v46, %v4696_v27  ;;  %v3339_v30 = vpop.f32.mrb[41].mxu1 }
0x20d6   :  { %v2236_v60 = vpop.f32.mrb[42].mxu1 }
0x20d7   :  { %v2237_v12 = vadd.f32 %v2236_v60, %v4691_v63  ;;  %2256 = vrot.lane.b32.xlu1 %v2234_v57, %s3708_s22  ;;  %v3340_v6 = vpop.f32.mrb[43].mxu1  ;;  %v2240_v50 = vadd.f32 %v2234_v57, %v4805_v24  ;;  %v4824_v57 = vadd.f32 %v4666_v18, %v4679_v48 }
0x20d9   :  { %2258 = vrot.lane.b32.xlu0 %v2237_v12, %s3708_s22  ;;  %v2241_v58 = vadd.f32 %v2237_v12, %v2193_v16  ;;  %v3047_v33 = vmul.f32 -1.442695, %v2240_v50 }
0x20db   :  { %v3048_v56 = vmul.f32 -1.442695, %v2241_v58  ;;  %3628 = vpow2.f32 %v3047_v33 }
0x20dd   :  { %3630 = vpow2.f32 %v3048_v56  ;;  %v1899_v56 = vadd.f32 %v4662_v7, %v4679_v48 }
0x20e5   :  { %v3629_v38 = vpop.eup %3628 }
0x20e6   :  { %v2248_v9 = vadd.f32 1.0, %v3629_v38 }
0x20e7   :  { %v3631_v31 = vpop.eup %3630 }
0x20e8   :  { %v2249_v21 = vadd.f32 1.0, %v3631_v31  ;;  %3632 = vrcp.f32 %v2248_v9 }
0x20ea   :  { %3634 = vrcp.f32 %v2249_v21 }
0x20f2   :  { %v3633_v39 = vpop.eup %3632 }
0x20f3   :  { %v2276_v23 = vsub.f32 1.0, %v3633_v39  ;;  %v2288_v59 = vmul.f32 %v3633_v39, %v4764_v42  ;;  %v1907_v42 = vadd.f32 %v4668_v52, %v4683_v45 }
0x20f4   :  { %v3635_v5 = vpop.eup %3634 }
0x20f5   :  { %v2277_v44 = vsub.f32 1.0, %v3635_v5  ;;  %v2289_v54 = vmul.f32 %v3635_v5, %v4767_v20 }
0x2149   :  { %v2257_v19 = vpop.permute.xlu1 %2256 }
0x214a   :  { %v2262_v62 = vmul.f32 %v3633_v39, %v2257_v19 }
0x214b   :  { %v2259_v17 = vpop.permute.xlu0 %2258 }
0x214c   :  { %v2263_v14 = vmul.f32 %v3635_v5, %v2259_v17  ;;  %2266 = vrot.lane.b32.xlu1 %v2262_v62, %s3708_s22 }
0x214e   :  { %2268 = vrot.lane.b32.xlu0 %v2263_v14, %s3708_s22 }
0x21be   :  { %v2267_v1 = vpop.permute.xlu1 %2266 }
0x21bf   :  { %v2272_v0 = vadd.f32 %v2267_v1, %v4805_v24 }
0x21c0   :  { %v2269_v26 = vpop.permute.xlu0 %2268 }
0x21c1   :  { %3636 = vtanh.f32 %v2272_v0  ;;  %v2273_v32 = vadd.f32 %v2269_v26, %v2193_v16 }
0x21c3   :  { %3638 = vtanh.f32 %v2273_v32 }
0x21cb   :  { %v3637_v13 = vpop.eup %3636 }
0x21cc   :  { %2280 = vrot.lane.b32.xlu1 %v3637_v13, %s3709_s12 }
0x21cd   :  { %v3639_v8 = vpop.eup %3638 }
0x21ce   :  { %2282 = vrot.lane.b32.xlu0 %v3639_v8, %s3709_s12 }
0x223e   :  { %v2281_v41 = vpop.permute.xlu1 %2280 }
0x223f   :  { %v2286_v35 = vmul.f32 %v2281_v41, %v2276_v23 }
0x2240   :  { %v2283_v11 = vpop.permute.xlu0 %2282 }
0x2241   :  { %v4815_v47 = vadd.f32 %v2288_v59, %v2286_v35  ;;  %v2287_v22 = vmul.f32 %v2283_v11, %v2277_v44 }
0x2243   :  { %v4818_v46 = vadd.f32 %v2289_v54, %v2287_v22  ;;  %2294 = vrot.lane.b32.xlu1 %v4815_v47, %s3709_s12 }
0x2245   :  { %2296 = vrot.lane.b32.xlu0 %v4818_v46, %s3709_s12 }
0x2247   :  { %2306 = vrot.lane.b32.xlu1 %v4824_v57, %s3707_s20 }
0x2249   :  { %2308 = vrot.lane.b32.xlu0 %v1907_v42, %s3707_s20 }
0x22b5   :  { %v2295_v20 = vpop.permute.xlu1 %2294 }
0x22b6   :  { %v2300_v30 = vsel %vm73_vm0, %v2295_v20, %v4815_v47 }
0x22b7   :  { %v2297_v60 = vpop.permute.xlu0 %2296  ;;  %v2302_v12 = vmul.f32 %v2300_v30, %v4247_v53 }
0x22b8   :  { %v2301_v18 = vsel %vm73_vm0, %v2297_v60, %v4818_v46 }
0x22b9   :  { %v2303_v6 = vmul.f32 %v2301_v18, %v4250_v49  ;;  %v2307_v31 = vpop.permute.xlu1 %2306 }
0x22bb   :  { %v2312_v43 = vpack.c.bf16 %v2303_v6, %v2302_v12  ;;  %v2309_v38 = vpop.permute.xlu0 %2308 }
0x22bc   :  { %v2310_v21 = vsel %vm73_vm0, %v2307_v31, %v2309_v38 }
0x22bd   :  { %3350 = vmatmul.mubr.msk.bf16.vlgmr.msra.gmra.mrb[48].mxu0 %vm846_vm7, %v2312_v43  ;;  %v1901_v43 = vadd.f32 %v4664_v37, %v4683_v45 }
0x22be   :  { %3366 = vmatpush3.bf16.msra.mxu0 %v4549_v28  ;;  %3373 = vmatprep.mubr.msk.bf16.mxu0 %vm3706_vm1, %v3704_v55 }
0x22bf   :  { %3367 = vmatprep.subr.bf16.mxu0 %v3704_v55 }
0x22c2   :  { %3368 = vmatpush3.bf16.msra.mxu0 %v4562_v2 }
0x22c3   :  { %3369 = vmatprep.subr.bf16.mxu0 %v3704_v55 }
0x22c6   :  { %3370 = vmatpush3.bf16.msra.mxu0 %v4576_v29 }
0x22c7   :  { %3371 = vmatprep.subr.bf16.mxu0 %v3704_v55 }
0x22ca   :  { %3372 = vmatpush3.bf16.msra.mxu0 %v4589_v34 }
0x22cb   :  { %3389 = vmatprep.subr.bf16.mxu0 %v3704_v55 }
0x2390   :  { %v2350_v52 = vpop.f32.mrb[48].mxu0 }
0x2391   :  { %v2351_v25 = vadd.f32 %v2350_v52, %v4696_v27  ;;  %v3351_v50 = vpop.f32.mrb[49].mxu0 }
0x2392   :  { %v2353_v16 = vpop.f32.mrb[50].mxu0 }
0x2393   :  { %v2354_v58 = vadd.f32 %v2353_v16, %v4691_v63  ;;  %2373 = vrot.lane.b32.xlu1 %v2351_v25, %s3708_s22  ;;  %v3352_v33 = vpop.f32.mrb[51].mxu0  ;;  %v2357_v9 = vadd.f32 %v2351_v25, %v1899_v56 }
0x2395   :  { %2375 = vrot.lane.b32.xlu0 %v2354_v58, %s3708_s22  ;;  %v2358_v39 = vadd.f32 %v2354_v58, %v2310_v21  ;;  %v3050_v19 = vmul.f32 -1.442695, %v2357_v9 }
0x2397   :  { %v3051_v62 = vmul.f32 -1.442695, %v2358_v39  ;;  %3640 = vpow2.f32 %v3050_v19 }
0x2399   :  { %3642 = vpow2.f32 %v3051_v62 }
0x23a1   :  { %v3641_v5 = vpop.eup %3640 }
0x23a2   :  { %v2365_v14 = vadd.f32 1.0, %v3641_v5 }
0x23a3   :  { %v3643_v17 = vpop.eup %3642 }
0x23a4   :  { %v2366_v1 = vadd.f32 1.0, %v3643_v17  ;;  %3644 = vrcp.f32 %v2365_v14 }
0x23a6   :  { %3646 = vrcp.f32 %v2366_v1 }
0x23ae   :  { %v3645_v0 = vpop.eup %3644 }
0x23af   :  { %v2393_v11 = vsub.f32 1.0, %v3645_v0  ;;  %v2405_v22 = vmul.f32 %v3645_v0, %v4815_v47 }
0x23b0   :  { %v3647_v7 = vpop.eup %3646 }
0x23b1   :  { %v2394_v20 = vsub.f32 1.0, %v3647_v7  ;;  %v2406_v18 = vmul.f32 %v3647_v7, %v4818_v46 }
0x2405   :  { %v2374_v26 = vpop.permute.xlu1 %2373 }
0x2406   :  { %v2379_v32 = vmul.f32 %v3645_v0, %v2374_v26 }
0x2407   :  { %v2376_v48 = vpop.permute.xlu0 %2375 }
0x2408   :  { %v2380_v13 = vmul.f32 %v3647_v7, %v2376_v48  ;;  %2383 = vrot.lane.b32.xlu1 %v2379_v32, %s3708_s22 }
0x240a   :  { %2385 = vrot.lane.b32.xlu0 %v2380_v13, %s3708_s22 }
0x247a   :  { %v2384_v8 = vpop.permute.xlu1 %2383 }
0x247b   :  { %v2389_v23 = vadd.f32 %v2384_v8, %v1899_v56 }
0x247c   :  { %v2386_v41 = vpop.permute.xlu0 %2385 }
0x247d   :  { %3648 = vtanh.f32 %v2389_v23  ;;  %v2390_v59 = vadd.f32 %v2386_v41, %v2310_v21 }
0x247f   :  { %3650 = vtanh.f32 %v2390_v59 }
0x2487   :  { %v3649_v35 = vpop.eup %3648 }
0x2488   :  { %2397 = vrot.lane.b32.xlu1 %v3649_v35, %s3709_s12 }
0x2489   :  { %v3651_v44 = vpop.eup %3650 }
0x248a   :  { %2399 = vrot.lane.b32.xlu0 %v3651_v44, %s3709_s12 }
0x24fa   :  { %v2398_v54 = vpop.permute.xlu1 %2397 }
0x24fb   :  { %v2403_v42 = vmul.f32 %v2398_v54, %v2393_v11 }
0x24fc   :  { %v2400_v30 = vpop.permute.xlu0 %2399 }
0x24fd   :  { %v4862_v60 = vadd.f32 %v2405_v22, %v2403_v42  ;;  %v2404_v12 = vmul.f32 %v2400_v30, %v2394_v20 }
0x24ff   :  { %v4865_v6 = vadd.f32 %v2406_v18, %v2404_v12  ;;  %2411 = vrot.lane.b32.xlu1 %v4862_v60, %s3709_s12 }
0x2501   :  { %2413 = vrot.lane.b32.xlu0 %v4865_v6, %s3709_s12 }
0x2503   :  { %2423 = vrot.lane.b32.xlu1 %v1899_v56, %s3707_s20 }
0x2505   :  { %2425 = vrot.lane.b32.xlu0 %v1901_v43, %s3707_s20 }
0x2571   :  { %v2412_v47 = vpop.permute.xlu1 %2411 }
0x2572   :  { %v2417_v46 = vsel %vm73_vm0, %v2412_v47, %v4862_v60 }
0x2573   :  { %v2414_v52 = vpop.permute.xlu0 %2413  ;;  %v2419_v50 = vmul.f32 %v2417_v46, %v4247_v53 }
0x2574   :  { %v2418_v25 = vsel %vm73_vm0, %v2414_v52, %v4865_v6 }
0x2575   :  { %v2420_v16 = vmul.f32 %v2418_v25, %v4250_v49  ;;  %v2424_v39 = vpop.permute.xlu1 %2423  ;;  %v1897_v25 = vadd.f32 %v4660_v3, %v4683_v45 }
0x2577   :  { %v2429_v58 = vpack.c.bf16 %v2420_v16, %v2419_v50  ;;  %v2426_v21 = vpop.permute.xlu0 %2425 }
0x2578   :  { %v2427_v62 = vsel %vm73_vm0, %v2424_v39, %v2426_v21 }
0x2579   :  { %3362 = vmatmul.mubr.msk.bf16.vlgmr.msra.gmra.mrb[44].mxu1 %vm846_vm7, %v2429_v58 }
0x257a   :  { %3378 = vmatpush3.bf16.msra.mxu1 %v4549_v28  ;;  %3385 = vmatprep.mubr.msk.bf16.mxu1 %vm3706_vm1, %v3704_v55 }
0x257b   :  { %3379 = vmatprep.subr.bf16.mxu1 %v3704_v55 }
0x257e   :  { %3380 = vmatpush3.bf16.msra.mxu1 %v4562_v2 }
0x257f   :  { %3381 = vmatprep.subr.bf16.mxu1 %v3704_v55 }
0x2582   :  { %3382 = vmatpush3.bf16.msra.mxu1 %v4576_v29 }
0x2583   :  { %3383 = vmatprep.subr.bf16.mxu1 %v3704_v55 }
0x2586   :  { %3384 = vmatpush3.bf16.msra.mxu1 %v4589_v34 }
0x2587   :  { %3401 = vmatprep.subr.bf16.mxu1 %v3704_v55 }
0x264c   :  { %v2467_v37 = vpop.f32.mrb[44].mxu1 }
0x264d   :  { %v2468_v33 = vadd.f32 %v2467_v37, %v4696_v27  ;;  %v3363_v56 = vpop.f32.mrb[45].mxu1 }
0x264e   :  { %v2470_v38 = vpop.f32.mrb[46].mxu1 }
0x264f   :  { %v2471_v31 = vadd.f32 %v2470_v38, %v4691_v63  ;;  %2490 = vrot.lane.b32.xlu1 %v2468_v33, %s3708_s22  ;;  %v3364_v9 = vpop.f32.mrb[47].mxu1  ;;  %v2474_v19 = vadd.f32 %v2468_v33, %v4824_v57 }
0x2651   :  { %2492 = vrot.lane.b32.xlu0 %v2471_v31, %s3708_s22  ;;  %v2475_v5 = vadd.f32 %v2471_v31, %v2427_v62  ;;  %v3053_v17 = vmul.f32 -1.442695, %v2474_v19 }
0x2653   :  { %v3054_v14 = vmul.f32 -1.442695, %v2475_v5  ;;  %3652 = vpow2.f32 %v3053_v17 }
0x2655   :  { %3654 = vpow2.f32 %v3054_v14 }
0x265d   :  { %v3653_v1 = vpop.eup %3652 }
0x265e   :  { %v2482_v26 = vadd.f32 1.0, %v3653_v1 }
0x265f   :  { %v3655_v0 = vpop.eup %3654 }
0x2660   :  { %v2483_v32 = vadd.f32 1.0, %v3655_v0  ;;  %3656 = vrcp.f32 %v2482_v26 }
0x2662   :  { %3658 = vrcp.f32 %v2483_v32 }
0x266a   :  { %v3657_v7 = vpop.eup %3656 }
0x266b   :  { %v2510_v42 = vsub.f32 1.0, %v3657_v7  ;;  %v2522_v30 = vmul.f32 %v3657_v7, %v4862_v60 }
0x266c   :  { %v3659_v8 = vpop.eup %3658 }
0x266d   :  { %v2511_v12 = vsub.f32 1.0, %v3659_v8 }
0x26c1   :  { %v2491_v48 = vpop.permute.xlu1 %2490 }
0x26c2   :  { %v2496_v13 = vmul.f32 %v3657_v7, %v2491_v48 }
0x26c3   :  { %v2493_v23 = vpop.permute.xlu0 %2492 }
0x26c4   :  { %v2497_v41 = vmul.f32 %v3659_v8, %v2493_v23  ;;  %2500 = vrot.lane.b32.xlu1 %v2496_v13, %s3708_s22 }
0x26c6   :  { %2502 = vrot.lane.b32.xlu0 %v2497_v41, %s3708_s22 }
0x2736   :  { %v2501_v59 = vpop.permute.xlu1 %2500 }
0x2737   :  { %v2506_v35 = vadd.f32 %v2501_v59, %v4824_v57  ;;  %v2523_v57 = vmul.f32 %v3659_v8, %v4865_v6 }
0x2738   :  { %v2503_v44 = vpop.permute.xlu0 %2502 }
0x2739   :  { %3660 = vtanh.f32 %v2506_v35  ;;  %v2507_v11 = vadd.f32 %v2503_v44, %v2427_v62 }
0x273b   :  { %3662 = vtanh.f32 %v2507_v11 }
0x2743   :  { %v3661_v54 = vpop.eup %3660 }
0x2744   :  { %2514 = vrot.lane.b32.xlu1 %v3661_v54, %s3709_s12 }
0x2745   :  { %v3663_v22 = vpop.eup %3662 }
0x2746   :  { %2516 = vrot.lane.b32.xlu0 %v3663_v22, %s3709_s12 }
0x27b6   :  { %v2515_v20 = vpop.permute.xlu1 %2514 }
0x27b7   :  { %v2520_v18 = vmul.f32 %v2515_v20, %v2510_v42 }
0x27b8   :  { %v2517_v43 = vpop.permute.xlu0 %2516 }
0x27b9   :  { %v4904_v47 = vadd.f32 %v2522_v30, %v2520_v18  ;;  %v2521_v46 = vmul.f32 %v2517_v43, %v2511_v12  ;;  %v1891_v43 = vadd.f32 %v4656_v10, %v4683_v45 }
0x27bb   :  { %v4907_v52 = vadd.f32 %v2523_v57, %v2521_v46  ;;  %2528 = vrot.lane.b32.xlu1 %v4904_v47, %s3709_s12 }
0x27bd   :  { %2530 = vrot.lane.b32.xlu0 %v4907_v52, %s3709_s12 }
0x27bf   :  { %2540 = vrot.lane.b32.xlu1 %v4805_v24, %s3707_s20 }
0x27c1   :  { %2542 = vrot.lane.b32.xlu0 %v1897_v25, %s3707_s20 }
0x282d   :  { %v2529_v60 = vpop.permute.xlu1 %2528 }
0x282e   :  { %v2534_v6 = vsel %vm73_vm0, %v2529_v60, %v4904_v47 }
0x282f   :  { %v2531_v50 = vpop.permute.xlu0 %2530  ;;  %v2536_v58 = vmul.f32 %v2534_v6, %v4247_v53 }
0x2830   :  { %v2535_v16 = vsel %vm73_vm0, %v2531_v50, %v4907_v52 }
0x2831   :  { %v2537_v37 = vmul.f32 %v2535_v16, %v4250_v49  ;;  %v2541_v9 = vpop.permute.xlu1 %2540 }
0x2833   :  { %v2546_v33 = vpack.c.bf16 %v2537_v37, %v2536_v58 }
0x2835   :  { %3374 = vmatmul.mubr.msk.bf16.vlgmr.msra.gmra.mrb[52].mxu0 %vm846_vm7, %v2546_v33 }
0x2836   :  { %3390 = vmatpush3.bf16.msra.mxu0 %v4549_v28  ;;  %3397 = vmatprep.mubr.msk.bf16.mxu0 %vm3706_vm1, %v3704_v55 }
0x2837   :  { %3391 = vmatprep.subr.bf16.mxu0 %v3704_v55 }
0x283a   :  { %3392 = vmatpush3.bf16.msra.mxu0 %v4562_v2  ;;  %v2543_v2 = vpop.permute.xlu0 %2542 }
0x283b   :  { %3393 = vmatprep.subr.bf16.mxu0 %v3704_v55  ;;  %v2544_v21 = vsel %vm73_vm0, %v2541_v9, %v2543_v2 }
0x283e   :  { %3394 = vmatpush3.bf16.msra.mxu0 %v4576_v29 }
0x283f   :  { %3395 = vmatprep.subr.bf16.mxu0 %v3704_v55 }
0x2842   :  { %3396 = vmatpush3.bf16.msra.mxu0 %v4589_v34 }
0x2908   :  { %v2584_v3 = vpop.f32.mrb[52].mxu0 }
0x2909   :  { %v2585_v24 = vadd.f32 %v2584_v3, %v4696_v27  ;;  %v3375_v56 = vpop.f32.mrb[53].mxu0 }
0x290a   :  { %v2587_v28 = vpop.f32.mrb[54].mxu0 }
0x290b   :  { %v2588_v38 = vadd.f32 %v2587_v28, %v4691_v63  ;;  %2607 = vrot.lane.b32.xlu1 %v2585_v24, %s3708_s22  ;;  %v3376_v31 = vpop.f32.mrb[55].mxu0  ;;  %v2591_v29 = vadd.f32 %v2585_v24, %v4773_v40 }
0x290d   :  { %2609 = vrot.lane.b32.xlu0 %v2588_v38, %s3708_s22  ;;  %v2592_v39 = vadd.f32 %v2588_v38, %v2544_v21  ;;  %v3056_v34 = vmul.f32 -1.442695, %v2591_v29 }
0x290f   :  { %v3057_v19 = vmul.f32 -1.442695, %v2592_v39  ;;  %3664 = vpow2.f32 %v3056_v34 }
0x2911   :  { %3666 = vpow2.f32 %v3057_v19 }
0x2919   :  { %v3665_v62 = vpop.eup %3664 }
0x291a   :  { %v2599_v17 = vadd.f32 1.0, %v3665_v62 }
0x291b   :  { %v3667_v5 = vpop.eup %3666 }
0x291c   :  { %v2600_v14 = vadd.f32 1.0, %v3667_v5  ;;  %3668 = vrcp.f32 %v2599_v17 }
0x291e   :  { %3670 = vrcp.f32 %v2600_v14 }
0x2926   :  { %v3669_v1 = vpop.eup %3668 }
0x2927   :  { %v2627_v44 = vsub.f32 1.0, %v3669_v1  ;;  %v2639_v54 = vmul.f32 %v3669_v1, %v4904_v47 }
0x2928   :  { %v3671_v32 = vpop.eup %3670 }
0x2929   :  { %v2628_v42 = vsub.f32 1.0, %v3671_v32 }
0x297d   :  { %v2608_v0 = vpop.permute.xlu1 %2607 }
0x297e   :  { %v2613_v26 = vmul.f32 %v3669_v1, %v2608_v0 }
0x297f   :  { %v2610_v7 = vpop.permute.xlu0 %2609 }
0x2980   :  { %v2614_v48 = vmul.f32 %v3671_v32, %v2610_v7  ;;  %2617 = vrot.lane.b32.xlu1 %v2613_v26, %s3708_s22 }
0x2982   :  { %2619 = vrot.lane.b32.xlu0 %v2614_v48, %s3708_s22 }
0x29f2   :  { %v2618_v13 = vpop.permute.xlu1 %2617 }
0x29f3   :  { %v2623_v8 = vadd.f32 %v2618_v13, %v4773_v40  ;;  %v2640_v40 = vmul.f32 %v3671_v32, %v4907_v52 }
0x29f4   :  { %v2620_v23 = vpop.permute.xlu0 %2619 }
0x29f5   :  { %3672 = vtanh.f32 %v2623_v8  ;;  %v2624_v41 = vadd.f32 %v2620_v23, %v2544_v21 }
0x29f7   :  { %3674 = vtanh.f32 %v2624_v41 }
0x29ff   :  { %v3673_v59 = vpop.eup %3672 }
0x2a00   :  { %2631 = vrot.lane.b32.xlu1 %v3673_v59, %s3709_s12 }
0x2a01   :  { %v3675_v35 = vpop.eup %3674 }
0x2a02   :  { %2633 = vrot.lane.b32.xlu0 %v3675_v35, %s3709_s12 }
0x2a72   :  { %v2632_v11 = vpop.permute.xlu1 %2631 }
0x2a73   :  { %v2637_v22 = vmul.f32 %v2632_v11, %v2627_v44 }
0x2a74   :  { %v2634_v20 = vpop.permute.xlu0 %2633 }
0x2a75   :  { %v2641_v30 = vadd.f32 %v2639_v54, %v2637_v22  ;;  %v2638_v18 = vmul.f32 %v2634_v20, %v2628_v42 }
0x2a77   :  { %v4947_v12 = vadd.f32 %v2640_v40, %v2638_v18  ;;  %2645 = vrot.lane.b32.xlu1 %v2641_v30, %s3709_s12 }
0x2a79   :  { %2647 = vrot.lane.b32.xlu0 %v4947_v12, %s3709_s12 }
0x2a7b   :  { %2657 = vrot.lane.b32.xlu1 %v4754_v51, %s3707_s20 }
0x2a7d   :  { %2659 = vrot.lane.b32.xlu0 %v1891_v43, %s3707_s20 }
0x2ae9   :  { %v2646_v47 = vpop.permute.xlu1 %2645 }
0x2aea   :  { %v2651_v57 = vsel %vm73_vm0, %v2646_v47, %v2641_v30 }
0x2aeb   :  { %v2648_v46 = vpop.permute.xlu0 %2647  ;;  %v2653_v25 = vmul.f32 %v2651_v57, %v4247_v53 }
0x2aec   :  { %v2652_v52 = vsel %vm73_vm0, %v2648_v46, %v4947_v12 }
0x2aed   :  { %v2654_v60 = vmul.f32 %v2652_v52, %v4250_v49  ;;  %v2658_v3 = vpop.permute.xlu1 %2657  ;;  %v1887_v52 = vadd.f32 %v4652_v15, %v4683_v45 }
0x2aef   :  { %v2663_v6 = vpack.c.bf16 %v2654_v60, %v2653_v25  ;;  %v2660_v33 = vpop.permute.xlu0 %2659 }
0x2af0   :  { %v2661_v56 = vsel %vm73_vm0, %v2658_v3, %v2660_v33 }
0x2af1   :  { %3386 = vmatmul.mubr.msk.bf16.vlgmr.msra.gmra.mrb[48].mxu1 %vm846_vm7, %v2663_v6 }
0x2af2   :  { %3409 = vmatprep.mubr.msk.bf16.mxu1 %vm3706_vm1, %v3704_v55 }
0x2bc4   :  { %v2701_v10 = vpop.f32.mrb[48].mxu1 }
0x2bc5   :  { %v2702_v51 = vadd.f32 %v2701_v10, %v4696_v27  ;;  %v3387_v50 = vpop.f32.mrb[49].mxu1 }
0x2bc6   :  { %v2704_v16 = vpop.f32.mrb[50].mxu1 }
0x2bc7   :  { %v2705_v58 = vadd.f32 %v2704_v16, %v4691_v63  ;;  %2724 = vrot.lane.b32.xlu1 %v2702_v51, %s3708_s22  ;;  %v3388_v37 = vpop.f32.mrb[51].mxu1  ;;  %v2708_v24 = vadd.f32 %v2702_v51, %v4721_v36 }
0x2bc9   :  { %2726 = vrot.lane.b32.xlu0 %v2705_v58, %s3708_s22  ;;  %v2709_v28 = vadd.f32 %v2705_v58, %v2661_v56  ;;  %v3059_v38 = vmul.f32 -1.442695, %v2708_v24 }
0x2bcb   :  { %v3060_v31 = vmul.f32 -1.442695, %v2709_v28  ;;  %3676 = vpow2.f32 %v3059_v38 }
0x2bcd   :  { %3678 = vpow2.f32 %v3060_v31 }
0x2bd5   :  { %v3677_v2 = vpop.eup %3676 }
0x2bd6   :  { %v2716_v29 = vadd.f32 1.0, %v3677_v2  ;;  %v3456_v2 = vld [vmem:[%s5051_s17] sm:$0xff]  }
0x2bd7   :  { %v3679_v9 = vpop.eup %3678  ;;  %3402 = vmatpush3.bf16.msra.mxu1 %v3456_v2 }
0x2bd8   :  { %v2717_v21 = vadd.f32 1.0, %v3679_v9  ;;  %3680 = vrcp.f32 %v2716_v29  ;;  %v3457_v9 = vld [vmem:[%s5051_s17 + $0x8] sm:$0xff]   ;;  %3403 = vmatprep.subr.bf16.mxu1 %v3704_v55 }
0x2bda   :  { %3682 = vrcp.f32 %v2717_v21  ;;  %v3459_v21 = vld [vmem:[%s5051_s17 + $0x18] sm:$0xff]  }
0x2bdb   :  { %3404 = vmatpush3.bf16.msra.mxu1 %v3457_v9 }
0x2bdc   :  { %3405 = vmatprep.subr.bf16.mxu1 %v3704_v55 }
0x2be2   :  { %v3681_v39 = vpop.eup %3680 }
0x2be3   :  { %v2744_v48 = vsub.f32 1.0, %v3681_v39  ;;  %v2756_v8 = vmul.f32 %v3681_v39, %v2641_v30 }
0x2be4   :  { %v3683_v62 = vpop.eup %3682 }
0x2be5   :  { %v2745_v41 = vsub.f32 1.0, %v3683_v62 }
0x2c39   :  { %v2725_v34 = vpop.permute.xlu1 %2724 }
0x2c3a   :  { %v2730_v19 = vmul.f32 %v3681_v39, %v2725_v34 }
0x2c3b   :  { %v2727_v5 = vpop.permute.xlu0 %2726 }
0x2c3c   :  { %v2731_v17 = vmul.f32 %v3683_v62, %v2727_v5  ;;  %2734 = vrot.lane.b32.xlu1 %v2730_v19, %s3708_s22 }
0x2c3e   :  { %2736 = vrot.lane.b32.xlu0 %v2731_v17, %s3708_s22 }
0x2cae   :  { %v2735_v14 = vpop.permute.xlu1 %2734 }
0x2caf   :  { %v2740_v1 = vadd.f32 %v2735_v14, %v4721_v36  ;;  %v2757_v36 = vmul.f32 %v3683_v62, %v4947_v12 }
0x2cb0   :  { %v2737_v0 = vpop.permute.xlu0 %2736 }
0x2cb1   :  { %3684 = vtanh.f32 %v2740_v1  ;;  %v2741_v26 = vadd.f32 %v2737_v0, %v2661_v56 }
0x2cb3   :  { %3686 = vtanh.f32 %v2741_v26 }
0x2cbb   :  { %v3685_v32 = vpop.eup %3684 }
0x2cbc   :  { %2748 = vrot.lane.b32.xlu1 %v3685_v32, %s3709_s12 }
0x2cbd   :  { %v3687_v7 = vpop.eup %3686 }
0x2cbe   :  { %2750 = vrot.lane.b32.xlu0 %v3687_v7, %s3709_s12 }
0x2d2e   :  { %v2749_v13 = vpop.permute.xlu1 %2748 }
0x2d2f   :  { %v2754_v23 = vmul.f32 %v2749_v13, %v2744_v48  ;;  %v3064_v48 = vld [vmem:[%s5052_s18] ss:$0 sm:$0xff] }
0x2d30   :  { %v2751_v59 = vpop.permute.xlu0 %2750 }
0x2d31   :  { %v4976_v35 = vadd.f32 %v2756_v8, %v2754_v23  ;;  %v2755_v44 = vmul.f32 %v2751_v59, %v2745_v41 }
0x2d33   :  { %v4979_v11 = vadd.f32 %v2757_v36, %v2755_v44  ;;  %2762 = vrot.lane.b32.xlu1 %v4976_v35, %s3709_s12 }
0x2d35   :  { %2764 = vrot.lane.b32.xlu0 %v4979_v11, %s3709_s12 }
0x2d39   :  { %2774 = vrot.lane.b32.xlu0 %v4707_v61, %s3707_s20 }
0x2da5   :  { %v2763_v54 = vpop.permute.xlu1 %2762 }
0x2da6   :  { %v2768_v22 = vsel %vm73_vm0, %v2763_v54, %v4976_v35 }
0x2da7   :  { %v2765_v42 = vpop.permute.xlu0 %2764  ;;  %v2770_v30 = vmul.f32 %v2768_v22, %v4247_v53 }
0x2da8   :  { %v2769_v20 = vsel %vm73_vm0, %v2765_v42, %v4979_v11 }
0x2da9   :  { %v2771_v40 = vmul.f32 %v2769_v20, %v4250_v49 }
0x2dab   :  { %v2780_v18 = vpack.c.bf16 %v2771_v40, %v2770_v30  ;;  %v2775_v10 = vpop.permute.xlu0 %2774 }
0x2dad   :  { %3398 = vmatmul.mubr.msk.bf16.vlgmr.msra.gmra.mrb[56].mxu0 %vm846_vm7, %v2780_v18 }
0x2e80   :  { %v2818_v12 = vpop.f32.mrb[56].mxu0 }
0x2e81   :  { %v2819_v43 = vadd.f32 %v2818_v12, %v4696_v27  ;;  %v3399_v47 = vpop.f32.mrb[57].mxu0 }
0x2e82   :  { %v2821_v61 = vpop.f32.mrb[58].mxu0 }
0x2e83   :  { %v2822_v57 = vadd.f32 %v2821_v61, %v4691_v63  ;;  %2841 = vrot.lane.b32.xlu1 %v2819_v43, %s3708_s22  ;;  %v3400_v46 = vpop.f32.mrb[59].mxu0  ;;  %v2825_v53 = vadd.f32 %v2819_v43, %v4686_v4 }
0x2e85   :  { %2843 = vrot.lane.b32.xlu0 %v2822_v57, %s3708_s22  ;;  %v3062_v49 = vmul.f32 -1.442695, %v2825_v53 }
0x2e87   :  { %2776 = vrot.lane.b32.xlu1 %v1887_v52, %s3707_s20  ;;  %3688 = vpow2.f32 %v3062_v49 }
0x2e91   :  { %v3689_v25 = vpop.eup %3688 }
0x2e92   :  { %v2833_v27 = vadd.f32 1.0, %v3689_v25 }
0x2e94   :  { %3690 = vrcp.f32 %v2833_v27 }
0x2e9e   :  { %v3691_v60 = vpop.eup %3690 }
0x2e9f   :  { %v2861_v39 = vsub.f32 1.0, %v3691_v60  ;;  %v2873_v19 = vmul.f32 %v3691_v60, %v4976_v35 }
0x2ef5   :  { %v2842_v6 = vpop.permute.xlu1 %2841 }
0x2ef6   :  { %v2847_v63 = vmul.f32 %v3691_v60, %v2842_v6 }
0x2ef7   :  { %v2844_v33 = vpop.permute.xlu0 %2843 }
0x2ef8   :  { %2851 = vrot.lane.b32.xlu1 %v2847_v63, %s3708_s22 }
0x2ef9   :  { %v2777_v51 = vpop.permute.xlu1 %2776 }
0x2efa   :  { %v2778_v15 = vsel %vm73_vm0, %v2775_v10, %v2777_v51 }
0x2efb   :  { %v2826_v45 = vadd.f32 %v2822_v57, %v2778_v15 }
0x2efd   :  { %v3063_v50 = vmul.f32 -1.442695, %v2826_v45 }
0x2eff   :  { %3692 = vpow2.f32 %v3063_v50 }
0x2f09   :  { %v3693_v16 = vpop.eup %3692 }
0x2f0a   :  { %v2834_v58 = vadd.f32 1.0, %v3693_v16 }
0x2f0c   :  { %3694 = vrcp.f32 %v2834_v58 }
0x2f16   :  { %v3695_v37 = vpop.eup %3694 }
0x2f17   :  { %v2848_v3 = vmul.f32 %v3695_v37, %v2844_v33  ;;  %v2862_v14 = vsub.f32 1.0, %v3695_v37  ;;  %v2874_v0 = vmul.f32 %v3695_v37, %v4979_v11 }
0x2f19   :  { %2853 = vrot.lane.b32.xlu0 %v2848_v3, %s3708_s22 }
0x2f6a   :  { %v2852_v24 = vpop.permute.xlu1 %2851 }
0x2f6b   :  { %v2857_v56 = vadd.f32 %v2852_v24, %v4686_v4  ;;  %v3458_v4 = vld [vmem:[%s5051_s17 + $0x10] sm:$0xff]  }
0x2f6c   :  { %3406 = vmatpush3.bf16.msra.mxu1 %v3458_v4 }
0x2f6d   :  { %3696 = vtanh.f32 %v2857_v56  ;;  %3407 = vmatprep.subr.bf16.mxu1 %v3704_v55 }
0x2f70   :  { %3408 = vmatpush3.bf16.msra.mxu1 %v3459_v21 }
0x2f77   :  { %v3697_v28 = vpop.eup %3696 }
0x2f78   :  { %2865 = vrot.lane.b32.xlu1 %v3697_v28, %s3709_s12 }
0x2f8b   :  { %v2854_v38 = vpop.permute.xlu0 %2853 }
0x2f8c   :  { %v2858_v31 = vadd.f32 %v2854_v38, %v2778_v15 }
0x2f8e   :  { %3698 = vtanh.f32 %v2858_v31 }
0x2f98   :  { %v3699_v29 = vpop.eup %3698 }
0x2f99   :  { %2867 = vrot.lane.b32.xlu0 %v3699_v29, %s3709_s12 }
0x2fea   :  { %v2866_v34 = vpop.permute.xlu1 %2865 }
0x2feb   :  { %v2871_v62 = vmul.f32 %v2866_v34, %v2861_v39 }
0x2fed   :  { %v2875_v5 = vadd.f32 %v2873_v19, %v2871_v62 }
0x2fef   :  { %2878 = vrot.lane.b32.xlu1 %v2875_v5, %s3709_s12 }
0x300b   :  { %v2868_v17 = vpop.permute.xlu0 %2867 }
0x300c   :  { %v2872_v1 = vmul.f32 %v2868_v17, %v2862_v14 }
0x300e   :  { %v2876_v26 = vadd.f32 %v2874_v0, %v2872_v1 }
0x3061   :  { %v2879_v55 = vpop.permute.xlu1 %2878 }
0x3062   :  { %v2881_v32 = vsel %vm73_vm0, %v2879_v55, %v2876_v26 }
0x3063   :  { %v2882_v7 = vpack.c.bf16 %v2881_v32, %v2881_v32 }
0x3065   :  { %3410 = vmatmul.mubr.msk.bf16.vlgmr.msra.gmra.mrb[52].mxu1 %vm846_vm7, %v2882_v7 }
0x3138   :  { %v2959_v13 = vpop.f32.mrb[52].mxu1 }
0x3139   :  { %v2960_v8 = vadd.f32 %v3064_v48, %v2959_v13  ;;  %v3411_v23 = vpop.f32.mrb[53].mxu1 }
0x313a   :  { %v2962_v41 = vpop.f32.mrb[54].mxu1 }
0x313b   :  { %2965 = vst [vmem:[%s5053_s19] sm:$0xff] %v2960_v8  ;;  %v3412_v59 = vpop.f32.mrb[55].mxu1 }

</bundles_post_ra>
